<compile_context>
chip_gen: v7x
topology: tpu7x:2x2x1
jax: 0.10.0
libtpu: 0.0.40
codegen_flags: <defaults>
</compile_context>

<pallas_src>
import functools

import jax
import jax.numpy as jnp
from jax.experimental import pallas as pl
from jax.experimental.pallas import tpu as pltpu


# For output-row parity r, kernel rows kh of the 3x3 conv collapse (under nearest 2x height
# duplication) onto source-row offsets da = r + ti - 1, grouped as:
_GROUPS = {0: ((0,), (1, 2)), 1: ((0, 1), (2,))}


def _fold_weights(weight):
    """OIHW (Co, Ci, 3, 3) f32 -> folded (2, 2, 3, Co, Ci) f32.

    folded[r, ti, kw] = sum_{kh in _GROUPS[r][ti]} weight[:, :, kh, kw]; it multiplies the
    width-upsampled input shifted by (da = r + ti - 1) source rows and (kw - 1) columns.
    """
    out = []
    for r in range(2):
        tis = []
        for ti in range(2):
            kws = []
            for kwi in range(3):
                acc = jnp.zeros_like(weight[:, :, 0, 0])          # (Co, Ci)
                for kh in _GROUPS[r][ti]:
                    acc = acc + weight[:, :, kh, kwi]
                kws.append(acc)
            tis.append(jnp.stack(kws))                            # (3, Co, Ci)
        out.append(jnp.stack(tis))                                # (2, 3, Co, Ci)
    return jnp.stack(out)                                         # (2, 2, 3, Co, Ci)


def _upsample_conv_kernel(x_ref, w_ref, b_ref, o_ref, *, H, W, use_mxu):
    """x_ref: (1, C, L) bf16 width-upsampled input, L = H * 2W (lane-dense flat).
    w_ref: (2, 2, 3, Ct, C) f32 folded weights.  b_ref: (Ct, 1) f32.
    o_ref: (1, Ct, H, 2, 2W) bf16 -- row-major order == NCHW of the 2x output."""
    C = x_ref.shape[1]
    Ct = o_ref.shape[1]
    W2 = 2 * W
    L = H * W2
    # 128-aligned zero pad, wide enough (>= W2 + 1) that every tap slice stays in bounds and
    # the +-1 source-row shifts read zeros at the top / bottom image borders.
    PAD = -(-(W2 + 1) // 128) * 128

    xw = x_ref[0]                                                 # (C, L) bf16
    zpad = jnp.zeros((C, PAD), xw.dtype)
    xpad = jnp.concatenate([zpad, xw, zpad], axis=1)              # (C, L + 2*PAD)

    # Hoisted column-validity masks: +-1 column shifts of the flattened image wrap rows.
    col = jax.lax.broadcasted_iota(jnp.int32, (1, L), 1) % W2
    col_ok = {-1: col >= 1, 0: None, 1: col <= W2 - 2}

    bias = b_ref[...]                                             # (Ct, 1) f32

    def tap(da, dq):
        # tap[c, a*2W + q] = xw[c, a + da, q + dq] (zero outside the image), built as one
        # static lane slice of the padded copy + (for dq != 0) a column mask.  Built on the
        # fly and consumed immediately -> no 9 live tap arrays, no tap concatenation.
        off = PAD + da * W2 + dq
        t = xpad[:, off:off + L]                                  # (C, L)
        m = col_ok[dq]
        if m is not None:
            t = jnp.where(m, t, jnp.zeros_like(t))
        return t

    for r in range(2):                                            # output-row parity
        acc = jnp.zeros((Ct, L), jnp.float32)
        for ti in range(2):
            da = r + ti - 1
            for kwi in range(3):
                t = tap(da, kwi - 1)
                w_rs = w_ref[r, ti, kwi]                          # (Ct, C) f32
                if use_mxu:
                    acc = acc + jnp.dot(w_rs.astype(t.dtype), t,
                                        preferred_element_type=jnp.float32)
                else:
                    # Tiny-C path (review, v5e): K=C<=8 matmuls are MXU-latency bound; do the
                    # contraction on the VPU as C broadcast FMAs (f32 accumulation).
                    for ci in range(C):
                        acc = acc + w_rs[:, ci:ci + 1] * t[ci:ci + 1, :]
        y = (acc + bias).astype(o_ref.dtype)                      # (Ct, L) bf16
        # Store per source row: the output block's (a, r) layout matches NCHW of the 2x image,
        # and per-row static lane slices avoid any lane->sublane reshape inside the kernel.
        for a in range(H):
            o_ref[0, :, a, r, :] = y[:, a * W2:(a + 1) * W2]


def upsample_with_conv(x_nchw, weight, bias, *, co_tile=None,
                       compute_dtype=jnp.bfloat16):
    """Equivalent of Upsample(in_channels, with_conv=True).forward on NCHW input.

    Returns bf16 (reduced output precision vs the f32 PyTorch module; accumulation and bias
    add are f32).  Cast the result if f32 output is required downstream.
    """
    N, C, H, W = x_nchw.shape
    W2 = 2 * W
    L = H * W2

    # Cheap fused producer: f32 -> bf16 cast + nearest width-upsample.  The height upsample is
    # folded into the kernel's two row parities, so the 2x image is never materialized.
    xw = jnp.repeat(x_nchw.astype(compute_dtype), 2, axis=3).reshape(N, C, L)

    w_fold = _fold_weights(weight.astype(jnp.float32))            # (2, 2, 3, C, C) f32
    b_in = bias.reshape(C, 1).astype(jnp.float32)

    if co_tile is None:
        co_tile = C if (C <= 256 or C % 256 != 0) else 256
    assert C % co_tile == 0, "co_tile must divide C"
    n_co = C // co_tile

    use_mxu = C > 8

    # Scoped VMEM limit: physical capacity minus headroom (never hardcode 64 MiB -- that is the
    # whole per-TC VMEM on v7x).
    try:
        vmem_limit = int(pltpu.get_tpu_info().vmem_capacity_bytes) - 16 * 1024 * 1024
        if vmem_limit <= 0:
            vmem_limit = None
    except Exception:
        vmem_limit = None

    kernel = functools.partial(_upsample_conv_kernel, H=H, W=W, use_mxu=use_mxu)

    out = pl.pallas_call(
        kernel,
        out_shape=jax.ShapeDtypeStruct((N, C, H, 2, W2), compute_dtype),
        grid_spec=pltpu.PrefetchScalarGridSpec(
            num_scalar_prefetch=0,
            grid=(N, n_co),
            in_specs=[
                # x block index is constant across the Cout axis -> not re-fetched per j.
                pl.BlockSpec((1, C, L), lambda n, j: (n, 0, 0)),
                pl.BlockSpec((2, 2, 3, co_tile, C), lambda n, j: (0, 0, 0, j, 0)),
                pl.BlockSpec((co_tile, 1), lambda n, j: (j, 0)),
            ],
            out_specs=pl.BlockSpec((1, co_tile, H, 2, W2),
                                   lambda n, j: (n, j, 0, 0, 0)),
        ),
        compiler_params=pltpu.CompilerParams(
            dimension_semantics=("parallel", "parallel"),
            vmem_limit_bytes=vmem_limit,
        ),
    )(xw, w_fold, b_in)

    # (N, C, H, 2, 2W) -> (N, C, 2H, 2W) is a pure reshape: no transpose, no extra HBM pass.
    return out.reshape(N, C, 2 * H, 2 * W)


def _reference(x_nchw, weight, bias):
    up = jnp.repeat(jnp.repeat(x_nchw, 2, axis=2), 2, axis=3)     # nearest, scale_factor=2
    y = jax.lax.conv_general_dilated(
        up, weight, window_strides=(1, 1), padding=((1, 1), (1, 1)),
        dimension_numbers=("NCHW", "OIHW", "NCHW"),
        precision=jax.lax.Precision.HIGHEST)
    return y + bias[None, :, None, None]


if __name__ == "__main__":
    def run_case(key, N, C, H, W, co_tile=None):
        kx, kw, kb = jax.random.split(key, 3)
        fan_in = C * 3 * 3
        bound = 1.0 / (fan_in ** 0.5)                              # PyTorch Conv2d-like init
        weight = jax.random.uniform(kw, (C, C, 3, 3), jnp.float32, -bound, bound)  # OIHW
        bias = jax.random.uniform(kb, (C,), jnp.float32, -bound, bound)
        x = jax.random.normal(kx, (N, C, H, W), jnp.float32)

        fwd = jax.jit(functools.partial(upsample_with_conv, co_tile=co_tile))
        y = jax.block_until_ready(fwd(x, weight, bias))

        assert y.shape == (N, C, 2 * H, 2 * W), y.shape
        y_ref = _reference(x, weight, bias)
        err = float(jnp.max(jnp.abs(y.astype(jnp.float32) - y_ref)))
        # bf16 inputs / weights / output with f32 accumulation; tolerance reflects that.
        assert err < 5e-2, f"case N={N} C={C} H={H} W={W}: max abs err = {err}"

    key = jax.random.PRNGKey(0)
    k1, k2 = jax.random.split(key)
    run_case(k1, 2, 4, 16, 16)                 # small-C VPU path, single Cout tile
    run_case(k2, 2, 32, 8, 8, co_tile=16)      # MXU path + Cout-tiled second grid axis

    print("KERNEL_OK")
</pallas_src>

<mosaic_0001>
module attributes {stable_mosaic.version = 11 : i64} {
  func.func @_upsample_conv_kernel(%arg0: i32, %arg1: i32, %arg2: memref<1x4x512xbf16, #tpu.memory_space<vmem>>, %arg3: memref<2x2x3x4x4xf32, #tpu.memory_space<vmem>>, %arg4: memref<4x1xf32, #tpu.memory_space<vmem>>, %arg5: memref<1x4x16x2x32xbf16, #tpu.memory_space<vmem>>) attributes {dimension_semantics = [#tpu.dimension_semantics<parallel>, #tpu.dimension_semantics<parallel>], iteration_bounds = array<i64: 2, 1>, scalar_prefetch = 0 : i64, scratch_operands = 0 : i64, tpu.core_type = #tpu.core_type<tc>, window_params = [{transform_indices = @transform_0, window_bounds = array<i64: 1, 4, 512>}, {transform_indices = @transform_1, window_bounds = array<i64: 2, 2, 3, 4, 4>}, {transform_indices = @transform_2, window_bounds = array<i64: 4, 1>}, {transform_indices = @transform_3, window_bounds = array<i64: 1, 4, 16, 2, 32>}]} {
    %c0 = arith.constant 0 : index
    %c0_0 = arith.constant 0 : index
    %c0_1 = arith.constant 0 : index
    %0 = vector.load %arg2[%c0, %c0_0, %c0_1] : memref<1x4x512xbf16, #tpu.memory_space<vmem>>, vector<1x4x512xbf16>
    %1 = vector.shape_cast %0 : vector<1x4x512xbf16> to vector<4x512xbf16>
    %cst = arith.constant 0.000000e+00 : bf16
    %2 = vector.broadcast %cst : bf16 to vector<4x128xbf16>
    %3 = tpu.concatenate %2, %1, %2 in 1 : vector<4x128xbf16>, vector<4x512xbf16>, vector<4x128xbf16> -> vector<4x768xbf16>
    %4 = tpu.iota {dimensions = array<i32: 1>} : vector<1x512xi32>
    %c32_i32 = arith.constant 32 : i32
    %c0_i32 = arith.constant 0 : i32
    %5 = arith.cmpi eq, %c32_i32, %c0_i32 : i32
    %c1_i32 = arith.constant 1 : i32
    %6 = arith.select %5, %c1_i32, %c32_i32 : i32
    %7 = vector.broadcast %6 : i32 to vector<1x512xi32>
    %8 = arith.remsi %4, %7 : vector<1x512xi32>
    %c0_i32_2 = arith.constant 0 : i32
    %9 = vector.broadcast %c0_i32_2 : i32 to vector<1x512xi32>
    %10 = arith.cmpi ne, %8, %9 : vector<1x512xi32>
    %c0_i32_3 = arith.constant 0 : i32
    %11 = vector.broadcast %c0_i32_3 : i32 to vector<1x512xi32>
    %12 = arith.cmpi slt, %8, %11 : vector<1x512xi32>
    %c0_i32_4 = arith.constant 0 : i32
    %13 = arith.cmpi slt, %6, %c0_i32_4 : i32
    %14 = vector.broadcast %13 : i1 to vector<1x512xi1>
    %15 = vector.broadcast %14 : vector<1x512xi1> to vector<1x512xi1>
    %16 = arith.xori %12, %15 : vector<1x512xi1>
    %17 = arith.andi %16, %10 : vector<1x512xi1>
    %18 = vector.broadcast %6 : i32 to vector<1x512xi32>
    %19 = arith.addi %8, %18 : vector<1x512xi32>
    %20 = arith.select %17, %19, %8 : vector<1x512xi1>, vector<1x512xi32>
    %c1_i32_5 = arith.constant 1 : i32
    %21 = vector.broadcast %c1_i32_5 : i32 to vector<1x512xi32>
    %22 = arith.cmpi sge, %20, %21 : vector<1x512xi32>
    %c30_i32 = arith.constant 30 : i32
    %23 = vector.broadcast %c30_i32 : i32 to vector<1x512xi32>
    %24 = arith.cmpi sle, %20, %23 : vector<1x512xi32>
    %c0_6 = arith.constant 0 : index
    %c0_7 = arith.constant 0 : index
    %25 = vector.load %arg4[%c0_6, %c0_7] : memref<4x1xf32, #tpu.memory_space<vmem>>, vector<4x1xf32>
    %cst_8 = arith.constant 0.000000e+00 : f32
    %26 = vector.broadcast %cst_8 : f32 to vector<4x512xf32>
    %27 = vector.extract_strided_slice %3 {offsets = [0, 95], sizes = [4, 512], strides = [1, 1]} : vector<4x768xbf16> to vector<4x512xbf16>
    %cst_9 = arith.constant 0.000000e+00 : bf16
    %28 = vector.broadcast %cst_9 : bf16 to vector<4x512xbf16>
    %29 = vector.shape_cast %22 : vector<1x512xi1> to vector<1x512xi1>
    %30 = vector.broadcast %29 : vector<1x512xi1> to vector<4x512xi1>
    %31 = arith.select %30, %27, %28 : vector<4x512xi1>, vector<4x512xbf16>
    %c0_10 = arith.constant 0 : index
    %c0_11 = arith.constant 0 : index
    %c0_12 = arith.constant 0 : index
    %c0_13 = arith.constant 0 : index
    %c0_14 = arith.constant 0 : index
    %32 = vector.load %arg3[%c0_10, %c0_11, %c0_12, %c0_13, %c0_14] : memref<2x2x3x4x4xf32, #tpu.memory_space<vmem>>, vector<1x1x1x4x4xf32>
    %33 = vector.shape_cast %32 : vector<1x1x1x4x4xf32> to vector<4x4xf32>
    %34 = vector.extract_strided_slice %33 {offsets = [0, 0], sizes = [4, 1], strides = [1, 1]} : vector<4x4xf32> to vector<4x1xf32>
    %35 = vector.extract_strided_slice %31 {offsets = [0, 0], sizes = [1, 512], strides = [1, 1]} : vector<4x512xbf16> to vector<1x512xbf16>
    %36 = arith.extf %35 : vector<1x512xbf16> to vector<1x512xf32>
    %37 = vector.broadcast %34 : vector<4x1xf32> to vector<4x512xf32>
    %38 = vector.broadcast %36 : vector<1x512xf32> to vector<4x512xf32>
    %39 = arith.mulf %37, %38 : vector<4x512xf32>
    %40 = arith.addf %26, %39 : vector<4x512xf32>
    %41 = vector.extract_strided_slice %33 {offsets = [0, 1], sizes = [4, 1], strides = [1, 1]} : vector<4x4xf32> to vector<4x1xf32>
    %42 = vector.extract_strided_slice %31 {offsets = [1, 0], sizes = [1, 512], strides = [1, 1]} : vector<4x512xbf16> to vector<1x512xbf16>
    %43 = arith.extf %42 : vector<1x512xbf16> to vector<1x512xf32>
    %44 = vector.broadcast %41 : vector<4x1xf32> to vector<4x512xf32>
    %45 = vector.broadcast %43 : vector<1x512xf32> to vector<4x512xf32>
    %46 = arith.mulf %44, %45 : vector<4x512xf32>
    %47 = arith.addf %40, %46 : vector<4x512xf32>
    %48 = vector.extract_strided_slice %33 {offsets = [0, 2], sizes = [4, 1], strides = [1, 1]} : vector<4x4xf32> to vector<4x1xf32>
    %49 = vector.extract_strided_slice %31 {offsets = [2, 0], sizes = [1, 512], strides = [1, 1]} : vector<4x512xbf16> to vector<1x512xbf16>
    %50 = arith.extf %49 : vector<1x512xbf16> to vector<1x512xf32>
    %51 = vector.broadcast %48 : vector<4x1xf32> to vector<4x512xf32>
    %52 = vector.broadcast %50 : vector<1x512xf32> to vector<4x512xf32>
    %53 = arith.mulf %51, %52 : vector<4x512xf32>
    %54 = arith.addf %47, %53 : vector<4x512xf32>
    %55 = vector.extract_strided_slice %33 {offsets = [0, 3], sizes = [4, 1], strides = [1, 1]} : vector<4x4xf32> to vector<4x1xf32>
    %56 = vector.extract_strided_slice %31 {offsets = [3, 0], sizes = [1, 512], strides = [1, 1]} : vector<4x512xbf16> to vector<1x512xbf16>
    %57 = arith.extf %56 : vector<1x512xbf16> to vector<1x512xf32>
    %58 = vector.broadcast %55 : vector<4x1xf32> to vector<4x512xf32>
    %59 = vector.broadcast %57 : vector<1x512xf32> to vector<4x512xf32>
    %60 = arith.mulf %58, %59 : vector<4x512xf32>
    %61 = arith.addf %54, %60 : vector<4x512xf32>
    %62 = vector.extract_strided_slice %3 {offsets = [0, 96], sizes = [4, 512], strides = [1, 1]} : vector<4x768xbf16> to vector<4x512xbf16>
    %c0_15 = arith.constant 0 : index
    %c0_16 = arith.constant 0 : index
    %c1 = arith.constant 1 : index
    %c0_17 = arith.constant 0 : index
    %c0_18 = arith.constant 0 : index
    %63 = vector.load %arg3[%c0_15, %c0_16, %c1, %c0_17, %c0_18] : memref<2x2x3x4x4xf32, #tpu.memory_space<vmem>>, vector<1x1x1x4x4xf32>
    %64 = vector.shape_cast %63 : vector<1x1x1x4x4xf32> to vector<4x4xf32>
    %65 = vector.extract_strided_slice %64 {offsets = [0, 0], sizes = [4, 1], strides = [1, 1]} : vector<4x4xf32> to vector<4x1xf32>
    %66 = vector.extract_strided_slice %62 {offsets = [0, 0], sizes = [1, 512], strides = [1, 1]} : vector<4x512xbf16> to vector<1x512xbf16>
    %67 = arith.extf %66 : vector<1x512xbf16> to vector<1x512xf32>
    %68 = vector.broadcast %65 : vector<4x1xf32> to vector<4x512xf32>
    %69 = vector.broadcast %67 : vector<1x512xf32> to vector<4x512xf32>
    %70 = arith.mulf %68, %69 : vector<4x512xf32>
    %71 = arith.addf %61, %70 : vector<4x512xf32>
    %72 = vector.extract_strided_slice %64 {offsets = [0, 1], sizes = [4, 1], strides = [1, 1]} : vector<4x4xf32> to vector<4x1xf32>
    %73 = vector.extract_strided_slice %62 {offsets = [1, 0], sizes = [1, 512], strides = [1, 1]} : vector<4x512xbf16> to vector<1x512xbf16>
    %74 = arith.extf %73 : vector<1x512xbf16> to vector<1x512xf32>
    %75 = vector.broadcast %72 : vector<4x1xf32> to vector<4x512xf32>
    %76 = vector.broadcast %74 : vector<1x512xf32> to vector<4x512xf32>
    %77 = arith.mulf %75, %76 : vector<4x512xf32>
    %78 = arith.addf %71, %77 : vector<4x512xf32>
    %79 = vector.extract_strided_slice %64 {offsets = [0, 2], sizes = [4, 1], strides = [1, 1]} : vector<4x4xf32> to vector<4x1xf32>
    %80 = vector.extract_strided_slice %62 {offsets = [2, 0], sizes = [1, 512], strides = [1, 1]} : vector<4x512xbf16> to vector<1x512xbf16>
    %81 = arith.extf %80 : vector<1x512xbf16> to vector<1x512xf32>
    %82 = vector.broadcast %79 : vector<4x1xf32> to vector<4x512xf32>
    %83 = vector.broadcast %81 : vector<1x512xf32> to vector<4x512xf32>
    %84 = arith.mulf %82, %83 : vector<4x512xf32>
    %85 = arith.addf %78, %84 : vector<4x512xf32>
    %86 = vector.extract_strided_slice %64 {offsets = [0, 3], sizes = [4, 1], strides = [1, 1]} : vector<4x4xf32> to vector<4x1xf32>
    %87 = vector.extract_strided_slice %62 {offsets = [3, 0], sizes = [1, 512], strides = [1, 1]} : vector<4x512xbf16> to vector<1x512xbf16>
    %88 = arith.extf %87 : vector<1x512xbf16> to vector<1x512xf32>
    %89 = vector.broadcast %86 : vector<4x1xf32> to vector<4x512xf32>
    %90 = vector.broadcast %88 : vector<1x512xf32> to vector<4x512xf32>
    %91 = arith.mulf %89, %90 : vector<4x512xf32>
    %92 = arith.addf %85, %91 : vector<4x512xf32>
    %93 = vector.extract_strided_slice %3 {offsets = [0, 97], sizes = [4, 512], strides = [1, 1]} : vector<4x768xbf16> to vector<4x512xbf16>
    %cst_19 = arith.constant 0.000000e+00 : bf16
    %94 = vector.broadcast %cst_19 : bf16 to vector<4x512xbf16>
    %95 = vector.shape_cast %24 : vector<1x512xi1> to vector<1x512xi1>
    %96 = vector.broadcast %95 : vector<1x512xi1> to vector<4x512xi1>
    %97 = arith.select %96, %93, %94 : vector<4x512xi1>, vector<4x512xbf16>
    %c0_20 = arith.constant 0 : index
    %c0_21 = arith.constant 0 : index
    %c2 = arith.constant 2 : index
    %c0_22 = arith.constant 0 : index
    %c0_23 = arith.constant 0 : index
    %98 = vector.load %arg3[%c0_20, %c0_21, %c2, %c0_22, %c0_23] : memref<2x2x3x4x4xf32, #tpu.memory_space<vmem>>, vector<1x1x1x4x4xf32>
    %99 = vector.shape_cast %98 : vector<1x1x1x4x4xf32> to vector<4x4xf32>
    %100 = vector.extract_strided_slice %99 {offsets = [0, 0], sizes = [4, 1], strides = [1, 1]} : vector<4x4xf32> to vector<4x1xf32>
    %101 = vector.extract_strided_slice %97 {offsets = [0, 0], sizes = [1, 512], strides = [1, 1]} : vector<4x512xbf16> to vector<1x512xbf16>
    %102 = arith.extf %101 : vector<1x512xbf16> to vector<1x512xf32>
    %103 = vector.broadcast %100 : vector<4x1xf32> to vector<4x512xf32>
    %104 = vector.broadcast %102 : vector<1x512xf32> to vector<4x512xf32>
    %105 = arith.mulf %103, %104 : vector<4x512xf32>
    %106 = arith.addf %92, %105 : vector<4x512xf32>
    %107 = vector.extract_strided_slice %99 {offsets = [0, 1], sizes = [4, 1], strides = [1, 1]} : vector<4x4xf32> to vector<4x1xf32>
    %108 = vector.extract_strided_slice %97 {offsets = [1, 0], sizes = [1, 512], strides = [1, 1]} : vector<4x512xbf16> to vector<1x512xbf16>
    %109 = arith.extf %108 : vector<1x512xbf16> to vector<1x512xf32>
    %110 = vector.broadcast %107 : vector<4x1xf32> to vector<4x512xf32>
    %111 = vector.broadcast %109 : vector<1x512xf32> to vector<4x512xf32>
    %112 = arith.mulf %110, %111 : vector<4x512xf32>
    %113 = arith.addf %106, %112 : vector<4x512xf32>
    %114 = vector.extract_strided_slice %99 {offsets = [0, 2], sizes = [4, 1], strides = [1, 1]} : vector<4x4xf32> to vector<4x1xf32>
    %115 = vector.extract_strided_slice %97 {offsets = [2, 0], sizes = [1, 512], strides = [1, 1]} : vector<4x512xbf16> to vector<1x512xbf16>
    %116 = arith.extf %115 : vector<1x512xbf16> to vector<1x512xf32>
    %117 = vector.broadcast %114 : vector<4x1xf32> to vector<4x512xf32>
    %118 = vector.broadcast %116 : vector<1x512xf32> to vector<4x512xf32>
    %119 = arith.mulf %117, %118 : vector<4x512xf32>
    %120 = arith.addf %113, %119 : vector<4x512xf32>
    %121 = vector.extract_strided_slice %99 {offsets = [0, 3], sizes = [4, 1], strides = [1, 1]} : vector<4x4xf32> to vector<4x1xf32>
    %122 = vector.extract_strided_slice %97 {offsets = [3, 0], sizes = [1, 512], strides = [1, 1]} : vector<4x512xbf16> to vector<1x512xbf16>
    %123 = arith.extf %122 : vector<1x512xbf16> to vector<1x512xf32>
    %124 = vector.broadcast %121 : vector<4x1xf32> to vector<4x512xf32>
    %125 = vector.broadcast %123 : vector<1x512xf32> to vector<4x512xf32>
    %126 = arith.mulf %124, %125 : vector<4x512xf32>
    %127 = arith.addf %120, %126 : vector<4x512xf32>
    %128 = vector.extract_strided_slice %3 {offsets = [0, 127], sizes = [4, 512], strides = [1, 1]} : vector<4x768xbf16> to vector<4x512xbf16>
    %cst_24 = arith.constant 0.000000e+00 : bf16
    %129 = vector.broadcast %cst_24 : bf16 to vector<4x512xbf16>
    %130 = vector.shape_cast %22 : vector<1x512xi1> to vector<1x512xi1>
    %131 = vector.broadcast %130 : vector<1x512xi1> to vector<4x512xi1>
    %132 = arith.select %131, %128, %129 : vector<4x512xi1>, vector<4x512xbf16>
    %c0_25 = arith.constant 0 : index
    %c1_26 = arith.constant 1 : index
    %c0_27 = arith.constant 0 : index
    %c0_28 = arith.constant 0 : index
    %c0_29 = arith.constant 0 : index
    %133 = vector.load %arg3[%c0_25, %c1_26, %c0_27, %c0_28, %c0_29] : memref<2x2x3x4x4xf32, #tpu.memory_space<vmem>>, vector<1x1x1x4x4xf32>
    %134 = vector.shape_cast %133 : vector<1x1x1x4x4xf32> to vector<4x4xf32>
    %135 = vector.extract_strided_slice %134 {offsets = [0, 0], sizes = [4, 1], strides = [1, 1]} : vector<4x4xf32> to vector<4x1xf32>
    %136 = vector.extract_strided_slice %132 {offsets = [0, 0], sizes = [1, 512], strides = [1, 1]} : vector<4x512xbf16> to vector<1x512xbf16>
    %137 = arith.extf %136 : vector<1x512xbf16> to vector<1x512xf32>
    %138 = vector.broadcast %135 : vector<4x1xf32> to vector<4x512xf32>
    %139 = vector.broadcast %137 : vector<1x512xf32> to vector<4x512xf32>
    %140 = arith.mulf %138, %139 : vector<4x512xf32>
    %141 = arith.addf %127, %140 : vector<4x512xf32>
    %142 = vector.extract_strided_slice %134 {offsets = [0, 1], sizes = [4, 1], strides = [1, 1]} : vector<4x4xf32> to vector<4x1xf32>
    %143 = vector.extract_strided_slice %132 {offsets = [1, 0], sizes = [1, 512], strides = [1, 1]} : vector<4x512xbf16> to vector<1x512xbf16>
    %144 = arith.extf %143 : vector<1x512xbf16> to vector<1x512xf32>
    %145 = vector.broadcast %142 : vector<4x1xf32> to vector<4x512xf32>
    %146 = vector.broadcast %144 : vector<1x512xf32> to vector<4x512xf32>
    %147 = arith.mulf %145, %146 : vector<4x512xf32>
    %148 = arith.addf %141, %147 : vector<4x512xf32>
    %149 = vector.extract_strided_slice %134 {offsets = [0, 2], sizes = [4, 1], strides = [1, 1]} : vector<4x4xf32> to vector<4x1xf32>
    %150 = vector.extract_strided_slice %132 {offsets = [2, 0], sizes = [1, 512], strides = [1, 1]} : vector<4x512xbf16> to vector<1x512xbf16>
    %151 = arith.extf %150 : vector<1x512xbf16> to vector<1x512xf32>
    %152 = vector.broadcast %149 : vector<4x1xf32> to vector<4x512xf32>
    %153 = vector.broadcast %151 : vector<1x512xf32> to vector<4x512xf32>
    %154 = arith.mulf %152, %153 : vector<4x512xf32>
    %155 = arith.addf %148, %154 : vector<4x512xf32>
    %156 = vector.extract_strided_slice %134 {offsets = [0, 3], sizes = [4, 1], strides = [1, 1]} : vector<4x4xf32> to vector<4x1xf32>
    %157 = vector.extract_strided_slice %132 {offsets = [3, 0], sizes = [1, 512], strides = [1, 1]} : vector<4x512xbf16> to vector<1x512xbf16>
    %158 = arith.extf %157 : vector<1x512xbf16> to vector<1x512xf32>
    %159 = vector.broadcast %156 : vector<4x1xf32> to vector<4x512xf32>
    %160 = vector.broadcast %158 : vector<1x512xf32> to vector<4x512xf32>
    %161 = arith.mulf %159, %160 : vector<4x512xf32>
    %162 = arith.addf %155, %161 : vector<4x512xf32>
    %163 = vector.extract_strided_slice %3 {offsets = [0, 128], sizes = [4, 512], strides = [1, 1]} : vector<4x768xbf16> to vector<4x512xbf16>
    %c0_30 = arith.constant 0 : index
    %c1_31 = arith.constant 1 : index
    %c1_32 = arith.constant 1 : index
    %c0_33 = arith.constant 0 : index
    %c0_34 = arith.constant 0 : index
    %164 = vector.load %arg3[%c0_30, %c1_31, %c1_32, %c0_33, %c0_34] : memref<2x2x3x4x4xf32, #tpu.memory_space<vmem>>, vector<1x1x1x4x4xf32>
    %165 = vector.shape_cast %164 : vector<1x1x1x4x4xf32> to vector<4x4xf32>
    %166 = vector.extract_strided_slice %165 {offsets = [0, 0], sizes = [4, 1], strides = [1, 1]} : vector<4x4xf32> to vector<4x1xf32>
    %167 = vector.extract_strided_slice %163 {offsets = [0, 0], sizes = [1, 512], strides = [1, 1]} : vector<4x512xbf16> to vector<1x512xbf16>
    %168 = arith.extf %167 : vector<1x512xbf16> to vector<1x512xf32>
    %169 = vector.broadcast %166 : vector<4x1xf32> to vector<4x512xf32>
    %170 = vector.broadcast %168 : vector<1x512xf32> to vector<4x512xf32>
    %171 = arith.mulf %169, %170 : vector<4x512xf32>
    %172 = arith.addf %162, %171 : vector<4x512xf32>
    %173 = vector.extract_strided_slice %165 {offsets = [0, 1], sizes = [4, 1], strides = [1, 1]} : vector<4x4xf32> to vector<4x1xf32>
    %174 = vector.extract_strided_slice %163 {offsets = [1, 0], sizes = [1, 512], strides = [1, 1]} : vector<4x512xbf16> to vector<1x512xbf16>
    %175 = arith.extf %174 : vector<1x512xbf16> to vector<1x512xf32>
    %176 = vector.broadcast %173 : vector<4x1xf32> to vector<4x512xf32>
    %177 = vector.broadcast %175 : vector<1x512xf32> to vector<4x512xf32>
    %178 = arith.mulf %176, %177 : vector<4x512xf32>
    %179 = arith.addf %172, %178 : vector<4x512xf32>
    %180 = vector.extract_strided_slice %165 {offsets = [0, 2], sizes = [4, 1], strides = [1, 1]} : vector<4x4xf32> to vector<4x1xf32>
    %181 = vector.extract_strided_slice %163 {offsets = [2, 0], sizes = [1, 512], strides = [1, 1]} : vector<4x512xbf16> to vector<1x512xbf16>
    %182 = arith.extf %181 : vector<1x512xbf16> to vector<1x512xf32>
    %183 = vector.broadcast %180 : vector<4x1xf32> to vector<4x512xf32>
    %184 = vector.broadcast %182 : vector<1x512xf32> to vector<4x512xf32>
    %185 = arith.mulf %183, %184 : vector<4x512xf32>
    %186 = arith.addf %179, %185 : vector<4x512xf32>
    %187 = vector.extract_strided_slice %165 {offsets = [0, 3], sizes = [4, 1], strides = [1, 1]} : vector<4x4xf32> to vector<4x1xf32>
    %188 = vector.extract_strided_slice %163 {offsets = [3, 0], sizes = [1, 512], strides = [1, 1]} : vector<4x512xbf16> to vector<1x512xbf16>
    %189 = arith.extf %188 : vector<1x512xbf16> to vector<1x512xf32>
    %190 = vector.broadcast %187 : vector<4x1xf32> to vector<4x512xf32>
    %191 = vector.broadcast %189 : vector<1x512xf32> to vector<4x512xf32>
    %192 = arith.mulf %190, %191 : vector<4x512xf32>
    %193 = arith.addf %186, %192 : vector<4x512xf32>
    %194 = vector.extract_strided_slice %3 {offsets = [0, 129], sizes = [4, 512], strides = [1, 1]} : vector<4x768xbf16> to vector<4x512xbf16>
    %cst_35 = arith.constant 0.000000e+00 : bf16
    %195 = vector.broadcast %cst_35 : bf16 to vector<4x512xbf16>
    %196 = vector.shape_cast %24 : vector<1x512xi1> to vector<1x512xi1>
    %197 = vector.broadcast %196 : vector<1x512xi1> to vector<4x512xi1>
    %198 = arith.select %197, %194, %195 : vector<4x512xi1>, vector<4x512xbf16>
    %c0_36 = arith.constant 0 : index
    %c1_37 = arith.constant 1 : index
    %c2_38 = arith.constant 2 : index
    %c0_39 = arith.constant 0 : index
    %c0_40 = arith.constant 0 : index
    %199 = vector.load %arg3[%c0_36, %c1_37, %c2_38, %c0_39, %c0_40] : memref<2x2x3x4x4xf32, #tpu.memory_space<vmem>>, vector<1x1x1x4x4xf32>
    %200 = vector.shape_cast %199 : vector<1x1x1x4x4xf32> to vector<4x4xf32>
    %201 = vector.extract_strided_slice %200 {offsets = [0, 0], sizes = [4, 1], strides = [1, 1]} : vector<4x4xf32> to vector<4x1xf32>
    %202 = vector.extract_strided_slice %198 {offsets = [0, 0], sizes = [1, 512], strides = [1, 1]} : vector<4x512xbf16> to vector<1x512xbf16>
    %203 = arith.extf %202 : vector<1x512xbf16> to vector<1x512xf32>
    %204 = vector.broadcast %201 : vector<4x1xf32> to vector<4x512xf32>
    %205 = vector.broadcast %203 : vector<1x512xf32> to vector<4x512xf32>
    %206 = arith.mulf %204, %205 : vector<4x512xf32>
    %207 = arith.addf %193, %206 : vector<4x512xf32>
    %208 = vector.extract_strided_slice %200 {offsets = [0, 1], sizes = [4, 1], strides = [1, 1]} : vector<4x4xf32> to vector<4x1xf32>
    %209 = vector.extract_strided_slice %198 {offsets = [1, 0], sizes = [1, 512], strides = [1, 1]} : vector<4x512xbf16> to vector<1x512xbf16>
    %210 = arith.extf %209 : vector<1x512xbf16> to vector<1x512xf32>
    %211 = vector.broadcast %208 : vector<4x1xf32> to vector<4x512xf32>
    %212 = vector.broadcast %210 : vector<1x512xf32> to vector<4x512xf32>
    %213 = arith.mulf %211, %212 : vector<4x512xf32>
    %214 = arith.addf %207, %213 : vector<4x512xf32>
    %215 = vector.extract_strided_slice %200 {offsets = [0, 2], sizes = [4, 1], strides = [1, 1]} : vector<4x4xf32> to vector<4x1xf32>
    %216 = vector.extract_strided_slice %198 {offsets = [2, 0], sizes = [1, 512], strides = [1, 1]} : vector<4x512xbf16> to vector<1x512xbf16>
    %217 = arith.extf %216 : vector<1x512xbf16> to vector<1x512xf32>
    %218 = vector.broadcast %215 : vector<4x1xf32> to vector<4x512xf32>
    %219 = vector.broadcast %217 : vector<1x512xf32> to vector<4x512xf32>
    %220 = arith.mulf %218, %219 : vector<4x512xf32>
    %221 = arith.addf %214, %220 : vector<4x512xf32>
    %222 = vector.extract_strided_slice %200 {offsets = [0, 3], sizes = [4, 1], strides = [1, 1]} : vector<4x4xf32> to vector<4x1xf32>
    %223 = vector.extract_strided_slice %198 {offsets = [3, 0], sizes = [1, 512], strides = [1, 1]} : vector<4x512xbf16> to vector<1x512xbf16>
    %224 = arith.extf %223 : vector<1x512xbf16> to vector<1x512xf32>
    %225 = vector.broadcast %222 : vector<4x1xf32> to vector<4x512xf32>
    %226 = vector.broadcast %224 : vector<1x512xf32> to vector<4x512xf32>
    %227 = arith.mulf %225, %226 : vector<4x512xf32>
    %228 = arith.addf %221, %227 : vector<4x512xf32>
    %229 = vector.broadcast %25 : vector<4x1xf32> to vector<4x512xf32>
    %230 = arith.addf %228, %229 : vector<4x512xf32>
    %231 = arith.truncf %230 : vector<4x512xf32> to vector<4x512xbf16>
    %232 = vector.extract_strided_slice %231 {offsets = [0, 0], sizes = [4, 32], strides = [1, 1]} : vector<4x512xbf16> to vector<4x32xbf16>
    %c0_41 = arith.constant 0 : index
    %c0_42 = arith.constant 0 : index
    %c0_43 = arith.constant 0 : index
    %c0_44 = arith.constant 0 : index
    %c0_45 = arith.constant 0 : index
    %233 = vector.load %arg5[%c0_41, %c0_42, %c0_43, %c0_44, %c0_45] : memref<1x4x16x2x32xbf16, #tpu.memory_space<vmem>>, vector<1x4x1x1x32xbf16>
    %234 = vector.shape_cast %233 : vector<1x4x1x1x32xbf16> to vector<4x32xbf16>
    %235 = vector.shape_cast %232 : vector<4x32xbf16> to vector<1x4x1x1x32xbf16>
    tpu.vector_store %arg5[%c0_41, %c0_42, %c0_43, %c0_44, %c0_45], %235 {strides = array<i32>} : memref<1x4x16x2x32xbf16, #tpu.memory_space<vmem>>, vector<1x4x1x1x32xbf16>,
    %236 = vector.extract_strided_slice %231 {offsets = [0, 32], sizes = [4, 32], strides = [1, 1]} : vector<4x512xbf16> to vector<4x32xbf16>
    %c0_46 = arith.constant 0 : index
    %c0_47 = arith.constant 0 : index
    %c1_48 = arith.constant 1 : index
    %c0_49 = arith.constant 0 : index
    %c0_50 = arith.constant 0 : index
    %237 = vector.load %arg5[%c0_46, %c0_47, %c1_48, %c0_49, %c0_50] : memref<1x4x16x2x32xbf16, #tpu.memory_space<vmem>>, vector<1x4x1x1x32xbf16>
    %238 = vector.shape_cast %237 : vector<1x4x1x1x32xbf16> to vector<4x32xbf16>
    %239 = vector.shape_cast %236 : vector<4x32xbf16> to vector<1x4x1x1x32xbf16>
    tpu.vector_store %arg5[%c0_46, %c0_47, %c1_48, %c0_49, %c0_50], %239 {strides = array<i32>} : memref<1x4x16x2x32xbf16, #tpu.memory_space<vmem>>, vector<1x4x1x1x32xbf16>,
    %240 = vector.extract_strided_slice %231 {offsets = [0, 64], sizes = [4, 32], strides = [1, 1]} : vector<4x512xbf16> to vector<4x32xbf16>
    %c0_51 = arith.constant 0 : index
    %c0_52 = arith.constant 0 : index
    %c2_53 = arith.constant 2 : index
    %c0_54 = arith.constant 0 : index
    %c0_55 = arith.constant 0 : index
    %241 = vector.load %arg5[%c0_51, %c0_52, %c2_53, %c0_54, %c0_55] : memref<1x4x16x2x32xbf16, #tpu.memory_space<vmem>>, vector<1x4x1x1x32xbf16>
    %242 = vector.shape_cast %241 : vector<1x4x1x1x32xbf16> to vector<4x32xbf16>
    %243 = vector.shape_cast %240 : vector<4x32xbf16> to vector<1x4x1x1x32xbf16>
    tpu.vector_store %arg5[%c0_51, %c0_52, %c2_53, %c0_54, %c0_55], %243 {strides = array<i32>} : memref<1x4x16x2x32xbf16, #tpu.memory_space<vmem>>, vector<1x4x1x1x32xbf16>,
    %244 = vector.extract_strided_slice %231 {offsets = [0, 96], sizes = [4, 32], strides = [1, 1]} : vector<4x512xbf16> to vector<4x32xbf16>
    %c0_56 = arith.constant 0 : index
    %c0_57 = arith.constant 0 : index
    %c3 = arith.constant 3 : index
    %c0_58 = arith.constant 0 : index
    %c0_59 = arith.constant 0 : index
    %245 = vector.load %arg5[%c0_56, %c0_57, %c3, %c0_58, %c0_59] : memref<1x4x16x2x32xbf16, #tpu.memory_space<vmem>>, vector<1x4x1x1x32xbf16>
    %246 = vector.shape_cast %245 : vector<1x4x1x1x32xbf16> to vector<4x32xbf16>
    %247 = vector.shape_cast %244 : vector<4x32xbf16> to vector<1x4x1x1x32xbf16>
    tpu.vector_store %arg5[%c0_56, %c0_57, %c3, %c0_58, %c0_59], %247 {strides = array<i32>} : memref<1x4x16x2x32xbf16, #tpu.memory_space<vmem>>, vector<1x4x1x1x32xbf16>,
    %248 = vector.extract_strided_slice %231 {offsets = [0, 128], sizes = [4, 32], strides = [1, 1]} : vector<4x512xbf16> to vector<4x32xbf16>
    %c0_60 = arith.constant 0 : index
    %c0_61 = arith.constant 0 : index
    %c4 = arith.constant 4 : index
    %c0_62 = arith.constant 0 : index
    %c0_63 = arith.constant 0 : index
    %249 = vector.load %arg5[%c0_60, %c0_61, %c4, %c0_62, %c0_63] : memref<1x4x16x2x32xbf16, #tpu.memory_space<vmem>>, vector<1x4x1x1x32xbf16>
    %250 = vector.shape_cast %249 : vector<1x4x1x1x32xbf16> to vector<4x32xbf16>
    %251 = vector.shape_cast %248 : vector<4x32xbf16> to vector<1x4x1x1x32xbf16>
    tpu.vector_store %arg5[%c0_60, %c0_61, %c4, %c0_62, %c0_63], %251 {strides = array<i32>} : memref<1x4x16x2x32xbf16, #tpu.memory_space<vmem>>, vector<1x4x1x1x32xbf16>,
    %252 = vector.extract_strided_slice %231 {offsets = [0, 160], sizes = [4, 32], strides = [1, 1]} : vector<4x512xbf16> to vector<4x32xbf16>
    %c0_64 = arith.constant 0 : index
    %c0_65 = arith.constant 0 : index
    %c5 = arith.constant 5 : index
    %c0_66 = arith.constant 0 : index
    %c0_67 = arith.constant 0 : index
    %253 = vector.load %arg5[%c0_64, %c0_65, %c5, %c0_66, %c0_67] : memref<1x4x16x2x32xbf16, #tpu.memory_space<vmem>>, vector<1x4x1x1x32xbf16>
    %254 = vector.shape_cast %253 : vector<1x4x1x1x32xbf16> to vector<4x32xbf16>
    %255 = vector.shape_cast %252 : vector<4x32xbf16> to vector<1x4x1x1x32xbf16>
    tpu.vector_store %arg5[%c0_64, %c0_65, %c5, %c0_66, %c0_67], %255 {strides = array<i32>} : memref<1x4x16x2x32xbf16, #tpu.memory_space<vmem>>, vector<1x4x1x1x32xbf16>,
    %256 = vector.extract_strided_slice %231 {offsets = [0, 192], sizes = [4, 32], strides = [1, 1]} : vector<4x512xbf16> to vector<4x32xbf16>
    %c0_68 = arith.constant 0 : index
    %c0_69 = arith.constant 0 : index
    %c6 = arith.constant 6 : index
    %c0_70 = arith.constant 0 : index
    %c0_71 = arith.constant 0 : index
    %257 = vector.load %arg5[%c0_68, %c0_69, %c6, %c0_70, %c0_71] : memref<1x4x16x2x32xbf16, #tpu.memory_space<vmem>>, vector<1x4x1x1x32xbf16>
    %258 = vector.shape_cast %257 : vector<1x4x1x1x32xbf16> to vector<4x32xbf16>
    %259 = vector.shape_cast %256 : vector<4x32xbf16> to vector<1x4x1x1x32xbf16>
    tpu.vector_store %arg5[%c0_68, %c0_69, %c6, %c0_70, %c0_71], %259 {strides = array<i32>} : memref<1x4x16x2x32xbf16, #tpu.memory_space<vmem>>, vector<1x4x1x1x32xbf16>,
    %260 = vector.extract_strided_slice %231 {offsets = [0, 224], sizes = [4, 32], strides = [1, 1]} : vector<4x512xbf16> to vector<4x32xbf16>
    %c0_72 = arith.constant 0 : index
    %c0_73 = arith.constant 0 : index
    %c7 = arith.constant 7 : index
    %c0_74 = arith.constant 0 : index
    %c0_75 = arith.constant 0 : index
    %261 = vector.load %arg5[%c0_72, %c0_73, %c7, %c0_74, %c0_75] : memref<1x4x16x2x32xbf16, #tpu.memory_space<vmem>>, vector<1x4x1x1x32xbf16>
    %262 = vector.shape_cast %261 : vector<1x4x1x1x32xbf16> to vector<4x32xbf16>
    %263 = vector.shape_cast %260 : vector<4x32xbf16> to vector<1x4x1x1x32xbf16>
    tpu.vector_store %arg5[%c0_72, %c0_73, %c7, %c0_74, %c0_75], %263 {strides = array<i32>} : memref<1x4x16x2x32xbf16, #tpu.memory_space<vmem>>, vector<1x4x1x1x32xbf16>,
    %264 = vector.extract_strided_slice %231 {offsets = [0, 256], sizes = [4, 32], strides = [1, 1]} : vector<4x512xbf16> to vector<4x32xbf16>
    %c0_76 = arith.constant 0 : index
    %c0_77 = arith.constant 0 : index
    %c8 = arith.constant 8 : index
    %c0_78 = arith.constant 0 : index
    %c0_79 = arith.constant 0 : index
    %265 = vector.load %arg5[%c0_76, %c0_77, %c8, %c0_78, %c0_79] : memref<1x4x16x2x32xbf16, #tpu.memory_space<vmem>>, vector<1x4x1x1x32xbf16>
    %266 = vector.shape_cast %265 : vector<1x4x1x1x32xbf16> to vector<4x32xbf16>
    %267 = vector.shape_cast %264 : vector<4x32xbf16> to vector<1x4x1x1x32xbf16>
    tpu.vector_store %arg5[%c0_76, %c0_77, %c8, %c0_78, %c0_79], %267 {strides = array<i32>} : memref<1x4x16x2x32xbf16, #tpu.memory_space<vmem>>, vector<1x4x1x1x32xbf16>,
    %268 = vector.extract_strided_slice %231 {offsets = [0, 288], sizes = [4, 32], strides = [1, 1]} : vector<4x512xbf16> to vector<4x32xbf16>
    %c0_80 = arith.constant 0 : index
    %c0_81 = arith.constant 0 : index
    %c9 = arith.constant 9 : index
    %c0_82 = arith.constant 0 : index
    %c0_83 = arith.constant 0 : index
    %269 = vector.load %arg5[%c0_80, %c0_81, %c9, %c0_82, %c0_83] : memref<1x4x16x2x32xbf16, #tpu.memory_space<vmem>>, vector<1x4x1x1x32xbf16>
    %270 = vector.shape_cast %269 : vector<1x4x1x1x32xbf16> to vector<4x32xbf16>
    %271 = vector.shape_cast %268 : vector<4x32xbf16> to vector<1x4x1x1x32xbf16>
    tpu.vector_store %arg5[%c0_80, %c0_81, %c9, %c0_82, %c0_83], %271 {strides = array<i32>} : memref<1x4x16x2x32xbf16, #tpu.memory_space<vmem>>, vector<1x4x1x1x32xbf16>,
    %272 = vector.extract_strided_slice %231 {offsets = [0, 320], sizes = [4, 32], strides = [1, 1]} : vector<4x512xbf16> to vector<4x32xbf16>
    %c0_84 = arith.constant 0 : index
    %c0_85 = arith.constant 0 : index
    %c10 = arith.constant 10 : index
    %c0_86 = arith.constant 0 : index
    %c0_87 = arith.constant 0 : index
    %273 = vector.load %arg5[%c0_84, %c0_85, %c10, %c0_86, %c0_87] : memref<1x4x16x2x32xbf16, #tpu.memory_space<vmem>>, vector<1x4x1x1x32xbf16>
    %274 = vector.shape_cast %273 : vector<1x4x1x1x32xbf16> to vector<4x32xbf16>
    %275 = vector.shape_cast %272 : vector<4x32xbf16> to vector<1x4x1x1x32xbf16>
    tpu.vector_store %arg5[%c0_84, %c0_85, %c10, %c0_86, %c0_87], %275 {strides = array<i32>} : memref<1x4x16x2x32xbf16, #tpu.memory_space<vmem>>, vector<1x4x1x1x32xbf16>,
    %276 = vector.extract_strided_slice %231 {offsets = [0, 352], sizes = [4, 32], strides = [1, 1]} : vector<4x512xbf16> to vector<4x32xbf16>
    %c0_88 = arith.constant 0 : index
    %c0_89 = arith.constant 0 : index
    %c11 = arith.constant 11 : index
    %c0_90 = arith.constant 0 : index
    %c0_91 = arith.constant 0 : index
    %277 = vector.load %arg5[%c0_88, %c0_89, %c11, %c0_90, %c0_91] : memref<1x4x16x2x32xbf16, #tpu.memory_space<vmem>>, vector<1x4x1x1x32xbf16>
    %278 = vector.shape_cast %277 : vector<1x4x1x1x32xbf16> to vector<4x32xbf16>
    %279 = vector.shape_cast %276 : vector<4x32xbf16> to vector<1x4x1x1x32xbf16>
    tpu.vector_store %arg5[%c0_88, %c0_89, %c11, %c0_90, %c0_91], %279 {strides = array<i32>} : memref<1x4x16x2x32xbf16, #tpu.memory_space<vmem>>, vector<1x4x1x1x32xbf16>,
    %280 = vector.extract_strided_slice %231 {offsets = [0, 384], sizes = [4, 32], strides = [1, 1]} : vector<4x512xbf16> to vector<4x32xbf16>
    %c0_92 = arith.constant 0 : index
    %c0_93 = arith.constant 0 : index
    %c12 = arith.constant 12 : index
    %c0_94 = arith.constant 0 : index
    %c0_95 = arith.constant 0 : index
    %281 = vector.load %arg5[%c0_92, %c0_93, %c12, %c0_94, %c0_95] : memref<1x4x16x2x32xbf16, #tpu.memory_space<vmem>>, vector<1x4x1x1x32xbf16>
    %282 = vector.shape_cast %281 : vector<1x4x1x1x32xbf16> to vector<4x32xbf16>
    %283 = vector.shape_cast %280 : vector<4x32xbf16> to vector<1x4x1x1x32xbf16>
    tpu.vector_store %arg5[%c0_92, %c0_93, %c12, %c0_94, %c0_95], %283 {strides = array<i32>} : memref<1x4x16x2x32xbf16, #tpu.memory_space<vmem>>, vector<1x4x1x1x32xbf16>,
    %284 = vector.extract_strided_slice %231 {offsets = [0, 416], sizes = [4, 32], strides = [1, 1]} : vector<4x512xbf16> to vector<4x32xbf16>
    %c0_96 = arith.constant 0 : index
    %c0_97 = arith.constant 0 : index
    %c13 = arith.constant 13 : index
    %c0_98 = arith.constant 0 : index
    %c0_99 = arith.constant 0 : index
    %285 = vector.load %arg5[%c0_96, %c0_97, %c13, %c0_98, %c0_99] : memref<1x4x16x2x32xbf16, #tpu.memory_space<vmem>>, vector<1x4x1x1x32xbf16>
    %286 = vector.shape_cast %285 : vector<1x4x1x1x32xbf16> to vector<4x32xbf16>
    %287 = vector.shape_cast %284 : vector<4x32xbf16> to vector<1x4x1x1x32xbf16>
    tpu.vector_store %arg5[%c0_96, %c0_97, %c13, %c0_98, %c0_99], %287 {strides = array<i32>} : memref<1x4x16x2x32xbf16, #tpu.memory_space<vmem>>, vector<1x4x1x1x32xbf16>,
    %288 = vector.extract_strided_slice %231 {offsets = [0, 448], sizes = [4, 32], strides = [1, 1]} : vector<4x512xbf16> to vector<4x32xbf16>
    %c0_100 = arith.constant 0 : index
    %c0_101 = arith.constant 0 : index
    %c14 = arith.constant 14 : index
    %c0_102 = arith.constant 0 : index
    %c0_103 = arith.constant 0 : index
    %289 = vector.load %arg5[%c0_100, %c0_101, %c14, %c0_102, %c0_103] : memref<1x4x16x2x32xbf16, #tpu.memory_space<vmem>>, vector<1x4x1x1x32xbf16>
    %290 = vector.shape_cast %289 : vector<1x4x1x1x32xbf16> to vector<4x32xbf16>
    %291 = vector.shape_cast %288 : vector<4x32xbf16> to vector<1x4x1x1x32xbf16>
    tpu.vector_store %arg5[%c0_100, %c0_101, %c14, %c0_102, %c0_103], %291 {strides = array<i32>} : memref<1x4x16x2x32xbf16, #tpu.memory_space<vmem>>, vector<1x4x1x1x32xbf16>,
    %292 = vector.extract_strided_slice %231 {offsets = [0, 480], sizes = [4, 32], strides = [1, 1]} : vector<4x512xbf16> to vector<4x32xbf16>
    %c0_104 = arith.constant 0 : index
    %c0_105 = arith.constant 0 : index
    %c15 = arith.constant 15 : index
    %c0_106 = arith.constant 0 : index
    %c0_107 = arith.constant 0 : index
    %293 = vector.load %arg5[%c0_104, %c0_105, %c15, %c0_106, %c0_107] : memref<1x4x16x2x32xbf16, #tpu.memory_space<vmem>>, vector<1x4x1x1x32xbf16>
    %294 = vector.shape_cast %293 : vector<1x4x1x1x32xbf16> to vector<4x32xbf16>
    %295 = vector.shape_cast %292 : vector<4x32xbf16> to vector<1x4x1x1x32xbf16>
    tpu.vector_store %arg5[%c0_104, %c0_105, %c15, %c0_106, %c0_107], %295 {strides = array<i32>} : memref<1x4x16x2x32xbf16, #tpu.memory_space<vmem>>, vector<1x4x1x1x32xbf16>,
    %cst_108 = arith.constant 0.000000e+00 : f32
    %296 = vector.broadcast %cst_108 : f32 to vector<4x512xf32>
    %297 = vector.extract_strided_slice %3 {offsets = [0, 127], sizes = [4, 512], strides = [1, 1]} : vector<4x768xbf16> to vector<4x512xbf16>
    %cst_109 = arith.constant 0.000000e+00 : bf16
    %298 = vector.broadcast %cst_109 : bf16 to vector<4x512xbf16>
    %299 = vector.shape_cast %22 : vector<1x512xi1> to vector<1x512xi1>
    %300 = vector.broadcast %299 : vector<1x512xi1> to vector<4x512xi1>
    %301 = arith.select %300, %297, %298 : vector<4x512xi1>, vector<4x512xbf16>
    %c1_110 = arith.constant 1 : index
    %c0_111 = arith.constant 0 : index
    %c0_112 = arith.constant 0 : index
    %c0_113 = arith.constant 0 : index
    %c0_114 = arith.constant 0 : index
    %302 = vector.load %arg3[%c1_110, %c0_111, %c0_112, %c0_113, %c0_114] : memref<2x2x3x4x4xf32, #tpu.memory_space<vmem>>, vector<1x1x1x4x4xf32>
    %303 = vector.shape_cast %302 : vector<1x1x1x4x4xf32> to vector<4x4xf32>
    %304 = vector.extract_strided_slice %303 {offsets = [0, 0], sizes = [4, 1], strides = [1, 1]} : vector<4x4xf32> to vector<4x1xf32>
    %305 = vector.extract_strided_slice %301 {offsets = [0, 0], sizes = [1, 512], strides = [1, 1]} : vector<4x512xbf16> to vector<1x512xbf16>
    %306 = arith.extf %305 : vector<1x512xbf16> to vector<1x512xf32>
    %307 = vector.broadcast %304 : vector<4x1xf32> to vector<4x512xf32>
    %308 = vector.broadcast %306 : vector<1x512xf32> to vector<4x512xf32>
    %309 = arith.mulf %307, %308 : vector<4x512xf32>
    %310 = arith.addf %296, %309 : vector<4x512xf32>
    %311 = vector.extract_strided_slice %303 {offsets = [0, 1], sizes = [4, 1], strides = [1, 1]} : vector<4x4xf32> to vector<4x1xf32>
    %312 = vector.extract_strided_slice %301 {offsets = [1, 0], sizes = [1, 512], strides = [1, 1]} : vector<4x512xbf16> to vector<1x512xbf16>
    %313 = arith.extf %312 : vector<1x512xbf16> to vector<1x512xf32>
    %314 = vector.broadcast %311 : vector<4x1xf32> to vector<4x512xf32>
    %315 = vector.broadcast %313 : vector<1x512xf32> to vector<4x512xf32>
    %316 = arith.mulf %314, %315 : vector<4x512xf32>
    %317 = arith.addf %310, %316 : vector<4x512xf32>
    %318 = vector.extract_strided_slice %303 {offsets = [0, 2], sizes = [4, 1], strides = [1, 1]} : vector<4x4xf32> to vector<4x1xf32>
    %319 = vector.extract_strided_slice %301 {offsets = [2, 0], sizes = [1, 512], strides = [1, 1]} : vector<4x512xbf16> to vector<1x512xbf16>
    %320 = arith.extf %319 : vector<1x512xbf16> to vector<1x512xf32>
    %321 = vector.broadcast %318 : vector<4x1xf32> to vector<4x512xf32>
    %322 = vector.broadcast %320 : vector<1x512xf32> to vector<4x512xf32>
    %323 = arith.mulf %321, %322 : vector<4x512xf32>
    %324 = arith.addf %317, %323 : vector<4x512xf32>
    %325 = vector.extract_strided_slice %303 {offsets = [0, 3], sizes = [4, 1], strides = [1, 1]} : vector<4x4xf32> to vector<4x1xf32>
    %326 = vector.extract_strided_slice %301 {offsets = [3, 0], sizes = [1, 512], strides = [1, 1]} : vector<4x512xbf16> to vector<1x512xbf16>
    %327 = arith.extf %326 : vector<1x512xbf16> to vector<1x512xf32>
    %328 = vector.broadcast %325 : vector<4x1xf32> to vector<4x512xf32>
    %329 = vector.broadcast %327 : vector<1x512xf32> to vector<4x512xf32>
    %330 = arith.mulf %328, %329 : vector<4x512xf32>
    %331 = arith.addf %324, %330 : vector<4x512xf32>
    %332 = vector.extract_strided_slice %3 {offsets = [0, 128], sizes = [4, 512], strides = [1, 1]} : vector<4x768xbf16> to vector<4x512xbf16>
    %c1_115 = arith.constant 1 : index
    %c0_116 = arith.constant 0 : index
    %c1_117 = arith.constant 1 : index
    %c0_118 = arith.constant 0 : index
    %c0_119 = arith.constant 0 : index
    %333 = vector.load %arg3[%c1_115, %c0_116, %c1_117, %c0_118, %c0_119] : memref<2x2x3x4x4xf32, #tpu.memory_space<vmem>>, vector<1x1x1x4x4xf32>
    %334 = vector.shape_cast %333 : vector<1x1x1x4x4xf32> to vector<4x4xf32>
    %335 = vector.extract_strided_slice %334 {offsets = [0, 0], sizes = [4, 1], strides = [1, 1]} : vector<4x4xf32> to vector<4x1xf32>
    %336 = vector.extract_strided_slice %332 {offsets = [0, 0], sizes = [1, 512], strides = [1, 1]} : vector<4x512xbf16> to vector<1x512xbf16>
    %337 = arith.extf %336 : vector<1x512xbf16> to vector<1x512xf32>
    %338 = vector.broadcast %335 : vector<4x1xf32> to vector<4x512xf32>
    %339 = vector.broadcast %337 : vector<1x512xf32> to vector<4x512xf32>
    %340 = arith.mulf %338, %339 : vector<4x512xf32>
    %341 = arith.addf %331, %340 : vector<4x512xf32>
    %342 = vector.extract_strided_slice %334 {offsets = [0, 1], sizes = [4, 1], strides = [1, 1]} : vector<4x4xf32> to vector<4x1xf32>
    %343 = vector.extract_strided_slice %332 {offsets = [1, 0], sizes = [1, 512], strides = [1, 1]} : vector<4x512xbf16> to vector<1x512xbf16>
    %344 = arith.extf %343 : vector<1x512xbf16> to vector<1x512xf32>
    %345 = vector.broadcast %342 : vector<4x1xf32> to vector<4x512xf32>
    %346 = vector.broadcast %344 : vector<1x512xf32> to vector<4x512xf32>
    %347 = arith.mulf %345, %346 : vector<4x512xf32>
    %348 = arith.addf %341, %347 : vector<4x512xf32>
    %349 = vector.extract_strided_slice %334 {offsets = [0, 2], sizes = [4, 1], strides = [1, 1]} : vector<4x4xf32> to vector<4x1xf32>
    %350 = vector.extract_strided_slice %332 {offsets = [2, 0], sizes = [1, 512], strides = [1, 1]} : vector<4x512xbf16> to vector<1x512xbf16>
    %351 = arith.extf %350 : vector<1x512xbf16> to vector<1x512xf32>
    %352 = vector.broadcast %349 : vector<4x1xf32> to vector<4x512xf32>
    %353 = vector.broadcast %351 : vector<1x512xf32> to vector<4x512xf32>
    %354 = arith.mulf %352, %353 : vector<4x512xf32>
    %355 = arith.addf %348, %354 : vector<4x512xf32>
    %356 = vector.extract_strided_slice %334 {offsets = [0, 3], sizes = [4, 1], strides = [1, 1]} : vector<4x4xf32> to vector<4x1xf32>
    %357 = vector.extract_strided_slice %332 {offsets = [3, 0], sizes = [1, 512], strides = [1, 1]} : vector<4x512xbf16> to vector<1x512xbf16>
    %358 = arith.extf %357 : vector<1x512xbf16> to vector<1x512xf32>
    %359 = vector.broadcast %356 : vector<4x1xf32> to vector<4x512xf32>
    %360 = vector.broadcast %358 : vector<1x512xf32> to vector<4x512xf32>
    %361 = arith.mulf %359, %360 : vector<4x512xf32>
    %362 = arith.addf %355, %361 : vector<4x512xf32>
    %363 = vector.extract_strided_slice %3 {offsets = [0, 129], sizes = [4, 512], strides = [1, 1]} : vector<4x768xbf16> to vector<4x512xbf16>
    %cst_120 = arith.constant 0.000000e+00 : bf16
    %364 = vector.broadcast %cst_120 : bf16 to vector<4x512xbf16>
    %365 = vector.shape_cast %24 : vector<1x512xi1> to vector<1x512xi1>
    %366 = vector.broadcast %365 : vector<1x512xi1> to vector<4x512xi1>
    %367 = arith.select %366, %363, %364 : vector<4x512xi1>, vector<4x512xbf16>
    %c1_121 = arith.constant 1 : index
    %c0_122 = arith.constant 0 : index
    %c2_123 = arith.constant 2 : index
    %c0_124 = arith.constant 0 : index
    %c0_125 = arith.constant 0 : index
    %368 = vector.load %arg3[%c1_121, %c0_122, %c2_123, %c0_124, %c0_125] : memref<2x2x3x4x4xf32, #tpu.memory_space<vmem>>, vector<1x1x1x4x4xf32>
    %369 = vector.shape_cast %368 : vector<1x1x1x4x4xf32> to vector<4x4xf32>
    %370 = vector.extract_strided_slice %369 {offsets = [0, 0], sizes = [4, 1], strides = [1, 1]} : vector<4x4xf32> to vector<4x1xf32>
    %371 = vector.extract_strided_slice %367 {offsets = [0, 0], sizes = [1, 512], strides = [1, 1]} : vector<4x512xbf16> to vector<1x512xbf16>
    %372 = arith.extf %371 : vector<1x512xbf16> to vector<1x512xf32>
    %373 = vector.broadcast %370 : vector<4x1xf32> to vector<4x512xf32>
    %374 = vector.broadcast %372 : vector<1x512xf32> to vector<4x512xf32>
    %375 = arith.mulf %373, %374 : vector<4x512xf32>
    %376 = arith.addf %362, %375 : vector<4x512xf32>
    %377 = vector.extract_strided_slice %369 {offsets = [0, 1], sizes = [4, 1], strides = [1, 1]} : vector<4x4xf32> to vector<4x1xf32>
    %378 = vector.extract_strided_slice %367 {offsets = [1, 0], sizes = [1, 512], strides = [1, 1]} : vector<4x512xbf16> to vector<1x512xbf16>
    %379 = arith.extf %378 : vector<1x512xbf16> to vector<1x512xf32>
    %380 = vector.broadcast %377 : vector<4x1xf32> to vector<4x512xf32>
    %381 = vector.broadcast %379 : vector<1x512xf32> to vector<4x512xf32>
    %382 = arith.mulf %380, %381 : vector<4x512xf32>
    %383 = arith.addf %376, %382 : vector<4x512xf32>
    %384 = vector.extract_strided_slice %369 {offsets = [0, 2], sizes = [4, 1], strides = [1, 1]} : vector<4x4xf32> to vector<4x1xf32>
    %385 = vector.extract_strided_slice %367 {offsets = [2, 0], sizes = [1, 512], strides = [1, 1]} : vector<4x512xbf16> to vector<1x512xbf16>
    %386 = arith.extf %385 : vector<1x512xbf16> to vector<1x512xf32>
    %387 = vector.broadcast %384 : vector<4x1xf32> to vector<4x512xf32>
    %388 = vector.broadcast %386 : vector<1x512xf32> to vector<4x512xf32>
    %389 = arith.mulf %387, %388 : vector<4x512xf32>
    %390 = arith.addf %383, %389 : vector<4x512xf32>
    %391 = vector.extract_strided_slice %369 {offsets = [0, 3], sizes = [4, 1], strides = [1, 1]} : vector<4x4xf32> to vector<4x1xf32>
    %392 = vector.extract_strided_slice %367 {offsets = [3, 0], sizes = [1, 512], strides = [1, 1]} : vector<4x512xbf16> to vector<1x512xbf16>
    %393 = arith.extf %392 : vector<1x512xbf16> to vector<1x512xf32>
    %394 = vector.broadcast %391 : vector<4x1xf32> to vector<4x512xf32>
    %395 = vector.broadcast %393 : vector<1x512xf32> to vector<4x512xf32>
    %396 = arith.mulf %394, %395 : vector<4x512xf32>
    %397 = arith.addf %390, %396 : vector<4x512xf32>
    %398 = vector.extract_strided_slice %3 {offsets = [0, 159], sizes = [4, 512], strides = [1, 1]} : vector<4x768xbf16> to vector<4x512xbf16>
    %cst_126 = arith.constant 0.000000e+00 : bf16
    %399 = vector.broadcast %cst_126 : bf16 to vector<4x512xbf16>
    %400 = vector.shape_cast %22 : vector<1x512xi1> to vector<1x512xi1>
    %401 = vector.broadcast %400 : vector<1x512xi1> to vector<4x512xi1>
    %402 = arith.select %401, %398, %399 : vector<4x512xi1>, vector<4x512xbf16>
    %c1_127 = arith.constant 1 : index
    %c1_128 = arith.constant 1 : index
    %c0_129 = arith.constant 0 : index
    %c0_130 = arith.constant 0 : index
    %c0_131 = arith.constant 0 : index
    %403 = vector.load %arg3[%c1_127, %c1_128, %c0_129, %c0_130, %c0_131] : memref<2x2x3x4x4xf32, #tpu.memory_space<vmem>>, vector<1x1x1x4x4xf32>
    %404 = vector.shape_cast %403 : vector<1x1x1x4x4xf32> to vector<4x4xf32>
    %405 = vector.extract_strided_slice %404 {offsets = [0, 0], sizes = [4, 1], strides = [1, 1]} : vector<4x4xf32> to vector<4x1xf32>
    %406 = vector.extract_strided_slice %402 {offsets = [0, 0], sizes = [1, 512], strides = [1, 1]} : vector<4x512xbf16> to vector<1x512xbf16>
    %407 = arith.extf %406 : vector<1x512xbf16> to vector<1x512xf32>
    %408 = vector.broadcast %405 : vector<4x1xf32> to vector<4x512xf32>
    %409 = vector.broadcast %407 : vector<1x512xf32> to vector<4x512xf32>
    %410 = arith.mulf %408, %409 : vector<4x512xf32>
    %411 = arith.addf %397, %410 : vector<4x512xf32>
    %412 = vector.extract_strided_slice %404 {offsets = [0, 1], sizes = [4, 1], strides = [1, 1]} : vector<4x4xf32> to vector<4x1xf32>
    %413 = vector.extract_strided_slice %402 {offsets = [1, 0], sizes = [1, 512], strides = [1, 1]} : vector<4x512xbf16> to vector<1x512xbf16>
    %414 = arith.extf %413 : vector<1x512xbf16> to vector<1x512xf32>
    %415 = vector.broadcast %412 : vector<4x1xf32> to vector<4x512xf32>
    %416 = vector.broadcast %414 : vector<1x512xf32> to vector<4x512xf32>
    %417 = arith.mulf %415, %416 : vector<4x512xf32>
    %418 = arith.addf %411, %417 : vector<4x512xf32>
    %419 = vector.extract_strided_slice %404 {offsets = [0, 2], sizes = [4, 1], strides = [1, 1]} : vector<4x4xf32> to vector<4x1xf32>
    %420 = vector.extract_strided_slice %402 {offsets = [2, 0], sizes = [1, 512], strides = [1, 1]} : vector<4x512xbf16> to vector<1x512xbf16>
    %421 = arith.extf %420 : vector<1x512xbf16> to vector<1x512xf32>
    %422 = vector.broadcast %419 : vector<4x1xf32> to vector<4x512xf32>
    %423 = vector.broadcast %421 : vector<1x512xf32> to vector<4x512xf32>
    %424 = arith.mulf %422, %423 : vector<4x512xf32>
    %425 = arith.addf %418, %424 : vector<4x512xf32>
    %426 = vector.extract_strided_slice %404 {offsets = [0, 3], sizes = [4, 1], strides = [1, 1]} : vector<4x4xf32> to vector<4x1xf32>
    %427 = vector.extract_strided_slice %402 {offsets = [3, 0], sizes = [1, 512], strides = [1, 1]} : vector<4x512xbf16> to vector<1x512xbf16>
    %428 = arith.extf %427 : vector<1x512xbf16> to vector<1x512xf32>
    %429 = vector.broadcast %426 : vector<4x1xf32> to vector<4x512xf32>
    %430 = vector.broadcast %428 : vector<1x512xf32> to vector<4x512xf32>
    %431 = arith.mulf %429, %430 : vector<4x512xf32>
    %432 = arith.addf %425, %431 : vector<4x512xf32>
    %433 = vector.extract_strided_slice %3 {offsets = [0, 160], sizes = [4, 512], strides = [1, 1]} : vector<4x768xbf16> to vector<4x512xbf16>
    %c1_132 = arith.constant 1 : index
    %c1_133 = arith.constant 1 : index
    %c1_134 = arith.constant 1 : index
    %c0_135 = arith.constant 0 : index
    %c0_136 = arith.constant 0 : index
    %434 = vector.load %arg3[%c1_132, %c1_133, %c1_134, %c0_135, %c0_136] : memref<2x2x3x4x4xf32, #tpu.memory_space<vmem>>, vector<1x1x1x4x4xf32>
    %435 = vector.shape_cast %434 : vector<1x1x1x4x4xf32> to vector<4x4xf32>
    %436 = vector.extract_strided_slice %435 {offsets = [0, 0], sizes = [4, 1], strides = [1, 1]} : vector<4x4xf32> to vector<4x1xf32>
    %437 = vector.extract_strided_slice %433 {offsets = [0, 0], sizes = [1, 512], strides = [1, 1]} : vector<4x512xbf16> to vector<1x512xbf16>
    %438 = arith.extf %437 : vector<1x512xbf16> to vector<1x512xf32>
    %439 = vector.broadcast %436 : vector<4x1xf32> to vector<4x512xf32>
    %440 = vector.broadcast %438 : vector<1x512xf32> to vector<4x512xf32>
    %441 = arith.mulf %439, %440 : vector<4x512xf32>
    %442 = arith.addf %432, %441 : vector<4x512xf32>
    %443 = vector.extract_strided_slice %435 {offsets = [0, 1], sizes = [4, 1], strides = [1, 1]} : vector<4x4xf32> to vector<4x1xf32>
    %444 = vector.extract_strided_slice %433 {offsets = [1, 0], sizes = [1, 512], strides = [1, 1]} : vector<4x512xbf16> to vector<1x512xbf16>
    %445 = arith.extf %444 : vector<1x512xbf16> to vector<1x512xf32>
    %446 = vector.broadcast %443 : vector<4x1xf32> to vector<4x512xf32>
    %447 = vector.broadcast %445 : vector<1x512xf32> to vector<4x512xf32>
    %448 = arith.mulf %446, %447 : vector<4x512xf32>
    %449 = arith.addf %442, %448 : vector<4x512xf32>
    %450 = vector.extract_strided_slice %435 {offsets = [0, 2], sizes = [4, 1], strides = [1, 1]} : vector<4x4xf32> to vector<4x1xf32>
    %451 = vector.extract_strided_slice %433 {offsets = [2, 0], sizes = [1, 512], strides = [1, 1]} : vector<4x512xbf16> to vector<1x512xbf16>
    %452 = arith.extf %451 : vector<1x512xbf16> to vector<1x512xf32>
    %453 = vector.broadcast %450 : vector<4x1xf32> to vector<4x512xf32>
    %454 = vector.broadcast %452 : vector<1x512xf32> to vector<4x512xf32>
    %455 = arith.mulf %453, %454 : vector<4x512xf32>
    %456 = arith.addf %449, %455 : vector<4x512xf32>
    %457 = vector.extract_strided_slice %435 {offsets = [0, 3], sizes = [4, 1], strides = [1, 1]} : vector<4x4xf32> to vector<4x1xf32>
    %458 = vector.extract_strided_slice %433 {offsets = [3, 0], sizes = [1, 512], strides = [1, 1]} : vector<4x512xbf16> to vector<1x512xbf16>
    %459 = arith.extf %458 : vector<1x512xbf16> to vector<1x512xf32>
    %460 = vector.broadcast %457 : vector<4x1xf32> to vector<4x512xf32>
    %461 = vector.broadcast %459 : vector<1x512xf32> to vector<4x512xf32>
    %462 = arith.mulf %460, %461 : vector<4x512xf32>
    %463 = arith.addf %456, %462 : vector<4x512xf32>
    %464 = vector.extract_strided_slice %3 {offsets = [0, 161], sizes = [4, 512], strides = [1, 1]} : vector<4x768xbf16> to vector<4x512xbf16>
    %cst_137 = arith.constant 0.000000e+00 : bf16
    %465 = vector.broadcast %cst_137 : bf16 to vector<4x512xbf16>
    %466 = vector.shape_cast %24 : vector<1x512xi1> to vector<1x512xi1>
    %467 = vector.broadcast %466 : vector<1x512xi1> to vector<4x512xi1>
    %468 = arith.select %467, %464, %465 : vector<4x512xi1>, vector<4x512xbf16>
    %c1_138 = arith.constant 1 : index
    %c1_139 = arith.constant 1 : index
    %c2_140 = arith.constant 2 : index
    %c0_141 = arith.constant 0 : index
    %c0_142 = arith.constant 0 : index
    %469 = vector.load %arg3[%c1_138, %c1_139, %c2_140, %c0_141, %c0_142] : memref<2x2x3x4x4xf32, #tpu.memory_space<vmem>>, vector<1x1x1x4x4xf32>
    %470 = vector.shape_cast %469 : vector<1x1x1x4x4xf32> to vector<4x4xf32>
    %471 = vector.extract_strided_slice %470 {offsets = [0, 0], sizes = [4, 1], strides = [1, 1]} : vector<4x4xf32> to vector<4x1xf32>
    %472 = vector.extract_strided_slice %468 {offsets = [0, 0], sizes = [1, 512], strides = [1, 1]} : vector<4x512xbf16> to vector<1x512xbf16>
    %473 = arith.extf %472 : vector<1x512xbf16> to vector<1x512xf32>
    %474 = vector.broadcast %471 : vector<4x1xf32> to vector<4x512xf32>
    %475 = vector.broadcast %473 : vector<1x512xf32> to vector<4x512xf32>
    %476 = arith.mulf %474, %475 : vector<4x512xf32>
    %477 = arith.addf %463, %476 : vector<4x512xf32>
    %478 = vector.extract_strided_slice %470 {offsets = [0, 1], sizes = [4, 1], strides = [1, 1]} : vector<4x4xf32> to vector<4x1xf32>
    %479 = vector.extract_strided_slice %468 {offsets = [1, 0], sizes = [1, 512], strides = [1, 1]} : vector<4x512xbf16> to vector<1x512xbf16>
    %480 = arith.extf %479 : vector<1x512xbf16> to vector<1x512xf32>
    %481 = vector.broadcast %478 : vector<4x1xf32> to vector<4x512xf32>
    %482 = vector.broadcast %480 : vector<1x512xf32> to vector<4x512xf32>
    %483 = arith.mulf %481, %482 : vector<4x512xf32>
    %484 = arith.addf %477, %483 : vector<4x512xf32>
    %485 = vector.extract_strided_slice %470 {offsets = [0, 2], sizes = [4, 1], strides = [1, 1]} : vector<4x4xf32> to vector<4x1xf32>
    %486 = vector.extract_strided_slice %468 {offsets = [2, 0], sizes = [1, 512], strides = [1, 1]} : vector<4x512xbf16> to vector<1x512xbf16>
    %487 = arith.extf %486 : vector<1x512xbf16> to vector<1x512xf32>
    %488 = vector.broadcast %485 : vector<4x1xf32> to vector<4x512xf32>
    %489 = vector.broadcast %487 : vector<1x512xf32> to vector<4x512xf32>
    %490 = arith.mulf %488, %489 : vector<4x512xf32>
    %491 = arith.addf %484, %490 : vector<4x512xf32>
    %492 = vector.extract_strided_slice %470 {offsets = [0, 3], sizes = [4, 1], strides = [1, 1]} : vector<4x4xf32> to vector<4x1xf32>
    %493 = vector.extract_strided_slice %468 {offsets = [3, 0], sizes = [1, 512], strides = [1, 1]} : vector<4x512xbf16> to vector<1x512xbf16>
    %494 = arith.extf %493 : vector<1x512xbf16> to vector<1x512xf32>
    %495 = vector.broadcast %492 : vector<4x1xf32> to vector<4x512xf32>
    %496 = vector.broadcast %494 : vector<1x512xf32> to vector<4x512xf32>
    %497 = arith.mulf %495, %496 : vector<4x512xf32>
    %498 = arith.addf %491, %497 : vector<4x512xf32>
    %499 = vector.broadcast %25 : vector<4x1xf32> to vector<4x512xf32>
    %500 = arith.addf %498, %499 : vector<4x512xf32>
    %501 = arith.truncf %500 : vector<4x512xf32> to vector<4x512xbf16>
    %502 = vector.extract_strided_slice %501 {offsets = [0, 0], sizes = [4, 32], strides = [1, 1]} : vector<4x512xbf16> to vector<4x32xbf16>
    %c0_143 = arith.constant 0 : index
    %c0_144 = arith.constant 0 : index
    %c0_145 = arith.constant 0 : index
    %c1_146 = arith.constant 1 : index
    %c0_147 = arith.constant 0 : index
    %503 = vector.load %arg5[%c0_143, %c0_144, %c0_145, %c1_146, %c0_147] : memref<1x4x16x2x32xbf16, #tpu.memory_space<vmem>>, vector<1x4x1x1x32xbf16>
    %504 = vector.shape_cast %503 : vector<1x4x1x1x32xbf16> to vector<4x32xbf16>
    %505 = vector.shape_cast %502 : vector<4x32xbf16> to vector<1x4x1x1x32xbf16>
    tpu.vector_store %arg5[%c0_143, %c0_144, %c0_145, %c1_146, %c0_147], %505 {strides = array<i32>} : memref<1x4x16x2x32xbf16, #tpu.memory_space<vmem>>, vector<1x4x1x1x32xbf16>,
    %506 = vector.extract_strided_slice %501 {offsets = [0, 32], sizes = [4, 32], strides = [1, 1]} : vector<4x512xbf16> to vector<4x32xbf16>
    %c0_148 = arith.constant 0 : index
    %c0_149 = arith.constant 0 : index
    %c1_150 = arith.constant 1 : index
    %c1_151 = arith.constant 1 : index
    %c0_152 = arith.constant 0 : index
    %507 = vector.load %arg5[%c0_148, %c0_149, %c1_150, %c1_151, %c0_152] : memref<1x4x16x2x32xbf16, #tpu.memory_space<vmem>>, vector<1x4x1x1x32xbf16>
    %508 = vector.shape_cast %507 : vector<1x4x1x1x32xbf16> to vector<4x32xbf16>
    %509 = vector.shape_cast %506 : vector<4x32xbf16> to vector<1x4x1x1x32xbf16>
    tpu.vector_store %arg5[%c0_148, %c0_149, %c1_150, %c1_151, %c0_152], %509 {strides = array<i32>} : memref<1x4x16x2x32xbf16, #tpu.memory_space<vmem>>, vector<1x4x1x1x32xbf16>,
    %510 = vector.extract_strided_slice %501 {offsets = [0, 64], sizes = [4, 32], strides = [1, 1]} : vector<4x512xbf16> to vector<4x32xbf16>
    %c0_153 = arith.constant 0 : index
    %c0_154 = arith.constant 0 : index
    %c2_155 = arith.constant 2 : index
    %c1_156 = arith.constant 1 : index
    %c0_157 = arith.constant 0 : index
    %511 = vector.load %arg5[%c0_153, %c0_154, %c2_155, %c1_156, %c0_157] : memref<1x4x16x2x32xbf16, #tpu.memory_space<vmem>>, vector<1x4x1x1x32xbf16>
    %512 = vector.shape_cast %511 : vector<1x4x1x1x32xbf16> to vector<4x32xbf16>
    %513 = vector.shape_cast %510 : vector<4x32xbf16> to vector<1x4x1x1x32xbf16>
    tpu.vector_store %arg5[%c0_153, %c0_154, %c2_155, %c1_156, %c0_157], %513 {strides = array<i32>} : memref<1x4x16x2x32xbf16, #tpu.memory_space<vmem>>, vector<1x4x1x1x32xbf16>,
    %514 = vector.extract_strided_slice %501 {offsets = [0, 96], sizes = [4, 32], strides = [1, 1]} : vector<4x512xbf16> to vector<4x32xbf16>
    %c0_158 = arith.constant 0 : index
    %c0_159 = arith.constant 0 : index
    %c3_160 = arith.constant 3 : index
    %c1_161 = arith.constant 1 : index
    %c0_162 = arith.constant 0 : index
    %515 = vector.load %arg5[%c0_158, %c0_159, %c3_160, %c1_161, %c0_162] : memref<1x4x16x2x32xbf16, #tpu.memory_space<vmem>>, vector<1x4x1x1x32xbf16>
    %516 = vector.shape_cast %515 : vector<1x4x1x1x32xbf16> to vector<4x32xbf16>
    %517 = vector.shape_cast %514 : vector<4x32xbf16> to vector<1x4x1x1x32xbf16>
    tpu.vector_store %arg5[%c0_158, %c0_159, %c3_160, %c1_161, %c0_162], %517 {strides = array<i32>} : memref<1x4x16x2x32xbf16, #tpu.memory_space<vmem>>, vector<1x4x1x1x32xbf16>,
    %518 = vector.extract_strided_slice %501 {offsets = [0, 128], sizes = [4, 32], strides = [1, 1]} : vector<4x512xbf16> to vector<4x32xbf16>
    %c0_163 = arith.constant 0 : index
    %c0_164 = arith.constant 0 : index
    %c4_165 = arith.constant 4 : index
    %c1_166 = arith.constant 1 : index
    %c0_167 = arith.constant 0 : index
    %519 = vector.load %arg5[%c0_163, %c0_164, %c4_165, %c1_166, %c0_167] : memref<1x4x16x2x32xbf16, #tpu.memory_space<vmem>>, vector<1x4x1x1x32xbf16>
    %520 = vector.shape_cast %519 : vector<1x4x1x1x32xbf16> to vector<4x32xbf16>
    %521 = vector.shape_cast %518 : vector<4x32xbf16> to vector<1x4x1x1x32xbf16>
    tpu.vector_store %arg5[%c0_163, %c0_164, %c4_165, %c1_166, %c0_167], %521 {strides = array<i32>} : memref<1x4x16x2x32xbf16, #tpu.memory_space<vmem>>, vector<1x4x1x1x32xbf16>,
    %522 = vector.extract_strided_slice %501 {offsets = [0, 160], sizes = [4, 32], strides = [1, 1]} : vector<4x512xbf16> to vector<4x32xbf16>
    %c0_168 = arith.constant 0 : index
    %c0_169 = arith.constant 0 : index
    %c5_170 = arith.constant 5 : index
    %c1_171 = arith.constant 1 : index
    %c0_172 = arith.constant 0 : index
    %523 = vector.load %arg5[%c0_168, %c0_169, %c5_170, %c1_171, %c0_172] : memref<1x4x16x2x32xbf16, #tpu.memory_space<vmem>>, vector<1x4x1x1x32xbf16>
    %524 = vector.shape_cast %523 : vector<1x4x1x1x32xbf16> to vector<4x32xbf16>
    %525 = vector.shape_cast %522 : vector<4x32xbf16> to vector<1x4x1x1x32xbf16>
    tpu.vector_store %arg5[%c0_168, %c0_169, %c5_170, %c1_171, %c0_172], %525 {strides = array<i32>} : memref<1x4x16x2x32xbf16, #tpu.memory_space<vmem>>, vector<1x4x1x1x32xbf16>,
    %526 = vector.extract_strided_slice %501 {offsets = [0, 192], sizes = [4, 32], strides = [1, 1]} : vector<4x512xbf16> to vector<4x32xbf16>
    %c0_173 = arith.constant 0 : index
    %c0_174 = arith.constant 0 : index
    %c6_175 = arith.constant 6 : index
    %c1_176 = arith.constant 1 : index
    %c0_177 = arith.constant 0 : index
    %527 = vector.load %arg5[%c0_173, %c0_174, %c6_175, %c1_176, %c0_177] : memref<1x4x16x2x32xbf16, #tpu.memory_space<vmem>>, vector<1x4x1x1x32xbf16>
    %528 = vector.shape_cast %527 : vector<1x4x1x1x32xbf16> to vector<4x32xbf16>
    %529 = vector.shape_cast %526 : vector<4x32xbf16> to vector<1x4x1x1x32xbf16>
    tpu.vector_store %arg5[%c0_173, %c0_174, %c6_175, %c1_176, %c0_177], %529 {strides = array<i32>} : memref<1x4x16x2x32xbf16, #tpu.memory_space<vmem>>, vector<1x4x1x1x32xbf16>,
    %530 = vector.extract_strided_slice %501 {offsets = [0, 224], sizes = [4, 32], strides = [1, 1]} : vector<4x512xbf16> to vector<4x32xbf16>
    %c0_178 = arith.constant 0 : index
    %c0_179 = arith.constant 0 : index
    %c7_180 = arith.constant 7 : index
    %c1_181 = arith.constant 1 : index
    %c0_182 = arith.constant 0 : index
    %531 = vector.load %arg5[%c0_178, %c0_179, %c7_180, %c1_181, %c0_182] : memref<1x4x16x2x32xbf16, #tpu.memory_space<vmem>>, vector<1x4x1x1x32xbf16>
    %532 = vector.shape_cast %531 : vector<1x4x1x1x32xbf16> to vector<4x32xbf16>
    %533 = vector.shape_cast %530 : vector<4x32xbf16> to vector<1x4x1x1x32xbf16>
    tpu.vector_store %arg5[%c0_178, %c0_179, %c7_180, %c1_181, %c0_182], %533 {strides = array<i32>} : memref<1x4x16x2x32xbf16, #tpu.memory_space<vmem>>, vector<1x4x1x1x32xbf16>,
    %534 = vector.extract_strided_slice %501 {offsets = [0, 256], sizes = [4, 32], strides = [1, 1]} : vector<4x512xbf16> to vector<4x32xbf16>
    %c0_183 = arith.constant 0 : index
    %c0_184 = arith.constant 0 : index
    %c8_185 = arith.constant 8 : index
    %c1_186 = arith.constant 1 : index
    %c0_187 = arith.constant 0 : index
    %535 = vector.load %arg5[%c0_183, %c0_184, %c8_185, %c1_186, %c0_187] : memref<1x4x16x2x32xbf16, #tpu.memory_space<vmem>>, vector<1x4x1x1x32xbf16>
    %536 = vector.shape_cast %535 : vector<1x4x1x1x32xbf16> to vector<4x32xbf16>
    %537 = vector.shape_cast %534 : vector<4x32xbf16> to vector<1x4x1x1x32xbf16>
    tpu.vector_store %arg5[%c0_183, %c0_184, %c8_185, %c1_186, %c0_187], %537 {strides = array<i32>} : memref<1x4x16x2x32xbf16, #tpu.memory_space<vmem>>, vector<1x4x1x1x32xbf16>,
    %538 = vector.extract_strided_slice %501 {offsets = [0, 288], sizes = [4, 32], strides = [1, 1]} : vector<4x512xbf16> to vector<4x32xbf16>
    %c0_188 = arith.constant 0 : index
    %c0_189 = arith.constant 0 : index
    %c9_190 = arith.constant 9 : index
    %c1_191 = arith.constant 1 : index
    %c0_192 = arith.constant 0 : index
    %539 = vector.load %arg5[%c0_188, %c0_189, %c9_190, %c1_191, %c0_192] : memref<1x4x16x2x32xbf16, #tpu.memory_space<vmem>>, vector<1x4x1x1x32xbf16>
    %540 = vector.shape_cast %539 : vector<1x4x1x1x32xbf16> to vector<4x32xbf16>
    %541 = vector.shape_cast %538 : vector<4x32xbf16> to vector<1x4x1x1x32xbf16>
    tpu.vector_store %arg5[%c0_188, %c0_189, %c9_190, %c1_191, %c0_192], %541 {strides = array<i32>} : memref<1x4x16x2x32xbf16, #tpu.memory_space<vmem>>, vector<1x4x1x1x32xbf16>,
    %542 = vector.extract_strided_slice %501 {offsets = [0, 320], sizes = [4, 32], strides = [1, 1]} : vector<4x512xbf16> to vector<4x32xbf16>
    %c0_193 = arith.constant 0 : index
    %c0_194 = arith.constant 0 : index
    %c10_195 = arith.constant 10 : index
    %c1_196 = arith.constant 1 : index
    %c0_197 = arith.constant 0 : index
    %543 = vector.load %arg5[%c0_193, %c0_194, %c10_195, %c1_196, %c0_197] : memref<1x4x16x2x32xbf16, #tpu.memory_space<vmem>>, vector<1x4x1x1x32xbf16>
    %544 = vector.shape_cast %543 : vector<1x4x1x1x32xbf16> to vector<4x32xbf16>
    %545 = vector.shape_cast %542 : vector<4x32xbf16> to vector<1x4x1x1x32xbf16>
    tpu.vector_store %arg5[%c0_193, %c0_194, %c10_195, %c1_196, %c0_197], %545 {strides = array<i32>} : memref<1x4x16x2x32xbf16, #tpu.memory_space<vmem>>, vector<1x4x1x1x32xbf16>,
    %546 = vector.extract_strided_slice %501 {offsets = [0, 352], sizes = [4, 32], strides = [1, 1]} : vector<4x512xbf16> to vector<4x32xbf16>
    %c0_198 = arith.constant 0 : index
    %c0_199 = arith.constant 0 : index
    %c11_200 = arith.constant 11 : index
    %c1_201 = arith.constant 1 : index
    %c0_202 = arith.constant 0 : index
    %547 = vector.load %arg5[%c0_198, %c0_199, %c11_200, %c1_201, %c0_202] : memref<1x4x16x2x32xbf16, #tpu.memory_space<vmem>>, vector<1x4x1x1x32xbf16>
    %548 = vector.shape_cast %547 : vector<1x4x1x1x32xbf16> to vector<4x32xbf16>
    %549 = vector.shape_cast %546 : vector<4x32xbf16> to vector<1x4x1x1x32xbf16>
    tpu.vector_store %arg5[%c0_198, %c0_199, %c11_200, %c1_201, %c0_202], %549 {strides = array<i32>} : memref<1x4x16x2x32xbf16, #tpu.memory_space<vmem>>, vector<1x4x1x1x32xbf16>,
    %550 = vector.extract_strided_slice %501 {offsets = [0, 384], sizes = [4, 32], strides = [1, 1]} : vector<4x512xbf16> to vector<4x32xbf16>
    %c0_203 = arith.constant 0 : index
    %c0_204 = arith.constant 0 : index
    %c12_205 = arith.constant 12 : index
    %c1_206 = arith.constant 1 : index
    %c0_207 = arith.constant 0 : index
    %551 = vector.load %arg5[%c0_203, %c0_204, %c12_205, %c1_206, %c0_207] : memref<1x4x16x2x32xbf16, #tpu.memory_space<vmem>>, vector<1x4x1x1x32xbf16>
    %552 = vector.shape_cast %551 : vector<1x4x1x1x32xbf16> to vector<4x32xbf16>
    %553 = vector.shape_cast %550 : vector<4x32xbf16> to vector<1x4x1x1x32xbf16>
    tpu.vector_store %arg5[%c0_203, %c0_204, %c12_205, %c1_206, %c0_207], %553 {strides = array<i32>} : memref<1x4x16x2x32xbf16, #tpu.memory_space<vmem>>, vector<1x4x1x1x32xbf16>,
    %554 = vector.extract_strided_slice %501 {offsets = [0, 416], sizes = [4, 32], strides = [1, 1]} : vector<4x512xbf16> to vector<4x32xbf16>
    %c0_208 = arith.constant 0 : index
    %c0_209 = arith.constant 0 : index
    %c13_210 = arith.constant 13 : index
    %c1_211 = arith.constant 1 : index
    %c0_212 = arith.constant 0 : index
    %555 = vector.load %arg5[%c0_208, %c0_209, %c13_210, %c1_211, %c0_212] : memref<1x4x16x2x32xbf16, #tpu.memory_space<vmem>>, vector<1x4x1x1x32xbf16>
    %556 = vector.shape_cast %555 : vector<1x4x1x1x32xbf16> to vector<4x32xbf16>
    %557 = vector.shape_cast %554 : vector<4x32xbf16> to vector<1x4x1x1x32xbf16>
    tpu.vector_store %arg5[%c0_208, %c0_209, %c13_210, %c1_211, %c0_212], %557 {strides = array<i32>} : memref<1x4x16x2x32xbf16, #tpu.memory_space<vmem>>, vector<1x4x1x1x32xbf16>,
    %558 = vector.extract_strided_slice %501 {offsets = [0, 448], sizes = [4, 32], strides = [1, 1]} : vector<4x512xbf16> to vector<4x32xbf16>
    %c0_213 = arith.constant 0 : index
    %c0_214 = arith.constant 0 : index
    %c14_215 = arith.constant 14 : index
    %c1_216 = arith.constant 1 : index
    %c0_217 = arith.constant 0 : index
    %559 = vector.load %arg5[%c0_213, %c0_214, %c14_215, %c1_216, %c0_217] : memref<1x4x16x2x32xbf16, #tpu.memory_space<vmem>>, vector<1x4x1x1x32xbf16>
    %560 = vector.shape_cast %559 : vector<1x4x1x1x32xbf16> to vector<4x32xbf16>
    %561 = vector.shape_cast %558 : vector<4x32xbf16> to vector<1x4x1x1x32xbf16>
    tpu.vector_store %arg5[%c0_213, %c0_214, %c14_215, %c1_216, %c0_217], %561 {strides = array<i32>} : memref<1x4x16x2x32xbf16, #tpu.memory_space<vmem>>, vector<1x4x1x1x32xbf16>,
    %562 = vector.extract_strided_slice %501 {offsets = [0, 480], sizes = [4, 32], strides = [1, 1]} : vector<4x512xbf16> to vector<4x32xbf16>
    %c0_218 = arith.constant 0 : index
    %c0_219 = arith.constant 0 : index
    %c15_220 = arith.constant 15 : index
    %c1_221 = arith.constant 1 : index
    %c0_222 = arith.constant 0 : index
    %563 = vector.load %arg5[%c0_218, %c0_219, %c15_220, %c1_221, %c0_222] : memref<1x4x16x2x32xbf16, #tpu.memory_space<vmem>>, vector<1x4x1x1x32xbf16>
    %564 = vector.shape_cast %563 : vector<1x4x1x1x32xbf16> to vector<4x32xbf16>
    %565 = vector.shape_cast %562 : vector<4x32xbf16> to vector<1x4x1x1x32xbf16>
    tpu.vector_store %arg5[%c0_218, %c0_219, %c15_220, %c1_221, %c0_222], %565 {strides = array<i32>} : memref<1x4x16x2x32xbf16, #tpu.memory_space<vmem>>, vector<1x4x1x1x32xbf16>,
    return
  }
  func.func @transform_0(%arg0: i32, %arg1: i32) -> (i32, i32, i32) {
    %c0_i32 = arith.constant 0 : i32
    %c0_i32_0 = arith.constant 0 : i32
    %c0_i32_1 = arith.constant 0 : i32
    return %arg0, %c0_i32, %c0_i32_0 : i32, i32, i32
  }
  func.func @transform_1(%arg0: i32, %arg1: i32) -> (i32, i32, i32, i32, i32) {
    %c0_i32 = arith.constant 0 : i32
    %c0_i32_0 = arith.constant 0 : i32
    %c0_i32_1 = arith.constant 0 : i32
    %c0_i32_2 = arith.constant 0 : i32
    %c0_i32_3 = arith.constant 0 : i32
    return %c0_i32, %c0_i32_0, %c0_i32_1, %arg1, %c0_i32_2 : i32, i32, i32, i32, i32
  }
  func.func @transform_2(%arg0: i32, %arg1: i32) -> (i32, i32) {
    %c0_i32 = arith.constant 0 : i32
    %c0_i32_0 = arith.constant 0 : i32
    return %arg1, %c0_i32 : i32, i32
  }
  func.func @transform_3(%arg0: i32, %arg1: i32) -> (i32, i32, i32, i32, i32) {
    %c0_i32 = arith.constant 0 : i32
    %c0_i32_0 = arith.constant 0 : i32
    %c0_i32_1 = arith.constant 0 : i32
    %c0_i32_2 = arith.constant 0 : i32
    return %arg0, %arg1, %c0_i32, %c0_i32_0, %c0_i32_1 : i32, i32, i32, i32, i32
  }
}

</mosaic_0001>

<bundles_post_ra>
// kernel: upsample_with_conv.1
= control target key start
LH: loop header
LB: loop body
LE: loop exit
PB: predicated region body
PF: predicated region fallthrough
CT: control target
= control target key end

     0   :  { %8 = vsyncpa [#allocation3], 0  ;;  %s7437_s0 = inlined_call_operand.vmem [shape: bf16[2,4,512], index: 0, kind: input, shape index: {}]   ;;  %s7438_s1 = inlined_call_operand.vmem [shape: f32[2,2,3,4,4], index: 1, kind: input, shape index: {}]   ;;  %s7439_s2 = inlined_call_operand.vmem [shape: f32[4,1], index: 2, kind: input, shape index: {}]   ;;  %s7440_s3 = inlined_call_operand.hbm [shape: bf16[2,4,16,2,32], index: 3, kind: output, shape index: {}]  }
   0x1   :  { %10 = vsyncpa [#allocation3 + $0x1], 0  ;;  %s4675_s12 = smov 0   ;;  %s4677_s13 = smov 0  }
   0x2   :  { %s4679_s14 = smov 0   ;;  %s4681_s15 = smov 0  }
   0x3   :  { %s4683_s16 = smov 0   ;;  %s4685_s17 = smov 0  }
   0x4 LB: > { %s4132_s18 = sadd.s32 4294967295, %s4635_s17   ;;  %s4133_s19 = sadd.s32 4294967294, %s4635_s17   ;;  %s4635_s17 = sphi %s4685_s17, %s16_s17   ;;  %s4631_s16 = sphi %s4683_s16, %s7959_s16   ;;  %s4627_s15 = sphi %s4681_s15, %s7958_s15   ;;  %s4623_s14 = sphi %s4679_s14, %s7957_s14   ;;  %s4619_s13 = sphi %s4677_s13, %s7956_s13   ;;  %s4615_s12 = sphi %s4675_s12, %s7955_s12  }
   0x5   : > { %s28_s20 = sadd.s32 1, %s4631_s16  ;;  %s115_s21 = sadd.s32 1, %s4623_s14 }
   0x6   : > { %p30_p0 = scmp.ge.s32.totalorder %s28_s20, 2  ;;  %p125_p1 = scmp.ne.s32.totalorder %s4623_s14, %s4619_s13 }
   0x7   : > { %p126_p2 = scmp.eq.s32.totalorder %s4132_s18, 1  ;;  %p131_p3 = scmp.ne.s32.totalorder %s4619_s13, %s4615_s12 }
   0x8   : > { %s7961_s20 = smov (%p30_p0, %s28_s20), 0  ;;  %p132_p5 = scmp.eq.s32.totalorder %s4133_s19, 1 }
   0x9   : > { %p4715_p4 = por %p126_p2, %p125_p1  ;;  %s110_s23 = ssub.s32 %s4631_s16, %s7961_s20 }
   0xa   : > { %p4138_p6 = scmp.ge.s32.totalorder %s4635_s17, 1  ;;  %p113_p7 = scmp.eq.s32.totalorder %s110_s23, 0 }
   0xb   : > { %p4722_p8 = por %p132_p5, %p131_p3  ;;  %p172_p9 = scmp.lt.s32.totalorder %s4635_s17, 3 }
   0xc   : > { %s4728_s25 = scalar_select %p113_p7, %s4623_s14, %s115_s21  }
   0xd   : > { %p173_p10 = pnand %p4138_p6, %p172_p9 }
   0xf   : > { %176 = sbr.rel (%p173_p10) target bundleno = 4687 (0x124f), region = 32 }
  0x16   : > { %v4733_v0 = vld [vmem:[%s7438_s1] sm:$0xf]  ;;  %v227_v1 = vlaneseq  ;;  %v7441_v2 = vmov 1   ;;  %v7447_v8 = vmov 2   ;;  %v7443_v15 = vmov 0   ;;  %s4640_s28 = smov 95  }
  0x17   : > { %4514 = vset.pattern.permute.xlu1 %v7441_v2  ;;  %4517 = vset.pattern.permute.xlu0 %v7441_v2  ;;  %v4142_v22 = vld [vmem:[%s7438_s1 + $0x4] sm:$0xf]  ;;  %s4641_s4 = smov 97   ;;  %v7445_v27 = vmov 3   ;;  %s4643_s5 = smov 127   ;;  %v355_v45 = vunpack.c.l.bf16 %v7443_v15  ;;  %vm757_vm12 = vcmask 793600  }
  0x18   : > { %396 = vperm.xlu1 %4514, %v4733_v0   ;;  %v245_v3 = vand.u32 127, %v227_v1  ;;  %v4738_v4 = vshrl.u32 %v227_v1, 7  ;;  %v4143_v30 = vld [vmem:[%s7438_s1 + $0x8] sm:$0xf]  ;;  %v4811_v31 = vld [vmem:[%s7438_s1 + $0xc] sm:$0xf] }
  0x19   : > { %p204_p11 = scmp.lt.s32.totalorder %s4627_s15, 1  ;;  %v4644_v32 = vmov 1983009808   ;;  %s4645_s23 = smov 126  }
  0x1a   : > { %7626 = vst [vmem:[#allocation5_spill] sm:$0xff] %v4738_v4  ;;  %v247_v5 = vadd.s32 256, %v245_v3  ;;  %v248_v6 = vadd.s32 384, %v245_v3  ;;  %v246_v7 = vadd.s32 128, %v245_v3  ;;  %v253_v11 = vand.u32 31, %v245_v3  ;;  %s4646_s26 = smov 96  }
  0x1b   : > { %v4743_v12 = vsub.s32 0, %v4738_v4  ;;  %v324_v14 = vsub.s32 4, %v4738_v4  ;;  %s205_s10 = scalar_select %p204_p11, %s4627_s15, 1  ;;  %v225_v33 = vunpack.c.l.s4 %v4644_v32  ;;  %v4861_v54 = vsub.s32 1, %v4738_v4 }
  0x1c   : > { %4515 = vset.pattern.permute.xlu1 %v7447_v8  ;;  %v267_v9 = vand.u32 31, %v247_v5  ;;  %v274_v10 = vand.u32 31, %v248_v6  ;;  %v260_v13 = vand.u32 31, %v246_v7  ;;  %vm297_vm2 = vcmp.ge.s32.totalorder %v253_v11, 1  ;;  %s4647_s30 = smov 1   ;;  %s4648_s8 = smov 94  }
  0x1d   : > { %430 = vperm.xlu1 %4515, %v4733_v0   ;;  %7627 = vst [vmem:[#allocation6_spill] sm:$0xff] %v4743_v12  ;;  %vm301_vm6 = vcmp.le.s32.totalorder %v253_v11, 30  ;;  %s4440_s11 = sshll.u32 %s205_s10, 3  ;;  %v226_v35 = vunpack.c.0.s8 %v225_v33  ;;  %v4848_v49 = vrot.slane %v355_v45, %v4743_v12  ;;  %7643 = vst [vmem:[#allocation22_spill] sm:$0xff] %v4861_v54  ;;  %s4651_s18 = smov 65  }
  0x1e   : > { %vm299_vm0 = vcmp.ge.s32.totalorder %v267_v9, 1  ;;  %vm300_vm1 = vcmp.ge.s32.totalorder %v274_v10, 1  ;;  %vm298_vm4 = vcmp.ge.s32.totalorder %v260_v13, 1  ;;  %vm302_vm7 = vcmp.le.s32.totalorder %v260_v13, 30  ;;  %s208_s21 = scalar_lea.vmem %s7437_s0, %s4440_s11  ;;  %s4650_s11 = smov 33  }
  0x1f   : > { %vm315_vm3 = vmpackc.low %vm300_vm1, %vm299_vm0  ;;  %vm303_vm9 = vcmp.le.s32.totalorder %v267_v9, 30  ;;  %vm304_vm10 = vcmp.le.s32.totalorder %v274_v10, 30  ;;  %v221_v37 = vld [vmem:[%s208_s21] sm:$0xff]  ;;  %v229_v38 = vsub.s32 %v226_v35, %v4738_v4  ;;  %7641 = vst [vmem:[#allocation20_spill] sm:$0xff] %v4848_v49  ;;  %v4898_v9 = vsub.s32 2, %v4738_v4  ;;  %s201_s19 = sand.u32 1, %s4619_s13  }
  0x20   : > { %v317_v16 = vsel %vm315_vm3, 65537, %v7443_v15  ;;  %vm314_vm5 = vmpackc.low %vm298_vm4, %vm297_vm2  ;;  %v223_v39 = vcombine.high %v221_v37, %v221_v37  ;;  %v4901_v10 = vrot.slane %v355_v45, %v4861_v54  ;;  %vm544_vm0 = vcmask 1039360   ;;  %s4139_s21 = sshll.u32 %s201_s19, 6 }
  0x21   : > { %v4748_v17 = vrot.slane %v317_v16, %v4743_v12  ;;  %v316_v18 = vsel %vm314_vm5, 65537, %v7443_v15  ;;  %4516 = vset.pattern.permute.xlu1 %v7443_v15  ;;  %v4757_v20 = vrot.slane %v317_v16, %v324_v14  ;;  %vm729_vm8 = vmpackc.low %vm302_vm7, %vm301_vm6  ;;  %v4827_v41 = vrot.slane %v221_v37, %v229_v38  ;;  %s6008_s27 = scalar_lea.vmem [#allocation2], %s4139_s21  ;;  %s4653_s21 = smov [#allocation2]  }
  0x22   : > { %v4753_v19 = vrot.slane %v316_v18, %v4743_v12  ;;  %v4761_v21 = vrot.slane %v316_v18, %v324_v14  ;;  %v731_v23 = vsel %vm729_vm8, 65537, %v7443_v15  ;;  %vm730_vm11 = vmpackc.low %vm304_vm10, %vm303_vm9  ;;  %v4829_v42 = vrot.slane %v223_v39, %v229_v38  ;;  %7649 = vst [vmem:[#allocation28_spill] sm:$0xff] %v4901_v10 }
  0x23   : > { %7628 = vst [vmem:[#allocation7_spill] sm:$0xff] %v4748_v17  ;;  %338 = vrot.lane.b32.xlu1 %v4748_v17, %s4640_s28  ;;  %7630 = vst [vmem:[#allocation9_spill] sm:$0xff] %v4757_v20  ;;  %v4771_v24 = vrot.slane %v731_v23, %v324_v14  ;;  %v732_v25 = vsel %vm730_vm11, 65537, %v7443_v15  ;;  %v4783_v28 = vrot.slane %v731_v23, %v4743_v12  ;;  %v4832_v43 = vunpack.c.l.bf16 %v4827_v41 }
  0x24   : > { %7629 = vst [vmem:[#allocation8_spill] sm:$0xff] %v4753_v19  ;;  %334 = vrot.lane.b32.xlu0 %v4753_v19, %s4640_s28  ;;  %7631 = vst [vmem:[#allocation10_spill] sm:$0xff] %v4761_v21  ;;  %v4777_v26 = vrot.slane %v732_v25, %v324_v14  ;;  %v4790_v29 = vrot.slane %v732_v25, %v4743_v12  ;;  %v4839_v46 = vcombine.high %v4827_v41, %v4827_v41  ;;  %vm1381_vm6 = vcmask 7168  }
  0x25   : > { %7632 = vst [vmem:[#allocation11_spill] sm:$0xff] %v4771_v24  ;;  %7634 = vst [vmem:[#allocation13_spill] sm:$0xff] %v4783_v28  ;;  %v4845_v48 = vcombine.high %v4829_v42, %v4829_v42  ;;  %v4852_v50 = vrot.slane %v4832_v43, %v4743_v12  ;;  %v4858_v52 = vunpack.c.l.bf16 %v4829_v42  ;;  %v4909_v18 = vrot.slane %v355_v45, %v4898_v9 }
  0x26   : > { %7633 = vst [vmem:[#allocation12_spill] sm:$0xff] %v4777_v26  ;;  %7635 = vst [vmem:[#allocation14_spill] sm:$0xff] %v4790_v29  ;;  %v4855_v51 = vunpack.c.l.bf16 %v4839_v46  ;;  %v4913_v23 = vrot.slane %v4832_v43, %v4861_v54  ;;  %vm342_vm11 = vcmask 777216  }
  0x27   : > { %340 = vrot.lane.b32.xlu1 %v4757_v20, %s4640_s28  ;;  %7636 = vst [vmem:[#allocation15_spill] sm:$0xff] %v4827_v41  ;;  %7637 = vst [vmem:[#allocation16_spill] sm:$0xff] %v4829_v42  ;;  %v4866_v56 = vunpack.c.l.bf16 %v4845_v48  ;;  %v4876_v60 = vrot.slane %v4858_v52, %v4743_v12  ;;  %v4927_v35 = vrot.slane %v4858_v52, %v4861_v54 }
  0x28   : > { %336 = vrot.lane.b32.xlu0 %v4761_v21, %s4640_s28  ;;  %7638 = vst [vmem:[#allocation17_spill] sm:$0xff] %v4839_v46  ;;  %7640 = vst [vmem:[#allocation19_spill] sm:$0xff] %v4845_v48  ;;  %v4872_v59 = vrot.slane %v4855_v51, %v4743_v12  ;;  %v4882_v61 = vrot.slane %v4855_v51, %v4861_v54 }
  0x29   : > { %7642 = vst [vmem:[#allocation21_spill] sm:$0xff] %v4852_v50  ;;  %7645 = vst [vmem:[#allocation24_spill] sm:$0xff] %v4876_v60  ;;  %v4888_v5 = vrot.slane %v4866_v56, %v4743_v12  ;;  %v4895_v7 = vrot.slane %v4866_v56, %v4861_v54  ;;  %v4936_v39 = vrot.slane %v4866_v56, %v4898_v9 }
  0x2a   : > { %7644 = vst [vmem:[#allocation23_spill] sm:$0xff] %v4872_v59  ;;  %7646 = vst [vmem:[#allocation25_spill] sm:$0xff] %v4882_v61 }
  0x2b   : > { %505 = vperm.xlu1 %4516, %v4142_v22   ;;  %7647 = vst [vmem:[#allocation26_spill] sm:$0xff] %v4888_v5  ;;  %7648 = vst [vmem:[#allocation27_spill] sm:$0xff] %v4895_v7 }
  0x2c   : > { %560 = vperm.xlu0 %4517, %v4142_v22   ;;  %7650 = vst [vmem:[#allocation29_spill] sm:$0xff] %v4913_v23  ;;  %7652 = vst [vmem:[#allocation31_spill] sm:$0xff] %v4927_v35 }
  0x2d   : > { %7653 = vst [vmem:[#allocation32_spill] sm:$0xff] %v4936_v39 }
  0x2f   : > { %4518 = vset.pattern.permute.xlu1 %v7447_v8 }
  0x30   : > { %614 = vperm.xlu1 %4518, %v4142_v22   ;;  %751 = vrot.lane.b32.xlu0 %v4771_v24, %s4641_s4 }
  0x34   : > { %4519 = vset.pattern.permute.xlu1 %v7445_v27  ;;  %755 = vrot.lane.b32.xlu0 %v4777_v26, %s4641_s4 }
  0x35   : > { %668 = vperm.xlu1 %4519, %v4142_v22  }
  0x38   : > { %995 = vrot.lane.b32.xlu0 %v4761_v21, %s4643_s5 }
  0x39   : > { %749 = vrot.lane.b32.xlu1 %v4783_v28, %s4641_s4 }
  0x3a   : > { %4520 = vset.pattern.permute.xlu1 %v7443_v15 }
  0x3c   : > { %999 = vrot.lane.b32.xlu0 %v4757_v20, %s4643_s5 }
  0x3d   : > { %753 = vrot.lane.b32.xlu1 %v4790_v29, %s4641_s4 }
  0x41   : > { %777 = vperm.xlu1 %4520, %v4143_v30  }
  0x45   : > { %4521 = vset.pattern.permute.xlu1 %v7441_v2 }
  0x46   : > { %832 = vperm.xlu1 %4521, %v4143_v30  }
  0x4a   : > { %4522 = vset.pattern.permute.xlu1 %v7447_v8 }
  0x4b   : > { %886 = vperm.xlu1 %4522, %v4143_v30  }
  0x4f   : > { %4523 = vset.pattern.permute.xlu1 %v7445_v27 }
  0x50   : > { %940 = vperm.xlu1 %4523, %v4143_v30   ;;  %v4920_v30 = vrot.slane %v4855_v51, %v4898_v9 }
  0x52   : > { %7651 = vst [vmem:[#allocation30_spill] sm:$0xff] %v4920_v30 }
  0x54   : > { %993 = vrot.lane.b32.xlu1 %v4753_v19, %s4643_s5 }
  0x55   : > { %4524 = vset.pattern.permute.xlu1 %v7443_v15 }
  0x58   : > { %997 = vrot.lane.b32.xlu1 %v4748_v17, %s4643_s5 }
  0x5c   : > { %1021 = vperm.xlu1 %4524, %v4811_v31  }
  0x60   : > { %4525 = vset.pattern.permute.xlu1 %v7441_v2 }
  0x96   : > { %v4834_v44 = vpop.permute.xlu0 %334 }
  0x97   : > { %v4817_v34 = vpop.permute.xlu1 %396 }
  0x9a   : > { %v4863_v55 = vpop.permute.xlu0 %336 }
  0x9c   : > { %v4822_v36 = vpop.permute.xlu1 %430 }
  0xa0   : > { %v4825_v40 = vpop.permute.xlu1 %338 }
  0xa4   : > { %v4841_v47 = vpop.permute.xlu1 %340 }
  0xa5   : > { %7639 = vst [vmem:[#allocation18_spill] sm:$0xff] %v4841_v47 }
  0xaa   : > { %v506_v53 = vpop.permute.xlu1 %505 }
  0xab   : > { %v524_v57 = vmul.f32 %v506_v53, %v4848_v49  ;;  %v525_v58 = vmul.f32 %v4852_v50, %v506_v53  ;;  %v561_v63 = vpop.permute.xlu0 %560  ;;  %v526_v1 = vmul.f32 %v4872_v59, %v506_v53  ;;  %v527_v3 = vmul.f32 %v4876_v60, %v506_v53 }
  0xac   : > { %v581_v6 = vmul.f32 %v4882_v61, %v561_v63  ;;  %v528_v13 = vmul.f32 %v4888_v5, %v506_v53  ;;  %v583_v14 = vmul.f32 %v4895_v7, %v561_v63  ;;  %v579_v16 = vmul.f32 %v561_v63, %v4901_v10 }
  0xad   : > { %534 = vrot.lane.b32.xlu1 %v524_v57, %s4643_s5  ;;  %536 = vrot.lane.b32.xlu0 %v525_v58, %s4643_s5  ;;  %v580_v33 = vmul.f32 %v4913_v23, %v561_v63  ;;  %v4940_v53 = vrot.slane %v4832_v43, %v4898_v9  ;;  %v4943_v57 = vsub.s32 3, %v4738_v4 }
  0xaf   : > { %v615_v62 = vpop.permute.xlu1 %614  ;;  %v4929_v37 = vpop.permute.xlu0 %751  ;;  %7654 = vst [vmem:[#allocation33_spill] sm:$0xff] %v4940_v53  ;;  %v4992_v2 = vrot.slane %v4858_v52, %v4943_v57 }
  0xb0   : > { %v633_v25 = vmul.f32 %v615_v62, %v4909_v18  ;;  %v635_v38 = vmul.f32 %v4920_v30, %v615_v62 }
  0xb1   : > { %538 = vrot.lane.b32.xlu1 %v526_v1, %s4643_s5  ;;  %540 = vrot.lane.b32.xlu0 %v527_v3, %s4643_s5  ;;  %v582_v1 = vmul.f32 %v4927_v35, %v561_v63  ;;  %v637_v3 = vmul.f32 %v4936_v39, %v615_v62  ;;  %7660 = vst [vmem:[#allocation39_spill] sm:$0xff] %v4992_v2 }
  0xb4   : > { %v669_v11 = vpop.permute.xlu1 %668 }
  0xb5   : > { %593 = vrot.lane.b32.xlu0 %v581_v6, %s4643_s5  ;;  %542 = vrot.lane.b32.xlu1 %v528_v13, %s4643_s5  ;;  %v634_v6 = vmul.f32 %v4940_v53, %v615_v62  ;;  %v4953_v13 = vrot.slane %v355_v45, %v4943_v57 }
  0xb7   : > { %7655 = vst [vmem:[#allocation34_spill] sm:$0xff] %v4953_v13 }
  0xb8   : > { %v750_v22 = vpop.permute.xlu1 %749 }
  0xb9   : > { %597 = vrot.lane.b32.xlu0 %v583_v14, %s4643_s5  ;;  %589 = vrot.lane.b32.xlu1 %v579_v16, %s4643_s5  ;;  %v758_v14 = vsel %vm757_vm12, %v750_v22, %v4929_v37  ;;  %v756_v16 = vpop.permute.xlu0 %755  ;;  %v4971_v22 = vrot.slane %v4855_v51, %v4943_v57 }
  0xba   : > { %vm761_vm13 = vcmp.ne.s16.totalorder %v758_v14, 0  ;;  %vm764_vm15 = vcmp.ne.s16.totalorder %v756_v16, 0 }
  0xbb   : > { %7657 = vst [vmem:[#allocation36_spill] sm:$0xff] %v4971_v22  ;;  %v765_v14 = vsel %vm761_vm13, %v4827_v41, 0  ;;  %v689_v51 = vmul.f32 %v4971_v22, %v669_v11 }
  0xbc   : > { %v4922_v32 = vpop.permute.xlu1 %753 }
  0xbd   : > { %643 = vrot.lane.b32.xlu0 %v633_v25, %s4643_s5  ;;  %591 = vrot.lane.b32.xlu1 %v580_v33, %s4643_s5  ;;  %v4959_v25 = vrot.slane %v4858_v52, %v4898_v9  ;;  %v687_v33 = vmul.f32 %v669_v11, %v4953_v13  ;;  %v760_v45 = vsel %vm757_vm12, %v4922_v32, %v756_v16  ;;  %v996_v8 = vpop.permute.xlu0 %995 }
  0xbe   : > { %vm763_vm14 = vcmp.ne.s16.totalorder %v760_v45, 0 }
  0xbf   : > { %7656 = vst [vmem:[#allocation35_spill] sm:$0xff] %v4959_v25 }
  0xc0   : > { %v4945_v58 = vpop.permute.xlu1 %777 }
  0xc1   : > { %647 = vrot.lane.b32.xlu0 %v635_v38, %s4643_s5  ;;  %595 = vrot.lane.b32.xlu1 %v582_v1, %s4643_s5  ;;  %v636_v38 = vmul.f32 %v4959_v25, %v615_v62  ;;  %v4975_v1 = vrot.slane %v4832_v43, %v4943_v57  ;;  %v4984_v62 = vrot.slane %v4866_v56, %v4943_v57  ;;  %v1000_v21 = vpop.permute.xlu0 %999 }
  0xc2   : > { %v796_v52 = vmul.f32 %v4945_v58, %v4848_v49  ;;  %vm1008_vm5 = vcmp.ne.s16.totalorder %v1000_v21, 0 }
  0xc3   : > { %7658 = vst [vmem:[#allocation37_spill] sm:$0xff] %v4975_v1  ;;  %7659 = vst [vmem:[#allocation38_spill] sm:$0xff] %v4984_v62  ;;  %v688_v43 = vmul.f32 %v4975_v1, %v669_v11 }
  0xc5   : > { %v4961_v63 = vpop.permute.xlu1 %832  ;;  %651 = vrot.lane.b32.xlu0 %v637_v3, %s4643_s5  ;;  %645 = vrot.lane.b32.xlu1 %v634_v6, %s4643_s5  ;;  %v4986_v6 = vunpack.c.l.bf16 %v765_v14  ;;  %v690_v14 = vmul.f32 %v4992_v2, %v669_v11 }
  0xc7   : > { %v783_v15 = vrot.slane %v4986_v6, %v4743_v12 }
  0xc9   : > { %697 = vrot.lane.b32.xlu0 %v687_v33, %s4643_s5  ;;  %649 = vrot.lane.b32.xlu1 %v636_v38, %s4643_s5  ;;  %v767_v33 = vsel %vm763_vm14, %v4829_v42, 0  ;;  %v691_v38 = vmul.f32 %v4984_v62, %v669_v11  ;;  %v851_v11 = vmul.f32 %v4961_v63, %v4901_v10  ;;  %vm816_vm14 = vcmask 1031168  }
  0xca   : > { %v4980_v3 = vpop.permute.xlu1 %886  ;;  %v4999_v56 = vunpack.c.l.bf16 %v767_v33 }
  0xcc   : > { %v791_v33 = vrot.slane %v4999_v56, %v4743_v12 }
  0xcd   : > { %701 = vrot.lane.b32.xlu0 %v689_v51, %s4643_s5  ;;  %699 = vrot.lane.b32.xlu1 %v688_v43, %s4643_s5  ;;  %v797_v43 = vmul.f32 %v783_v15, %v4945_v58  ;;  %v905_v15 = vmul.f32 %v4980_v3, %v4909_v18 }
  0xcf   : > { %v4997_v45 = vpop.permute.xlu1 %940 }
  0xd0   : > { %v959_v16 = vmul.f32 %v4997_v45, %v4953_v13 }
  0xd1   : > { %705 = vrot.lane.b32.xlu0 %v691_v38, %s4643_s5  ;;  %703 = vrot.lane.b32.xlu1 %v690_v14, %s4643_s5  ;;  %v799_v38 = vmul.f32 %v791_v33, %v4945_v58  ;;  %v838_v14 = vrot.slane %v4986_v6, %v4861_v54  ;;  %v768_v33 = vsel %vm764_vm15, %v4845_v48, 0  ;;  %vm1060_vm15 = vcmask 785408  }
  0xd3   : > { %v994_v51 = vpop.permute.xlu1 %993 }
  0xd5   : > { %806 = vrot.lane.b32.xlu0 %v796_v52, %s4645_s23  ;;  %808 = vrot.lane.b32.xlu1 %v797_v43, %s4645_s23  ;;  %v852_v52 = vmul.f32 %v838_v14, %v4961_v63  ;;  %v846_v43 = vrot.slane %v4999_v56, %v4861_v54 }
  0xd7   : > { %v5019_v27 = vpop.permute.xlu1 %997  ;;  %v854_v20 = vmul.f32 %v846_v43, %v4961_v63  ;;  %v759_v43 = vsel %vm757_vm12, %v4929_v37, %v4922_v32 }
  0xd8   : > { %vm762_vm2 = vcmp.ne.s16.totalorder %v759_v43, 0 }
  0xd9   : > { %861 = vrot.lane.b32.xlu0 %v851_v11, %s4645_s23  ;;  %812 = vrot.lane.b32.xlu1 %v799_v38, %s4645_s23  ;;  %v774_v38 = vunpack.c.l.bf16 %v768_v33 }
  0xdb   : > { %v5033_v11 = vpop.permute.xlu1 %1021  ;;  %v795_v33 = vrot.slane %v774_v38, %v4743_v12  ;;  %v850_v19 = vrot.slane %v774_v38, %v4861_v54  ;;  %v904_v37 = vrot.slane %v774_v38, %v4898_v9 }
  0xdc   : > { %v1040_v14 = vmul.f32 %v5033_v11, %v4848_v49 }
  0xdd   : > { %915 = vrot.lane.b32.xlu0 %v905_v15, %s4645_s23  ;;  %863 = vrot.lane.b32.xlu1 %v852_v52, %s4645_s23  ;;  %v892_v15 = vrot.slane %v4986_v6, %v4898_v9  ;;  %v1002_v52 = vsel %vm544_vm0, %v994_v51, %v996_v8  ;;  %v1004_v51 = vsel %vm544_vm0, %v5019_v27, %v1000_v21 }
  0xde   : > { %vm1005_vm1 = vcmp.ne.s16.totalorder %v1002_v52, 0  ;;  %vm1007_vm3 = vcmp.ne.s16.totalorder %v1004_v51, 0  ;;  %v954_v51 = vrot.slane %v4999_v56, %v4943_v57 }
  0xdf   : > { %v906_v17 = vmul.f32 %v892_v15, %v4980_v3  ;;  %v1009_v32 = vsel %vm1005_vm1, %v4827_v41, 0 }
  0xe0   : > { %v5064_v52 = vunpack.c.l.bf16 %v1009_v32  ;;  %v909_v32 = vmul.f32 %v904_v37, %v4980_v3 }
  0xe1   : > { %969 = vrot.lane.b32.xlu0 %v959_v16, %s4645_s23  ;;  %867 = vrot.lane.b32.xlu1 %v854_v20, %s4645_s23  ;;  %v900_v20 = vrot.slane %v4999_v56, %v4898_v9  ;;  %v800_v16 = vmul.f32 %v795_v33, %v4945_v58  ;;  %v855_v33 = vmul.f32 %v850_v19, %v4961_v63 }
  0xe2   : > { %v962_v19 = vmul.f32 %v954_v51, %v4997_v45 }
  0xe3   : > { %v908_v15 = vmul.f32 %v900_v20, %v4980_v3  ;;  %v1011_v20 = vsel %vm1007_vm3, %v4829_v42, 0 }
  0xe5   : > { %1050 = vrot.lane.b32.xlu0 %v1040_v14, %s4646_s26  ;;  %917 = vrot.lane.b32.xlu1 %v906_v17, %s4645_s23  ;;  %v946_v17 = vrot.slane %v4986_v6, %v4943_v57  ;;  %v766_v14 = vsel %vm762_vm2, %v4839_v46, 0  ;;  %vm1440_vm2 = vcmask 769024  }
  0xe6   : > { %v772_v6 = vunpack.c.l.bf16 %v766_v14  ;;  %v1003_v14 = vsel %vm544_vm0, %v996_v8, %v5019_v27 }
  0xe7   : > { %v960_v43 = vmul.f32 %v946_v17, %v4997_v45  ;;  %v5080_v17 = vrot.slane %v5064_v52, %v4743_v12  ;;  %vm1006_vm4 = vcmp.ne.s16.totalorder %v1003_v14, 0 }
  0xe8   : > { %v842_v51 = vrot.slane %v772_v6, %v4861_v54  ;;  %v896_v8 = vrot.slane %v772_v6, %v4898_v9 }
  0xe9   : > { %814 = vrot.lane.b32.xlu0 %v800_v16, %s4645_s23  ;;  %921 = vrot.lane.b32.xlu1 %v908_v15, %s4645_s23  ;;  %v958_v16 = vrot.slane %v774_v38, %v4943_v57  ;;  %v5074_v15 = vunpack.c.l.bf16 %v1011_v20  ;;  %7661 = vst [vmem:[#allocation40_spill] sm:$0xff] %v5080_v17  ;;  %v1041_v56 = vmul.f32 %v5080_v17, %v5033_v11 }
  0xea   : > { %v787_v38 = vrot.slane %v772_v6, %v4743_v12 }
  0xeb   : > { %v5090_v37 = vrot.slane %v5074_v15, %v4743_v12 }
  0xed   : > { %869 = vrot.lane.b32.xlu0 %v855_v33, %s4645_s23  ;;  %971 = vrot.lane.b32.xlu1 %v960_v43, %s4645_s23  ;;  %v963_v33 = vmul.f32 %v958_v16, %v4997_v45  ;;  %7662 = vst [vmem:[#allocation41_spill] sm:$0xff] %v5090_v37  ;;  %v798_v43 = vmul.f32 %v787_v38, %v4945_v58 }
  0xee   : > { %v1043_v20 = vmul.f32 %v5090_v37, %v5033_v11  ;;  %v853_v16 = vmul.f32 %v842_v51, %v4961_v63  ;;  %v907_v58 = vmul.f32 %v896_v8, %v4980_v3  ;;  %v7663_v63 = vmov 2  }
  0xf1   : > { %923 = vrot.lane.b32.xlu0 %v909_v32, %s4645_s23  ;;  %975 = vrot.lane.b32.xlu1 %v962_v19, %s4645_s23  ;;  %v1010_v32 = vsel %vm1006_vm4, %v4839_v46, 0  ;;  %v1012_v19 = vsel %vm1008_vm5, %v4845_v48, 0  ;;  %vm1675_vm4 = vcmask 253952   ;;  %vm1676_vm5 = vsmask.f32 256 }
  0xf2   : > { %v5107_v27 = vunpack.c.l.bf16 %v1010_v32 }
  0xf4   : > { %v5119_v38 = vrot.slane %v5107_v27, %v4743_v12 }
  0xf5   : > { %977 = vrot.lane.b32.xlu0 %v963_v33, %s4645_s23  ;;  %1052 = vrot.lane.b32.xlu1 %v1041_v56, %s4646_s26  ;;  %v950_v33 = vrot.slane %v772_v6, %v4943_v57  ;;  %v5114_v56 = vunpack.c.l.bf16 %v1012_v19 }
  0xf6   : > { %7664 = vst [vmem:[#allocation42_spill] sm:$0xff] %v5119_v38  ;;  %v1042_v3 = vmul.f32 %v5119_v38, %v5033_v11 }
  0xf7   : > { %v961_v21 = vmul.f32 %v950_v33, %v4997_v45  ;;  %v5126_v14 = vrot.slane %v5114_v56, %v4743_v12 }
  0xf9   : > { %810 = vrot.lane.b32.xlu0 %v798_v43, %s4645_s23  ;;  %1056 = vrot.lane.b32.xlu1 %v1043_v20, %s4646_s26  ;;  %7665 = vst [vmem:[#allocation43_spill] sm:$0xff] %v5126_v14  ;;  %v1044_v6 = vmul.f32 %v5126_v14, %v5033_v11 }
  0xfd   : > { %865 = vrot.lane.b32.xlu0 %v853_v16, %s4645_s23  ;;  %1076 = vperm.xlu1 %4525, %v4811_v31  }
 0x101   : > { %919 = vrot.lane.b32.xlu0 %v907_v58, %s4645_s23  ;;  %4526 = vset.pattern.permute.xlu1 %v7663_v63 }
 0x105   : > { %973 = vrot.lane.b32.xlu0 %v961_v21, %s4645_s23 }
 0x109   : > { %1054 = vrot.lane.b32.xlu0 %v1042_v3, %s4646_s26 }
 0x10d   : > { %1058 = vrot.lane.b32.xlu0 %v1044_v6, %s4646_s26 }
 0x11f   : > { %v5132_v45 = vpop.permute.xlu1 %534 }
 0x123   : > { %v5134_v43 = vpop.permute.xlu1 %538 }
 0x127   : > { %v5136_v20 = vpop.permute.xlu1 %542 }
 0x128   : > { %7666 = vst [vmem:[#allocation44_spill] sm:$0xff] %v5136_v20 }
 0x12b   : > { %v5138_v51 = vpop.permute.xlu1 %589 }
 0x12f   : > { %v5140_v16 = vpop.permute.xlu1 %591 }
 0x133   : > { %v5142_v32 = vpop.permute.xlu1 %595 }
 0x134   : > { %7667 = vst [vmem:[#allocation45_spill] sm:$0xff] %v5142_v32 }
 0x137   : > { %v5144_v8 = vpop.permute.xlu1 %645 }
 0x13b   : > { %v5146_v58 = vpop.permute.xlu1 %649 }
 0x13c   : > { %7668 = vst [vmem:[#allocation46_spill] sm:$0xff] %v5146_v58 }
 0x13f   : > { %v5148_v19 = vpop.permute.xlu1 %699 }
 0x143   : > { %v5150_v11 = vpop.permute.xlu1 %703 }
 0x144   : > { %7669 = vst [vmem:[#allocation47_spill] sm:$0xff] %v5150_v11  ;;  %v5174_v11 = vrot.slane %v5064_v52, %v4861_v54 }
 0x146   : > { %7679 = vst [vmem:[#allocation57_spill] sm:$0xff] %v5174_v11 }
 0x147   : > { %v5152_v33 = vpop.permute.xlu1 %808 }
 0x14b   : > { %v5154_v21 = vpop.permute.xlu1 %812 }
 0x14c   : > { %7670 = vst [vmem:[#allocation48_spill] sm:$0xff] %v5154_v21 }
 0x14f   : > { %v5156_v3 = vpop.permute.xlu1 %863 }
 0x150   : > { %7671 = vst [vmem:[#allocation49_spill] sm:$0xff] %v5156_v3 }
 0x153   : > { %v5158_v6 = vpop.permute.xlu1 %867 }
 0x154   : > { %7672 = vst [vmem:[#allocation50_spill] sm:$0xff] %v5158_v6 }
 0x157   : > { %v5160_v17 = vpop.permute.xlu1 %917 }
 0x158   : > { %7673 = vst [vmem:[#allocation51_spill] sm:$0xff] %v5160_v17 }
 0x15b   : > { %v5162_v14 = vpop.permute.xlu1 %921 }
 0x15c   : > { %7674 = vst [vmem:[#allocation52_spill] sm:$0xff] %v5162_v14 }
 0x15f   : > { %v5164_v37 = vpop.permute.xlu1 %971 }
 0x160   : > { %7675 = vst [vmem:[#allocation53_spill] sm:$0xff] %v5164_v37 }
 0x163   : > { %v5166_v38 = vpop.permute.xlu1 %975 }
 0x164   : > { %7676 = vst [vmem:[#allocation54_spill] sm:$0xff] %v5166_v38  ;;  %v5182_v38 = vrot.slane %v5074_v15, %v4861_v54 }
 0x166   : > { %7680 = vst [vmem:[#allocation58_spill] sm:$0xff] %v5182_v38 }
 0x167   : > { %v5168_v4 = vpop.permute.xlu1 %1052 }
 0x168   : > { %7677 = vst [vmem:[#allocation55_spill] sm:$0xff] %v5168_v4 }
 0x16b   : > { %v5170_v20 = vpop.permute.xlu1 %1056 }
 0x16c   : > { %7678 = vst [vmem:[#allocation56_spill] sm:$0xff] %v5170_v20  ;;  %v5186_v20 = vrot.slane %v5107_v27, %v4861_v54 }
 0x16e   : > { %7681 = vst [vmem:[#allocation59_spill] sm:$0xff] %v5186_v20 }
 0x17c   : > { %v1077_v21 = vpop.permute.xlu1 %1076 }
 0x17d   : > { %v1096_v58 = vmul.f32 %v5174_v11, %v1077_v21  ;;  %v1095_v6 = vmul.f32 %v1077_v21, %v4901_v10  ;;  %v1098_v14 = vmul.f32 %v5182_v38, %v1077_v21  ;;  %v1097_v32 = vmul.f32 %v5186_v20, %v1077_v21 }
 0x17e   : > { %v7683_v11 = vmov 3  }
 0x17f   : > { %1107 = vrot.lane.b32.xlu1 %v1096_v58, %s4646_s26  ;;  %1105 = vrot.lane.b32.xlu0 %v1095_v6, %s4646_s26  ;;  %v5194_v58 = vrot.slane %v5114_v56, %v4861_v54 }
 0x181   : > { %7682 = vst [vmem:[#allocation60_spill] sm:$0xff] %v5194_v58  ;;  %v1099_v6 = vmul.f32 %v5194_v58, %v1077_v21  ;;  %v5214_v21 = vrot.slane %v5074_v15, %v4898_v9 }
 0x183   : > { %1111 = vrot.lane.b32.xlu1 %v1098_v14, %s4646_s26  ;;  %1109 = vrot.lane.b32.xlu0 %v1097_v32, %s4646_s26  ;;  %v5206_v14 = vrot.slane %v5064_v52, %v4898_v9  ;;  %7687 = vst [vmem:[#allocation64_spill] sm:$0xff] %v5214_v21 }
 0x185   : > { %7686 = vst [vmem:[#allocation63_spill] sm:$0xff] %v5206_v14 }
 0x187   : > { %1130 = vperm.xlu1 %4526, %v4811_v31   ;;  %1113 = vrot.lane.b32.xlu0 %v1099_v6, %s4646_s26  ;;  %v5218_v6 = vrot.slane %v5107_v27, %v4898_v9 }
 0x189   : > { %7688 = vst [vmem:[#allocation65_spill] sm:$0xff] %v5218_v6 }
 0x18b   : > { %4527 = vset.pattern.permute.xlu1 %v7683_v11 }
 0x1f1   : > { %v5200_v4 = vpop.permute.xlu1 %1107 }
 0x1f2   : > { %7684 = vst [vmem:[#allocation61_spill] sm:$0xff] %v5200_v4 }
 0x1f5   : > { %v5202_v38 = vpop.permute.xlu1 %1111 }
 0x1f6   : > { %7685 = vst [vmem:[#allocation62_spill] sm:$0xff] %v5202_v38 }
 0x206   : > { %v1131_v32 = vpop.permute.xlu1 %1130 }
 0x207   : > { %v1150_v20 = vmul.f32 %v5206_v14, %v1131_v32  ;;  %v1149_v47 = vmul.f32 %v1131_v32, %v4909_v18  ;;  %v1152_v58 = vmul.f32 %v5214_v21, %v1131_v32  ;;  %v1151_v38 = vmul.f32 %v5218_v6, %v1131_v32 }
 0x208   : > { %v7690_v14 = vmov 0  }
 0x209   : > { %1161 = vrot.lane.b32.xlu1 %v1150_v20, %s4646_s26  ;;  %1159 = vrot.lane.b32.xlu0 %v1149_v47, %s4646_s26  ;;  %v5226_v20 = vrot.slane %v5114_v56, %v4898_v9 }
 0x20b   : > { %7689 = vst [vmem:[#allocation66_spill] sm:$0xff] %v5226_v20  ;;  %v1153_v47 = vmul.f32 %v5226_v20, %v1131_v32  ;;  %v5250_v32 = vrot.slane %v5107_v27, %v4943_v57  ;;  %v5269_v27 = vpop.permute.xlu0 %536 }
 0x20d   : > { %1165 = vrot.lane.b32.xlu1 %v1152_v58, %s4646_s26  ;;  %1163 = vrot.lane.b32.xlu0 %v1151_v38, %s4646_s26  ;;  %v5238_v58 = vrot.slane %v5064_v52, %v4943_v57  ;;  %7695 = vst [vmem:[#allocation71_spill] sm:$0xff] %v5250_v32 }
 0x20f   : > { %7693 = vst [vmem:[#allocation69_spill] sm:$0xff] %v5238_v58 }
 0x211   : > { %1184 = vperm.xlu1 %4527, %v4811_v31   ;;  %1167 = vrot.lane.b32.xlu0 %v1153_v47, %s4646_s26  ;;  %v5246_v31 = vrot.slane %v5074_v15, %v4943_v57  ;;  %v5263_v15 = vld [vmem:[%s7438_s1 + $0x10] sm:$0xf] }
 0x213   : > { %7694 = vst [vmem:[#allocation70_spill] sm:$0xff] %v5246_v31 }
 0x215   : > { %4528 = vset.pattern.permute.xlu1 %v7690_v14 }
 0x27b   : > { %v5232_v4 = vpop.permute.xlu1 %1161 }
 0x27c   : > { %7691 = vst [vmem:[#allocation67_spill] sm:$0xff] %v5232_v4 }
 0x27f   : > { %v5234_v21 = vpop.permute.xlu1 %1165 }
 0x280   : > { %7692 = vst [vmem:[#allocation68_spill] sm:$0xff] %v5234_v21 }
 0x290   : > { %v1185_v38 = vpop.permute.xlu1 %1184 }
 0x291   : > { %v1204_v6 = vmul.f32 %v5238_v58, %v1185_v38  ;;  %v1203_v37 = vmul.f32 %v1185_v38, %v4953_v13  ;;  %v1206_v52 = vmul.f32 %v5246_v31, %v1185_v38  ;;  %v1205_v47 = vmul.f32 %v5250_v32, %v1185_v38 }
 0x293   : > { %1215 = vrot.lane.b32.xlu1 %v1204_v6, %s4646_s26  ;;  %1213 = vrot.lane.b32.xlu0 %v1203_v37, %s4646_s26  ;;  %v5258_v6 = vrot.slane %v5114_v56, %v4943_v57 }
 0x295   : > { %7696 = vst [vmem:[#allocation72_spill] sm:$0xff] %v5258_v6  ;;  %v1207_v37 = vmul.f32 %v5258_v6, %v1185_v38 }
 0x297   : > { %1219 = vrot.lane.b32.xlu1 %v1206_v52, %s4646_s26  ;;  %1217 = vrot.lane.b32.xlu0 %v1205_v47, %s4646_s26  ;;  %v5271_v52 = vpop.permute.xlu0 %540 }
 0x298   : > { %7697 = vst [vmem:[#allocation73_spill] sm:$0xff] %v5271_v52 }
 0x29b   : > { %1241 = vperm.xlu1 %4528, %v5263_v15   ;;  %1221 = vrot.lane.b32.xlu0 %v1207_v37, %s4646_s26  ;;  %v5273_v47 = vpop.permute.xlu0 %593 }
 0x29f   : > { %4530 = vset.pattern.permute.xlu1 %v7663_v63  ;;  %v5275_v56 = vpop.permute.xlu0 %597 }
 0x2a0   : > { %7698 = vst [vmem:[#allocation74_spill] sm:$0xff] %v5275_v56 }
 0x2a3   : > { %v5277_v58 = vpop.permute.xlu0 %643 }
 0x2a7   : > { %v5279_v20 = vpop.permute.xlu0 %647 }
 0x2ab   : > { %v5281_v31 = vpop.permute.xlu0 %651 }
 0x2ac   : > { %7699 = vst [vmem:[#allocation75_spill] sm:$0xff] %v5281_v31 }
 0x2af   : > { %v5283_v38 = vpop.permute.xlu0 %697 }
 0x2b3   : > { %v5285_v6 = vpop.permute.xlu0 %701 }
 0x2b7   : > { %v5287_v37 = vpop.permute.xlu0 %705 }
 0x2b8   : > { %7700 = vst [vmem:[#allocation76_spill] sm:$0xff] %v5287_v37 }
 0x2bb   : > { %v5291_v21 = vpop.permute.xlu0 %806 }
 0x2bf   : > { %v5295_v52 = vpop.permute.xlu0 %861 }
 0x2c0   : > { %7703 = vst [vmem:[#allocation79_spill] sm:$0xff] %v5295_v52 }
 0x2c3   : > { %v5301_v31 = vpop.permute.xlu0 %915 }
 0x2c4   : > { %7704 = vst [vmem:[#allocation80_spill] sm:$0xff] %v5301_v31 }
 0x305   : > { %v5289_v32 = vpop.permute.xlu1 %1215 }
 0x306   : > { %7701 = vst [vmem:[#allocation77_spill] sm:$0xff] %v5289_v32 }
 0x309   : > { %v5293_v4 = vpop.permute.xlu1 %1219 }
 0x30a   : > { %7702 = vst [vmem:[#allocation78_spill] sm:$0xff] %v5293_v4  ;;  %v5307_v4 = vpop.permute.xlu0 %969 }
 0x30b   : > { %7705 = vst [vmem:[#allocation81_spill] sm:$0xff] %v5307_v4 }
 0x31a   : > { %v1242_v56 = vpop.permute.xlu1 %1241 }
 0x31b   : > { %v1245_v17 = vmul.f32 %v1242_v56, %v4872_v59  ;;  %v1244_v3 = vmul.f32 %v1242_v56, %v4852_v50  ;;  %v1247_v37 = vmul.f32 %v1242_v56, %v4888_v5  ;;  %v1246_v32 = vmul.f32 %v1242_v56, %v4876_v60  ;;  %v5311_v50 = vpop.permute.xlu0 %1050 }
 0x31c   : > { %7706 = vst [vmem:[#allocation82_spill] sm:$0xff] %v5311_v50 }
 0x31d   : > { %1254 = vrot.lane.b32.xlu1 %v1245_v17, %s4640_s28  ;;  %1252 = vrot.lane.b32.xlu0 %v1244_v3, %s4640_s28 }
 0x31f   : > { %v5314_v17 = vpop.permute.xlu0 %814 }
 0x320   : > { %7707 = vst [vmem:[#allocation83_spill] sm:$0xff] %v5314_v17 }
 0x321   : > { %1258 = vrot.lane.b32.xlu1 %v1247_v37, %s4640_s28  ;;  %1256 = vrot.lane.b32.xlu0 %v1246_v32, %s4640_s28 }
 0x323   : > { %v5316_v3 = vpop.permute.xlu0 %869 }
 0x324   : > { %7708 = vst [vmem:[#allocation84_spill] sm:$0xff] %v5316_v3 }
 0x325   : > { %1275 = vperm.xlu0 %4517, %v5263_v15  }
 0x327   : > { %v5318_v5 = vpop.permute.xlu0 %923 }
 0x328   : > { %7709 = vst [vmem:[#allocation85_spill] sm:$0xff] %v5318_v5 }
 0x329   : > { %4529 = vset.pattern.permute.xlu0 %v7683_v11 }
 0x32a   : > { %464 = vperm.xlu0 %4529, %v4733_v0  }
 0x32b   : > { %v5320_v56 = vpop.permute.xlu0 %977 }
 0x32c   : > { %7710 = vst [vmem:[#allocation86_spill] sm:$0xff] %v5320_v56 }
 0x32f   : > { %v5322_v37 = vpop.permute.xlu0 %810 }
 0x333   : > { %v5324_v32 = vpop.permute.xlu0 %865 }
 0x334   : > { %7711 = vst [vmem:[#allocation87_spill] sm:$0xff] %v5324_v32 }
 0x337   : > { %v5326_v60 = vpop.permute.xlu0 %919 }
 0x338   : > { %7712 = vst [vmem:[#allocation88_spill] sm:$0xff] %v5326_v60 }
 0x33b   : > { %v5328_v59 = vpop.permute.xlu0 %973 }
 0x33c   : > { %7713 = vst [vmem:[#allocation89_spill] sm:$0xff] %v5328_v59 }
 0x33f   : > { %v5330_v4 = vpop.permute.xlu0 %1054 }
 0x340   : > { %7714 = vst [vmem:[#allocation90_spill] sm:$0xff] %v5330_v4 }
 0x343   : > { %v5332_v50 = vpop.permute.xlu0 %1058 }
 0x344   : > { %7715 = vst [vmem:[#allocation91_spill] sm:$0xff] %v5332_v50 }
 0x347   : > { %v5334_v31 = vpop.permute.xlu0 %1105 }
 0x348   : > { %7716 = vst [vmem:[#allocation92_spill] sm:$0xff] %v5334_v31 }
 0x34b   : > { %v5336_v17 = vpop.permute.xlu0 %1109 }
 0x34c   : > { %7717 = vst [vmem:[#allocation93_spill] sm:$0xff] %v5336_v17 }
 0x34f   : > { %v5338_v3 = vpop.permute.xlu0 %1113 }
 0x350   : > { %7718 = vst [vmem:[#allocation94_spill] sm:$0xff] %v5338_v3 }
 0x353   : > { %v5340_v5 = vpop.permute.xlu0 %1159 }
 0x357   : > { %v5342_v56 = vpop.permute.xlu0 %1163 }
 0x35b   : > { %v5344_v52 = vpop.permute.xlu0 %1167 }
 0x35c   : > { %7719 = vst [vmem:[#allocation95_spill] sm:$0xff] %v5344_v52 }
 0x35f   : > { %v5346_v32 = vpop.permute.xlu0 %1213 }
 0x360   : > { %7720 = vst [vmem:[#allocation96_spill] sm:$0xff] %v5346_v32 }
 0x363   : > { %v5348_v60 = vpop.permute.xlu0 %1217 }
 0x367   : > { %v5350_v59 = vpop.permute.xlu0 %1221 }
 0x368   : > { %7721 = vst [vmem:[#allocation97_spill] sm:$0xff] %v5350_v59  ;;  %v7723_v59 = vmov 1  }
 0x38f   : > { %v5352_v4 = vpop.permute.xlu0 %1252 }
 0x393   : > { %v5354_v50 = vpop.permute.xlu0 %1256 }
 0x394   : > { %7722 = vst [vmem:[#allocation98_spill] sm:$0xff] %v5354_v50  ;;  %v5366_v50 = vpop.permute.xlu1 %1254 }
 0x3a4   : > { %v1276_v31 = vpop.permute.xlu0 %1275 }
 0x3a5   : > { %v1279_v17 = vmul.f32 %v1276_v31, %v4882_v61  ;;  %v1278_v3 = vmul.f32 %v1276_v31, %v4913_v23  ;;  %v1281_v52 = vmul.f32 %v1276_v31, %v4895_v7  ;;  %v1280_v32 = vmul.f32 %v1276_v31, %v4927_v35  ;;  %v5368_v61 = vpop.permute.xlu1 %1258 }
 0x3a6   : > { %7724 = vst [vmem:[#allocation99_spill] sm:$0xff] %v5368_v61 }
 0x3a7   : > { %1288 = vrot.lane.b32.xlu0 %v1279_v17, %s4640_s28  ;;  %1286 = vrot.lane.b32.xlu1 %v1278_v3, %s4640_s28 }
 0x3ab   : > { %1292 = vrot.lane.b32.xlu0 %v1281_v52, %s4640_s28  ;;  %1290 = vrot.lane.b32.xlu1 %v1280_v32, %s4640_s28 }
 0x3af   : > { %1308 = vperm.xlu1 %4530, %v5263_v15  }
 0x3b3   : > { %4532 = vset.pattern.permute.xlu1 %v7723_v59 }
 0x419   : > { %v5370_v23 = vpop.permute.xlu1 %1286 }
 0x41d   : > { %v5372_v17 = vpop.permute.xlu1 %1290 }
 0x41e   : > { %7725 = vst [vmem:[#allocation100_spill] sm:$0xff] %v5372_v17 }
 0x42e   : > { %v1309_v3 = vpop.permute.xlu1 %1308 }
 0x42f   : > { %v1312_v7 = vmul.f32 %v1309_v3, %v4920_v30  ;;  %v1311_v31 = vmul.f32 %v1309_v3, %v4940_v53  ;;  %v1314_v52 = vmul.f32 %v1309_v3, %v4936_v39  ;;  %v1313_v32 = vmul.f32 %v1309_v3, %v4959_v25  ;;  %v5385_v30 = vpop.permute.xlu0 %464 }
 0x431   : > { %1321 = vrot.lane.b32.xlu1 %v1312_v7, %s4640_s28  ;;  %1319 = vrot.lane.b32.xlu0 %v1311_v31, %s4640_s28 }
 0x433   : > { %v5387_v53 = vpop.permute.xlu0 %1288 }
 0x435   : > { %1325 = vrot.lane.b32.xlu1 %v1314_v52, %s4640_s28  ;;  %1323 = vrot.lane.b32.xlu0 %v1313_v32, %s4640_s28 }
 0x437   : > { %v5389_v7 = vpop.permute.xlu0 %1292 }
 0x438   : > { %7726 = vst [vmem:[#allocation101_spill] sm:$0xff] %v5389_v7 }
 0x439   : > { %1341 = vperm.xlu0 %4529, %v5263_v15  }
 0x43d   : > { %4531 = vset.pattern.permute.xlu0 %v7690_v14 }
 0x43e   : > { %362 = vperm.xlu0 %4531, %v4733_v0  }
 0x4a3   : > { %v5391_v31 = vpop.permute.xlu0 %1319 }
 0x4a7   : > { %v5393_v39 = vpop.permute.xlu0 %1323 }
 0x4a8   : > { %7727 = vst [vmem:[#allocation102_spill] sm:$0xff] %v5393_v39 }
 0x4b8   : > { %v1342_v3 = vpop.permute.xlu0 %1341 }
 0x4b9   : > { %v1346_v52 = vmul.f32 %v1342_v3, %v4992_v2  ;;  %v1344_v32 = vmul.f32 %v1342_v3, %v4975_v1  ;;  %v1345_v0 = vmul.f32 %v1342_v3, %v4971_v22  ;;  %v1347_v15 = vmul.f32 %v1342_v3, %v4984_v62  ;;  %v5418_v3 = vpop.permute.xlu1 %1321 }
 0x4bb   : > { %1356 = vrot.lane.b32.xlu0 %v1346_v52, %s4640_s28  ;;  %1352 = vrot.lane.b32.xlu1 %v1344_v32, %s4640_s28  ;;  %v5410_v52 = vld [vmem:[%s7438_s1 + $0x14] sm:$0xf] }
 0x4bd   : > { %v5420_v32 = vpop.permute.xlu1 %1325 }
 0x4be   : > { %7728 = vst [vmem:[#allocation103_spill] sm:$0xff] %v5420_v32 }
 0x4bf   : > { %1373 = vrot.lane.b32.xlu0 %v4783_v28, %s4647_s30  ;;  %1354 = vrot.lane.b32.xlu1 %v1345_v0, %s4640_s28  ;;  %v5422_v0 = vpop.permute.xlu0 %362 }
 0x4c3   : > { %1377 = vrot.lane.b32.xlu0 %v4790_v29, %s4647_s30  ;;  %1358 = vrot.lane.b32.xlu1 %v1347_v15, %s4640_s28 }
 0x4c7   : > { %1401 = vperm.xlu0 %4531, %v5410_v52   ;;  %1375 = vrot.lane.b32.xlu1 %v4771_v24, %s4647_s30 }
 0x4cb   : > { %1379 = vrot.lane.b32.xlu1 %v4777_v26, %s4647_s30  ;;  %4539 = vset.pattern.permute.xlu0 %v7723_v59 }
 0x52d   : > { %v5424_v15 = vpop.permute.xlu1 %1352  ;;  %v5426_v29 = vpop.permute.xlu0 %1356 }
 0x52e   : > { %7729 = vst [vmem:[#allocation104_spill] sm:$0xff] %v5426_v29 }
 0x531   : > { %v5428_v28 = vpop.permute.xlu1 %1354  ;;  %v1374_v62 = vpop.permute.xlu0 %1373 }
 0x532   : > { %vm1385_vm7 = vcmp.ne.s16.totalorder %v1374_v62, 0 }
 0x533   : > { %v1389_v35 = vsel %vm1385_vm7, %v4827_v41, 0  ;;  %vm6004_vm7 = vmand %vm1675_vm4, %vm1676_vm5 }
 0x534   : > { %v5437_v61 = vunpack.c.l.bf16 %v1389_v35 }
 0x535   : > { %v5430_v22 = vpop.permute.xlu1 %1358  ;;  %v1378_v24 = vpop.permute.xlu0 %1377 }
 0x536   : > { %7730 = vst [vmem:[#allocation105_spill] sm:$0xff] %v5430_v22 }
 0x539   : > { %v1376_v26 = vpop.permute.xlu1 %1375 }
 0x53a   : > { %v1383_v1 = vsel %vm1381_vm6, %v1376_v26, %v1378_v24  ;;  %v1382_v2 = vsel %vm1381_vm6, %v1374_v62, %v1376_v26  ;;  %v5448_v26 = vrot.slane %v5437_v61, %v4743_v12 }
 0x53b   : > { %vm1387_vm8 = vcmp.ne.s16.totalorder %v1383_v1, 0  ;;  %vm1386_vm9 = vcmp.ne.s16.totalorder %v1382_v2, 0 }
 0x53c   : > { %v1391_v32 = vsel %vm1387_vm8, %v4829_v42, 0  ;;  %v1390_v29 = vsel %vm1386_vm9, %v4839_v46, 0  ;;  %7732 = vst [vmem:[#allocation107_spill] sm:$0xff] %v5448_v26  ;;  %vm2702_vm8 = vcmask 252928  }
 0x53d   : > { %v1380_v25 = vpop.permute.xlu1 %1379  ;;  %v5439_v22 = vunpack.c.l.bf16 %v1391_v32  ;;  %v1396_v39 = vunpack.c.l.bf16 %v1390_v29 }
 0x53e   : > { %v1384_v7 = vsel %vm1381_vm6, %v1378_v24, %v1380_v25 }
 0x53f   : > { %vm1388_vm10 = vcmp.ne.s16.totalorder %v1384_v7, 0  ;;  %v5444_v1 = vrot.slane %v5439_v22, %v4743_v12  ;;  %v5456_v29 = vrot.slane %v1396_v39, %v4743_v12 }
 0x540   : > { %v1392_v2 = vsel %vm1388_vm10, %v4845_v48, 0 }
 0x541   : > { %7731 = vst [vmem:[#allocation106_spill] sm:$0xff] %v5444_v1  ;;  %v1398_v25 = vunpack.c.l.bf16 %v1392_v2  ;;  %7733 = vst [vmem:[#allocation108_spill] sm:$0xff] %v5456_v29 }
 0x546   : > { %v1402_v62 = vpop.permute.xlu0 %1401 }
 0x547   : > { %v1422_v24 = vmul.f32 %v5444_v1, %v1402_v62  ;;  %v1420_v35 = vmul.f32 %v5448_v26, %v1402_v62  ;;  %v1421_v7 = vmul.f32 %v5456_v29, %v1402_v62  ;;  %v1424_v32 = vmul.f32 %v1402_v62, %v4848_v49 }
 0x548   : > { %v5463_v1 = vrot.slane %v1398_v25, %v4743_v12  ;;  %v5487_v26 = vrot.slane %v1398_v25, %v4861_v54 }
 0x549   : > { %1434 = vrot.lane.b32.xlu0 %v1422_v24, %s4648_s8  ;;  %1430 = vrot.lane.b32.xlu1 %v1420_v35, %s4648_s8 }
 0x54a   : > { %7734 = vst [vmem:[#allocation109_spill] sm:$0xff] %v5463_v1  ;;  %v1423_v2 = vmul.f32 %v5463_v1, %v1402_v62  ;;  %7738 = vst [vmem:[#allocation113_spill] sm:$0xff] %v5487_v26 }
 0x54d   : > { %1432 = vrot.lane.b32.xlu1 %v1421_v7, %s4648_s8  ;;  %1438 = vrot.lane.b32.xlu0 %v1424_v32, %s4648_s8  ;;  %v5476_v7 = vrot.slane %v1396_v39, %v4861_v54  ;;  %v5480_v32 = vrot.slane %v5437_v61, %v4861_v54 }
 0x54f   : > { %7736 = vst [vmem:[#allocation111_spill] sm:$0xff] %v5476_v7  ;;  %7737 = vst [vmem:[#allocation112_spill] sm:$0xff] %v5480_v32 }
 0x551   : > { %1436 = vrot.lane.b32.xlu1 %v1423_v2, %s4648_s8 }
 0x555   : > { %1456 = vperm.xlu1 %4532, %v5410_v52  }
 0x559   : > { %4533 = vset.pattern.permute.xlu1 %v7663_v63  ;;  %v5491_v63 = vrot.slane %v5439_v22, %v4861_v54 }
 0x55b   : > { %7739 = vst [vmem:[#allocation114_spill] sm:$0xff] %v5491_v63 }
 0x5bb   : > { %v5469_v24 = vpop.permute.xlu1 %1430 }
 0x5bf   : > { %v5471_v35 = vpop.permute.xlu1 %1432 }
 0x5c3   : > { %v5473_v29 = vpop.permute.xlu1 %1436 }
 0x5c4   : > { %7735 = vst [vmem:[#allocation110_spill] sm:$0xff] %v5473_v29 }
 0x5d4   : > { %v1457_v62 = vpop.permute.xlu1 %1456 }
 0x5d5   : > { %v1476_v2 = vmul.f32 %v5476_v7, %v1457_v62  ;;  %v1475_v1 = vmul.f32 %v5480_v32, %v1457_v62  ;;  %v1478_v29 = vmul.f32 %v5487_v26, %v1457_v62  ;;  %v1477_v17 = vmul.f32 %v5491_v63, %v1457_v62 }
 0x5d6   : > { %v1479_v32 = vmul.f32 %v1457_v62, %v4901_v10  ;;  %v5506_v26 = vrot.slane %v1396_v39, %v4898_v9  ;;  %v5521_v7 = vrot.slane %v5439_v22, %v4898_v9 }
 0x5d7   : > { %1487 = vrot.lane.b32.xlu1 %v1476_v2, %s4648_s8  ;;  %1485 = vrot.lane.b32.xlu0 %v1475_v1, %s4648_s8 }
 0x5d8   : > { %7741 = vst [vmem:[#allocation116_spill] sm:$0xff] %v5506_v26  ;;  %7744 = vst [vmem:[#allocation119_spill] sm:$0xff] %v5521_v7 }
 0x5db   : > { %1491 = vrot.lane.b32.xlu1 %v1478_v29, %s4648_s8  ;;  %1489 = vrot.lane.b32.xlu0 %v1477_v17, %s4648_s8  ;;  %v5510_v29 = vrot.slane %v5437_v61, %v4898_v9 }
 0x5dd   : > { %7742 = vst [vmem:[#allocation117_spill] sm:$0xff] %v5510_v29 }
 0x5df   : > { %1510 = vperm.xlu1 %4533, %v5410_v52   ;;  %1493 = vrot.lane.b32.xlu0 %v1479_v32, %s4648_s8  ;;  %v5517_v32 = vrot.slane %v1398_v25, %v4898_v9 }
 0x5e1   : > { %7743 = vst [vmem:[#allocation118_spill] sm:$0xff] %v5517_v32 }
 0x5e3   : > { %4534 = vset.pattern.permute.xlu1 %v7683_v11 }
 0x649   : > { %v5501_v1 = vpop.permute.xlu1 %1487 }
 0x64d   : > { %v5503_v2 = vpop.permute.xlu1 %1491 }
 0x64e   : > { %7740 = vst [vmem:[#allocation115_spill] sm:$0xff] %v5503_v2 }
 0x65e   : > { %v1511_v17 = vpop.permute.xlu1 %1510 }
 0x65f   : > { %v1530_v62 = vmul.f32 %v5506_v26, %v1511_v17  ;;  %v1529_v63 = vmul.f32 %v5510_v29, %v1511_v17  ;;  %v1532_v11 = vmul.f32 %v5517_v32, %v1511_v17  ;;  %v1531_v2 = vmul.f32 %v5521_v7, %v1511_v17 }
 0x660   : > { %v1533_v29 = vmul.f32 %v1511_v17, %v4909_v18  ;;  %v5536_v32 = vrot.slane %v1396_v39, %v4943_v57  ;;  %v5551_v39 = vrot.slane %v5439_v22, %v4943_v57  ;;  %v343_v22 = vsel %vm342_vm11, %v4834_v44, %v4863_v55 }
 0x661   : > { %1541 = vrot.lane.b32.xlu1 %v1530_v62, %s4648_s8  ;;  %1539 = vrot.lane.b32.xlu0 %v1529_v63, %s4648_s8  ;;  %vm346_vm12 = vcmp.ne.s16.totalorder %v343_v22, 0 }
 0x662   : > { %7745 = vst [vmem:[#allocation120_spill] sm:$0xff] %v5536_v32  ;;  %7748 = vst [vmem:[#allocation123_spill] sm:$0xff] %v5551_v39 }
 0x665   : > { %1545 = vrot.lane.b32.xlu1 %v1532_v11, %s4648_s8  ;;  %1543 = vrot.lane.b32.xlu0 %v1531_v2, %s4648_s8  ;;  %v5540_v11 = vrot.slane %v5437_v61, %v4943_v57 }
 0x667   : > { %7746 = vst [vmem:[#allocation121_spill] sm:$0xff] %v5540_v11 }
 0x669   : > { %1564 = vperm.xlu1 %4534, %v5410_v52   ;;  %1547 = vrot.lane.b32.xlu0 %v1533_v29, %s4648_s8  ;;  %v5547_v29 = vrot.slane %v1398_v25, %v4943_v57  ;;  %v350_v25 = vsel %vm346_vm12, %v4827_v41, 0 }
 0x66b   : > { %7747 = vst [vmem:[#allocation122_spill] sm:$0xff] %v5547_v29 }
 0x66d   : > { %4535 = vset.pattern.permute.xlu1 %v7690_v14 }
 0x6d3   : > { %v5531_v63 = vpop.permute.xlu1 %1541 }
 0x6d7   : > { %v5533_v62 = vpop.permute.xlu1 %1545 }
 0x6e8   : > { %v1565_v2 = vpop.permute.xlu1 %1564 }
 0x6e9   : > { %v1584_v17 = vmul.f32 %v5536_v32, %v1565_v2  ;;  %v1583_v52 = vmul.f32 %v5540_v11, %v1565_v2  ;;  %v1586_v7 = vmul.f32 %v5547_v29, %v1565_v2  ;;  %v1585_v61 = vmul.f32 %v5551_v39, %v1565_v2 }
 0x6eb   : > { %1595 = vrot.lane.b32.xlu1 %v1584_v17, %s4648_s8  ;;  %1593 = vrot.lane.b32.xlu0 %v1583_v52, %s4648_s8  ;;  %v305_v17 = vld [vmem:[%s7439_s2] sm:$0xf]  ;;  %v1587_v52 = vmul.f32 %v1565_v2, %v4953_v13  ;;  %v385_v2 = vmul.f32 %v4848_v49, %v5422_v0 }
 0x6ef   : > { %1599 = vrot.lane.b32.xlu1 %v1586_v7, %s4648_s8  ;;  %1597 = vrot.lane.b32.xlu0 %v1585_v61, %s4648_s8  ;;  %v356_v7 = vunpack.c.l.bf16 %v350_v25  ;;  %v453_v25 = vmul.f32 %v4909_v18, %v4822_v36 }
 0x6f1   : > { %v372_v61 = vrot.slane %v356_v7, %v4743_v12  ;;  %v406_v39 = vrot.slane %v356_v7, %v4861_v54  ;;  %v440_v44 = vrot.slane %v356_v7, %v4898_v9  ;;  %v474_v32 = vrot.slane %v356_v7, %v4943_v57 }
 0x6f2   : > { %v546_v7 = vsel %vm544_vm0, %v5269_v27, %v5134_v43 }
 0x6f3   : > { %1619 = vperm.xlu1 %4535, %v305_v17   ;;  %1601 = vrot.lane.b32.xlu0 %v1587_v52, %s4648_s8  ;;  %v386_v17 = vmul.f32 %v372_v61, %v5422_v0  ;;  %v419_v52 = vmul.f32 %v4901_v10, %v4817_v34  ;;  %v420_v29 = vmul.f32 %v406_v39, %v4817_v34 }
 0x6f4   : > { %v454_v41 = vmul.f32 %v440_v44, %v4822_v36  ;;  %v487_v61 = vmul.f32 %v4953_v13, %v5385_v30  ;;  %v488_v10 = vmul.f32 %v474_v32, %v5385_v30  ;;  %v7784_v13 = vld [vmem:[#allocation68_spill] sm:$0xff] }
 0x6f5   : > { %v424_v22 = vadd.f32 %v419_v52, %v385_v2  ;;  %v425_v11 = vadd.f32 %v420_v29, %v386_v17  ;;  %v344_v29 = vsel %vm342_vm11, %v4863_v55, %v4825_v40  ;;  %v545_v2 = vsel %vm544_vm0, %v5132_v45, %v5269_v27 }
 0x6f6   : > { %vm347_vm13 = vcmp.ne.s16.totalorder %v344_v29, 0  ;;  %v653_v27 = vsel %vm544_vm0, %v5277_v58, %v5144_v8  ;;  %v817_v29 = vsel %vm816_vm14, %v5291_v21, %v5152_v33 }
 0x6f7   : > { %4536 = vset.pattern.permute.xlu1 %v7723_v59  ;;  %v458_v26 = vadd.f32 %v453_v25, %v424_v22  ;;  %v459_v49 = vadd.f32 %v454_v41, %v425_v11  ;;  %v351_v55 = vsel %vm347_vm13, %v4839_v46, 0  ;;  %v708_v22 = vsel %vm544_vm0, %v5148_v19, %v5285_v6 }
 0x6f8   : > { %v357_v45 = vunpack.c.l.bf16 %v351_v55 }
 0x6f9   : > { %v492_v59 = vadd.f32 %v487_v61, %v458_v26  ;;  %v493_v39 = vadd.f32 %v488_v10, %v459_v49  ;;  %v599_v26 = vsel %vm544_vm0, %v5138_v51, %v5140_v16  ;;  %v600_v49 = vsel %vm544_vm0, %v5140_v16, %v5273_v47 }
 0x6fa   : > { %v376_v51 = vrot.slane %v357_v45, %v4743_v12  ;;  %v410_v44 = vrot.slane %v357_v45, %v4861_v54  ;;  %v707_v16 = vsel %vm544_vm0, %v5283_v38, %v5148_v19  ;;  %v818_v38 = vsel %vm816_vm14, %v5152_v33, %v5322_v37 }
 0x6fb   : > { %v554_v41 = vadd.f32 %v545_v2, %v492_v59  ;;  %v555_v11 = vadd.f32 %v546_v7, %v493_v39  ;;  %v654_v59 = vsel %vm544_vm0, %v5144_v8, %v5279_v20  ;;  %v444_v39 = vrot.slane %v357_v45, %v4898_v9 }
 0x6fc   : > { %v387_v61 = vmul.f32 %v376_v51, %v5422_v0  ;;  %v421_v8 = vmul.f32 %v410_v44, %v4817_v34  ;;  %v7754_v44 = vld [vmem:[#allocation88_spill] sm:$0xff] }
 0x6fd   : > { %v608_v10 = vadd.f32 %v599_v26, %v554_v41  ;;  %v609_v32 = vadd.f32 %v600_v49, %v555_v11  ;;  %v5622_v41 = vpop.permute.xlu0 %1434  ;;  %v455_v11 = vmul.f32 %v444_v39, %v4822_v36  ;;  %v7749_v26 = vld [vmem:[#allocation49_spill] sm:$0xff]  ;;  %v7750_v49 = vld [vmem:[#allocation79_spill] sm:$0xff] }
 0x6fe   : > { %v426_v19 = vadd.f32 %v421_v8, %v387_v61  ;;  %v871_v55 = vsel %vm816_vm14, %v7750_v49, %v7749_v26  ;;  %v7755_v39 = vld [vmem:[#allocation53_spill] sm:$0xff] }
 0x6ff   : > { %v662_v17 = vadd.f32 %v653_v27, %v608_v10  ;;  %v663_v52 = vadd.f32 %v654_v59, %v609_v32  ;;  %v7751_v10 = vld [vmem:[#allocation87_spill] sm:$0xff]  ;;  %v478_v59 = vrot.slane %v357_v45, %v4943_v57 }
 0x700   : > { %v872_v32 = vsel %vm816_vm14, %v7749_v26, %v7751_v10  ;;  %v460_v33 = vadd.f32 %v455_v11, %v426_v19 }
 0x701   : > { %v716_v58 = vadd.f32 %v707_v16, %v662_v17  ;;  %v717_v25 = vadd.f32 %v708_v22, %v663_v52  ;;  %v7752_v17 = vld [vmem:[#allocation51_spill] sm:$0xff]  ;;  %v7753_v52 = vld [vmem:[#allocation80_spill] sm:$0xff]  ;;  %v489_v22 = vmul.f32 %v478_v59, %v5385_v30  ;;  %v5639_v61 = vpop.permute.xlu0 %1438  ;;  %v7761_v59 = vld [vmem:[#allocation82_spill] sm:$0xff] }
 0x702   : > { %v925_v51 = vsel %vm816_vm14, %v7753_v52, %v7752_v17  ;;  %v926_v16 = vsel %vm816_vm14, %v7752_v17, %v7754_v44  ;;  %v7762_v17 = vld [vmem:[#allocation90_spill] sm:$0xff] }
 0x703   : > { %v826_v2 = vadd.f32 %v817_v29, %v716_v58  ;;  %v827_v7 = vadd.f32 %v818_v38, %v717_v25  ;;  %v494_v8 = vadd.f32 %v489_v22, %v460_v33  ;;  %v7756_v29 = vld [vmem:[#allocation81_spill] sm:$0xff] }
 0x704   : > { %v979_v45 = vsel %vm816_vm14, %v7756_v29, %v7755_v39  ;;  %v7757_v38 = vld [vmem:[#allocation89_spill] sm:$0xff] }
 0x705   : > { %v880_v21 = vadd.f32 %v871_v55, %v826_v2  ;;  %v881_v27 = vadd.f32 %v872_v32, %v827_v7  ;;  %v980_v2 = vsel %vm816_vm14, %v7755_v39, %v7757_v38  ;;  %v7758_v7 = vld [vmem:[#allocation73_spill] sm:$0xff]  ;;  %v5650_v49 = vpop.permute.xlu0 %1485  ;;  %v7759_v32 = vld [vmem:[#allocation18_spill] sm:$0xff] }
 0x706   : > { %v547_v19 = vsel %vm544_vm0, %v5134_v43, %v7758_v7  ;;  %v7766_v29 = vld [vmem:[#allocation93_spill] sm:$0xff]  ;;  %vm349_vm3 = vcmp.ne.s16.totalorder %v7759_v32, 0 }
 0x707   : > { %v934_v58 = vadd.f32 %v925_v51, %v880_v21  ;;  %v935_v25 = vadd.f32 %v926_v16, %v881_v27  ;;  %v556_v55 = vadd.f32 %v547_v19, %v494_v8  ;;  %v345_v21 = vsel %vm342_vm11, %v4825_v40, %v7759_v32  ;;  %v7760_v27 = vld [vmem:[#allocation55_spill] sm:$0xff]  ;;  %v7763_v51 = vld [vmem:[#allocation45_spill] sm:$0xff]  ;;  %v7765_v40 = vld [vmem:[#allocation92_spill] sm:$0xff] }
 0x708   : > { %v1061_v33 = vsel %vm1060_vm15, %v7761_v59, %v7760_v27  ;;  %v1062_v52 = vsel %vm1060_vm15, %v7760_v27, %v7762_v17  ;;  %v601_v43 = vsel %vm544_vm0, %v5273_v47, %v7763_v51  ;;  %vm348_vm1 = vcmp.ne.s16.totalorder %v345_v21, 0  ;;  %v7764_v8 = vld [vmem:[#allocation61_spill] sm:$0xff]  ;;  %v7767_v19 = vld [vmem:[#allocation46_spill] sm:$0xff]  ;;  %v7768_v27 = vld [vmem:[#allocation67_spill] sm:$0xff] }
 0x709   : > { %v988_v11 = vadd.f32 %v979_v45, %v934_v58  ;;  %v989_v26 = vadd.f32 %v980_v2, %v935_v25  ;;  %v610_v58 = vadd.f32 %v601_v43, %v556_v55  ;;  %v5664_v25 = vpop.permute.xlu0 %1489  ;;  %v1115_v39 = vsel %vm1060_vm15, %v7765_v40, %v7764_v8  ;;  %v7780_v32 = vld [vmem:[#allocation5_spill] sm:$0xff] }
 0x70a   : > { %v1116_v45 = vsel %vm1060_vm15, %v7764_v8, %v7766_v29  ;;  %v352_v2 = vsel %vm348_vm1, %v4829_v42, 0  ;;  %v655_v47 = vsel %vm544_vm0, %v5279_v20, %v7767_v19  ;;  %v1169_v59 = vsel %vm1060_vm15, %v5340_v5, %v7768_v27 }
 0x70b   : > { %v1070_v16 = vadd.f32 %v1061_v33, %v988_v11  ;;  %v1071_v22 = vadd.f32 %v1062_v52, %v989_v26  ;;  %v664_v21 = vadd.f32 %v655_v47, %v610_v58  ;;  %v358_v55 = vunpack.c.l.bf16 %v352_v2  ;;  %v7769_v52 = vld [vmem:[#allocation47_spill] sm:$0xff]  ;;  %v7770_v58 = vld [vmem:[#allocation77_spill] sm:$0xff]  ;;  %v7772_v2 = vld [vmem:[#allocation48_spill] sm:$0xff] }
 0x70c   : > { %v1170_v33 = vsel %vm1060_vm15, %v7768_v27, %v5342_v56  ;;  %v709_v43 = vsel %vm544_vm0, %v5285_v6, %v7769_v52  ;;  %v819_v6 = vsel %vm816_vm14, %v5322_v37, %v7772_v2 }
 0x70d   : > { %v1124_v11 = vadd.f32 %v1115_v39, %v1070_v16  ;;  %v1125_v26 = vadd.f32 %v1116_v45, %v1071_v22  ;;  %v5685_v42 = vpop.permute.xlu0 %1493  ;;  %v718_v20 = vadd.f32 %v709_v43, %v664_v21  ;;  %v380_v16 = vrot.slane %v358_v55, %v4743_v12  ;;  %v7771_v39 = vld [vmem:[#allocation96_spill] sm:$0xff] }
 0x70e   : > { %v414_v22 = vrot.slane %v358_v55, %v4861_v54  ;;  %v1223_v5 = vsel %vm1060_vm15, %v7771_v39, %v7770_v58  ;;  %v1224_v45 = vsel %vm1060_vm15, %v7770_v58, %v5348_v60  ;;  %v1261_v43 = vsel %vm342_vm11, %v5352_v4, %v5366_v50  ;;  %v7773_v39 = vld [vmem:[#allocation50_spill] sm:$0xff] }
 0x70f   : > { %v1178_v8 = vadd.f32 %v1169_v59, %v1124_v11  ;;  %v1179_v40 = vadd.f32 %v1170_v33, %v1125_v26  ;;  %v388_v21 = vmul.f32 %v380_v16, %v5422_v0  ;;  %v828_v27 = vadd.f32 %v819_v6, %v718_v20 }
 0x710   : > { %v422_v59 = vmul.f32 %v414_v22, %v4817_v34  ;;  %v448_v33 = vrot.slane %v358_v55, %v4898_v9  ;;  %v873_v58 = vsel %vm816_vm14, %v7751_v10, %v7773_v39  ;;  %v1294_v16 = vsel %vm342_vm11, %v5370_v23, %v5387_v53  ;;  %v7774_v22 = vld [vmem:[#allocation52_spill] sm:$0xff] }
 0x711   : > { %v1232_v47 = vadd.f32 %v1223_v5, %v1178_v8  ;;  %v1233_v11 = vadd.f32 %v1224_v45, %v1179_v40  ;;  %v1540_v26 = vpop.permute.xlu0 %1539  ;;  %v882_v5 = vadd.f32 %v873_v58, %v828_v27  ;;  %v927_v6 = vsel %vm816_vm14, %v7754_v44, %v7774_v22 }
 0x712   : > { %v427_v40 = vadd.f32 %v422_v59, %v388_v21  ;;  %v456_v20 = vmul.f32 %v448_v33, %v4822_v36  ;;  %v1327_v27 = vsel %vm342_vm11, %v5391_v31, %v5418_v3  ;;  %v1360_v59 = vsel %vm342_vm11, %v5424_v15, %v5428_v28  ;;  %v7775_v33 = vld [vmem:[#allocation54_spill] sm:$0xff] }
 0x713   : > { %v1269_v37 = vadd.f32 %v5352_v4, %v1232_v47  ;;  %v1270_v8 = vadd.f32 %v1261_v43, %v1233_v11  ;;  %v482_v4 = vrot.slane %v358_v55, %v4943_v57  ;;  %v936_v11 = vadd.f32 %v927_v6, %v882_v5 }
 0x714   : > { %v461_v47 = vadd.f32 %v456_v20, %v427_v40 }
 0x715   : > { %v5708_v45 = vpop.permute.xlu0 %1543  ;;  %v1302_v46 = vadd.f32 %v5370_v23, %v1269_v37  ;;  %v1303_v10 = vadd.f32 %v1294_v16, %v1270_v8  ;;  %v490_v21 = vmul.f32 %v482_v4, %v5385_v30  ;;  %v981_v23 = vsel %vm816_vm14, %v7757_v38, %v7775_v33 }
 0x716   : > { %v990_v37 = vadd.f32 %v981_v23, %v936_v11  ;;  %v1441_v8 = vsel %vm1440_vm2, %v5469_v24, %v5471_v35  ;;  %v4649_v16 = vmov 1966171168  }
 0x717   : > { %v1335_v44 = vadd.f32 %v5391_v31, %v1302_v46  ;;  %v1336_v55 = vadd.f32 %v1327_v27, %v1303_v10  ;;  %v495_v58 = vadd.f32 %v490_v21, %v461_v47  ;;  %v1634_v6 = vunpack.c.l.s4 %v4649_v16  ;;  %v7776_v31 = vld [vmem:[#allocation44_spill] sm:$0xff] }
 0x718   : > { %v1495_v46 = vsel %vm1440_vm2, %v5650_v49, %v5501_v1  ;;  %v548_v38 = vsel %vm544_vm0, %v7758_v7, %v7776_v31  ;;  %v7777_v10 = vld [vmem:[#allocation56_spill] sm:$0xff] }
 0x719   : > { %v5730_v43 = vpop.permute.xlu0 %1547  ;;  %v1368_v5 = vadd.f32 %v5424_v15, %v1335_v44  ;;  %v1369_v20 = vadd.f32 %v1360_v59, %v1336_v55  ;;  %v1063_v4 = vsel %vm1060_vm15, %v7762_v17, %v7777_v10  ;;  %v557_v15 = vadd.f32 %v548_v38, %v495_v58  ;;  %v7778_v17 = vld [vmem:[#allocation74_spill] sm:$0xff] }
 0x71a   : > { %v1072_v27 = vadd.f32 %v1063_v4, %v990_v37  ;;  %v1549_v59 = vsel %vm1440_vm2, %v1540_v26, %v5531_v63  ;;  %v1635_v55 = vunpack.c.0.s8 %v1634_v6  ;;  %v7779_v58 = vld [vmem:[#allocation62_spill] sm:$0xff]  ;;  %v353_v4 = vsel %vm349_vm3, %v4845_v48, 0  ;;  %v7789_v48 = vld [vmem:[#allocation84_spill] sm:$0xff] }
 0x71b   : > { %v1450_v47 = vadd.f32 %v5469_v24, %v1368_v5  ;;  %v1451_v11 = vadd.f32 %v1441_v8, %v1369_v20  ;;  %v602_v24 = vsel %vm544_vm0, %v7763_v51, %v7778_v17  ;;  %v1117_v37 = vsel %vm1060_vm15, %v7766_v29, %v7779_v58 }
 0x71c   : > { %v1126_v20 = vadd.f32 %v1117_v37, %v1072_v27  ;;  %v5763_v38 = vsub.s32 %v1635_v55, %v7780_v32  ;;  %v1171_v29 = vsel %vm1060_vm15, %v5342_v56, %v7784_v13  ;;  %v359_v55 = vunpack.c.l.bf16 %v353_v4  ;;  %v7787_v4 = vld [vmem:[#allocation83_spill] sm:$0xff] }
 0x71d   : > { %v1504_v23 = vadd.f32 %v5650_v49, %v1450_v47  ;;  %v1505_v44 = vadd.f32 %v1495_v46, %v1451_v11  ;;  %v611_v49 = vadd.f32 %v602_v24, %v557_v15  ;;  %v7783_v11 = vld [vmem:[#allocation75_spill] sm:$0xff]  ;;  %v7786_v24 = vld [vmem:[#allocation78_spill] sm:$0xff]  ;;  %vm3100_vm3 = vcmask 269312  }
 0x71e   : > { %7781 = vst [vmem:[#allocation49_spill] sm:$0xff] %v5763_v38  ;;  %v656_v51 = vsel %vm544_vm0, %v7767_v19, %v7783_v11  ;;  %v1180_v27 = vadd.f32 %v1171_v29, %v1126_v20  ;;  %v1225_v56 = vsel %vm1060_vm15, %v5348_v60, %v7786_v24  ;;  %v384_v32 = vrot.slane %v359_v55, %v4743_v12 }
 0x71f   : > { %v1558_v8 = vadd.f32 %v1540_v26, %v1504_v23  ;;  %v1559_v5 = vadd.f32 %v1549_v59, %v1505_v44  ;;  %v665_v15 = vadd.f32 %v656_v51, %v611_v49  ;;  %v820_v60 = vsel %vm816_vm14, %v7772_v2, %v7787_v4  ;;  %v7788_v51 = vld [vmem:[#allocation98_spill] sm:$0xff] }
 0x720   : > { %v1234_v49 = vadd.f32 %v1225_v56, %v1180_v27  ;;  %v1262_v29 = vsel %vm342_vm11, %v5366_v50, %v7788_v51  ;;  %v389_v27 = vmul.f32 %v384_v32, %v5422_v0  ;;  %v452_v12 = vrot.slane %v359_v55, %v4898_v9 }
 0x721   : > { %v874_v50 = vsel %vm816_vm14, %v7773_v39, %v7789_v48  ;;  %v486_v39 = vrot.slane %v359_v55, %v4943_v57 }
 0x75d   : > { %v5735_v40 = vpop.permute.xlu1 %1595  ;;  %v1594_v21 = vpop.permute.xlu0 %1593 }
 0x75e   : > { %v1603_v7 = vsel %vm1440_vm2, %v1594_v21, %v5735_v40  ;;  %v1612_v6 = vadd.f32 %v1594_v21, %v1558_v8 }
 0x75f   : > { %v1613_v46 = vadd.f32 %v1603_v7, %v1559_v5  ;;  %v7785_v7 = vld [vmem:[#allocation76_spill] sm:$0xff] }
 0x760   : > { %v710_v19 = vsel %vm544_vm0, %v7769_v52, %v7785_v7  ;;  %v418_v52 = vrot.slane %v359_v55, %v4861_v54 }
 0x761   : > { %v5754_v16 = vpop.permute.xlu1 %1599  ;;  %v719_v5 = vadd.f32 %v710_v19, %v665_v15 }
 0x762   : > { %v423_v2 = vmul.f32 %v418_v52, %v4817_v34 }
 0x772   : > { %v5766_v47 = vpop.permute.xlu1 %1619 }
 0x773   : > { %7782 = vst [vmem:[#allocation79_spill] sm:$0xff] %v5766_v47  ;;  %v1622_v26 = vadd.f32 %v5766_v47, %v1612_v6  ;;  %v5776_v21 = vadd.f32 %v5766_v47, %v1613_v46 }
 0x775   : > { %v1627_v59 = vpack.c.bf16 %v1622_v26, %v1622_v26  ;;  %v4149_v23 = vpack.c.bf16 %v5776_v21, %v1622_v26  ;;  %v1628_v44 = vpack.c.bf16 %v5776_v21, %v5776_v21 }
 0x777   : > { %v1639_v37 = vrot.slane %v1627_v59, %v5763_v38  ;;  %v1698_v8 = vrot.slane %v4149_v23, %v5763_v38  ;;  %v1761_v46 = vrot.slane %v1628_v44, %v5763_v38  ;;  %v1271_v59 = vadd.f32 %v1262_v29, %v1234_v49 }
 0x778   : > { %v829_v23 = vadd.f32 %v820_v60, %v719_v5  ;;  %v428_v49 = vadd.f32 %v423_v2, %v389_v27  ;;  %v7794_v2 = vld [vmem:[#allocation86_spill] sm:$0xff] }
 0x779   : > { %v1647_v20 = vrot.slane %v1639_v37, %v5763_v38  ;;  %v1706_v6 = vrot.slane %v1698_v8, %v5763_v38  ;;  %v1769_v56 = vrot.slane %v1761_v46, %v5763_v38  ;;  %v1640_v54 = vcombine.high %v1639_v37, %v1639_v37 }
 0x77a   : > { %v883_v60 = vadd.f32 %v874_v50, %v829_v23  ;;  %v1699_v29 = vcombine.high %v1698_v8, %v1698_v8 }
 0x77b   : > { %v4147_v26 = vpack.i.b16 %v1647_v20, %v1647_v20  ;;  %v1656_v15 = vunpack.i.h.s16 %v1647_v20  ;;  %v1715_v19 = vunpack.i.h.s16 %v1706_v6  ;;  %v7790_v20 = vld [vmem:[#allocation100_spill] sm:$0xff]  ;;  %v4150_v5 = vpack.i.b16 %v1706_v6, %v1706_v6 }
 0x77c   : > { %v1295_v0 = vsel %vm342_vm11, %v5387_v53, %v7790_v20  ;;  %v1778_v34 = vunpack.i.h.s16 %v1769_v56  ;;  %v1654_v52 = vrot.slane %v1640_v54, %v5763_v38  ;;  %v5823_v27 = vpack.i.b16 %v1769_v56, %v1769_v56  ;;  %v7793_v54 = vld [vmem:[#allocation104_spill] sm:$0xff] }
 0x77d   : > { %1663 = vrot.lane.b32.xlu0 %v4147_v26, %s4650_s11  ;;  %v1660_v44 = vpack.i.b16 %v1656_v15, %v1656_v15  ;;  %v1304_v32 = vadd.f32 %v1295_v0, %v1271_v59  ;;  %v1719_v37 = vpack.i.b16 %v1715_v19, %v1715_v19  ;;  %v457_v26 = vmul.f32 %v452_v12, %v4822_v36  ;;  %v7791_v15 = vld [vmem:[#allocation85_spill] sm:$0xff] }
 0x77e   : > { %v928_v53 = vsel %vm816_vm14, %v7774_v22, %v7791_v15  ;;  %v1361_v12 = vsel %vm342_vm11, %v5428_v28, %v7793_v54  ;;  %v5830_v55 = vpack.i.b16 %v1778_v34, %v1778_v34  ;;  %v1658_v22 = vunpack.i.h.s16 %v1654_v52  ;;  %v7795_v34 = vld [vmem:[#allocation91_spill] sm:$0xff] }
 0x77f   : > { %1665 = vrot.lane.b32.xlu1 %v1660_v44, %s4650_s11  ;;  %v7792_v44 = vld [vmem:[#allocation102_spill] sm:$0xff]  ;;  %v462_v59 = vadd.f32 %v457_v26, %v428_v49  ;;  %v937_v36 = vadd.f32 %v928_v53, %v883_v60  ;;  %v1713_v8 = vrot.slane %v1699_v29, %v5763_v38  ;;  %v491_v19 = vmul.f32 %v486_v39, %v5385_v30 }
 0x780   : > { %v1328_v6 = vsel %vm342_vm11, %v5418_v3, %v7792_v44  ;;  %v1762_v3 = vcombine.high %v1761_v46, %v1761_v46  ;;  %v1442_v56 = vsel %vm1440_vm2, %v5471_v35, %v5622_v41  ;;  %v982_v28 = vsel %vm816_vm14, %v7775_v33, %v7794_v2 }
 0x781   : > { %1722 = vrot.lane.b32.xlu0 %v4150_v5, %s4647_s30  ;;  %v1337_v23 = vadd.f32 %v1328_v6, %v1304_v32  ;;  %v4148_v0 = vpack.i.b16 %v1654_v52, %v1654_v52  ;;  %v496_v5 = vadd.f32 %v491_v19, %v462_v59  ;;  %v991_v49 = vadd.f32 %v982_v28, %v937_v36  ;;  %v5845_v32 = vpop.permute.xlu0 %1597  ;;  %v7798_v28 = vld [vmem:[#allocation97_spill] sm:$0xff] }
 0x782   : > { %v1496_v46 = vsel %vm1440_vm2, %v5501_v1, %v5664_v25  ;;  %v1662_v35 = vpack.i.b16 %v1658_v22, %v1658_v22  ;;  %v1717_v60 = vunpack.i.h.s16 %v1713_v8  ;;  %v1776_v33 = vrot.slane %v1762_v3, %v5763_v38  ;;  %v7797_v3 = vld [vmem:[#allocation95_spill] sm:$0xff] }
 0x783   : > { %1724 = vrot.lane.b32.xlu1 %v1719_v37, %s4647_s30  ;;  %v1370_v50 = vadd.f32 %v1361_v12, %v1337_v23  ;;  %v1550_v37 = vsel %vm1440_vm2, %v5531_v63, %v5708_v45  ;;  %v1064_v52 = vsel %vm1060_vm15, %v7777_v10, %v7795_v34  ;;  %v4151_v1 = vpack.i.b16 %v1713_v8, %v1713_v8  ;;  %v7796_v23 = vld [vmem:[#allocation94_spill] sm:$0xff] }
 0x784   : > { %v558_v26 = vadd.f32 %v7776_v31, %v496_v5  ;;  %v1073_v39 = vadd.f32 %v1064_v52, %v991_v49  ;;  %v1604_v53 = vsel %vm1440_vm2, %v5735_v40, %v5845_v32  ;;  %v1721_v59 = vpack.i.b16 %v1717_v60, %v1717_v60  ;;  %v7799_v5 = vld [vmem:[#allocation99_spill] sm:$0xff] }
 0x785   : > { %1785 = vrot.lane.b32.xlu0 %v5823_v27, %s4641_s4  ;;  %v1452_v30 = vadd.f32 %v1442_v56, %v1370_v50  ;;  %v1780_v63 = vunpack.i.h.s16 %v1776_v33  ;;  %v1118_v10 = vsel %vm1060_vm15, %v7779_v58, %v7796_v23  ;;  %v4161_v36 = vpack.i.b16 %v1776_v33, %v1776_v33  ;;  %v7801_v52 = vld [vmem:[#allocation103_spill] sm:$0xff] }
 0x786   : > { %v612_v31 = vadd.f32 %v7778_v17, %v558_v26  ;;  %v1127_v22 = vadd.f32 %v1118_v10, %v1073_v39  ;;  %v1172_v19 = vsel %vm1060_vm15, %v7784_v13, %v7797_v3  ;;  %v1226_v50 = vsel %vm1060_vm15, %v7786_v24, %v7798_v28  ;;  %v7802_v26 = vld [vmem:[#allocation105_spill] sm:$0xff] }
 0x787   : > { %1787 = vrot.lane.b32.xlu1 %v5830_v55, %s4641_s4  ;;  %v1506_v29 = vadd.f32 %v1496_v46, %v1452_v30  ;;  %v1784_v8 = vpack.i.b16 %v1780_v63, %v1780_v63  ;;  %v1263_v49 = vsel %vm342_vm11, %v7788_v51, %v7799_v5  ;;  %v7803_v63 = vld [vmem:[#allocation110_spill] sm:$0xff] }
 0x788   : > { %v666_v58 = vadd.f32 %v7783_v11, %v612_v31  ;;  %v1181_v56 = vadd.f32 %v1172_v19, %v1127_v22 }
 0x789   : > { %1667 = vrot.lane.b32.xlu0 %v4148_v0, %s4650_s11  ;;  %v1560_v6 = vadd.f32 %v1550_v37, %v1506_v29  ;;  %v1329_v29 = vsel %vm342_vm11, %v7792_v44, %v7801_v52  ;;  %v1443_v44 = vsel %vm1440_vm2, %v5622_v41, %v7803_v63  ;;  %v1551_v41 = vsel %vm1440_vm2, %v5708_v45, %v5533_v62 }
 0x78a   : > { %v720_v13 = vadd.f32 %v7785_v7, %v666_v58  ;;  %v1235_v0 = vadd.f32 %v1226_v50, %v1181_v56 }
 0x78b   : > { %1669 = vrot.lane.b32.xlu1 %v1662_v35, %s4650_s11  ;;  %v1614_v12 = vadd.f32 %v1604_v53, %v1560_v6  ;;  %v7800_v35 = vld [vmem:[#allocation101_spill] sm:$0xff] }
 0x78c   : > { %v1272_v46 = vadd.f32 %v1263_v49, %v1235_v0  ;;  %v1296_v60 = vsel %vm342_vm11, %v7790_v20, %v7800_v35 }
 0x78d   : > { %1726 = vrot.lane.b32.xlu0 %v4151_v1, %s4647_s30  ;;  %v5868_v40 = vadd.f32 %v5766_v47, %v1614_v12 }
 0x78f   : > { %1728 = vrot.lane.b32.xlu1 %v1721_v59, %s4647_s30  ;;  %v4186_v17 = vpack.c.bf16 %v5868_v40, %v5776_v21  ;;  %v830_v21 = vadd.f32 %v7787_v4, %v720_v13  ;;  %v1629_v30 = vpack.c.bf16 %v5868_v40, %v5868_v40  ;;  %v1305_v4 = vadd.f32 %v1296_v60, %v1272_v46 }
 0x791   : > { %1789 = vrot.lane.b32.xlu0 %v4161_v36, %s4641_s4  ;;  %v1868_v11 = vrot.slane %v4186_v17, %v5763_v38  ;;  %v884_v51 = vadd.f32 %v7789_v48, %v830_v21  ;;  %v1931_v37 = vrot.slane %v1629_v30, %v5763_v38  ;;  %v1362_v48 = vsel %vm342_vm11, %v7793_v54, %v7802_v26 }
 0x793   : > { %1791 = vrot.lane.b32.xlu1 %v1784_v8, %s4641_s4  ;;  %v1876_v24 = vrot.slane %v1868_v11, %v5763_v38  ;;  %v1869_v7 = vcombine.high %v1868_v11, %v1868_v11  ;;  %v938_v1 = vadd.f32 %v7791_v15, %v884_v51  ;;  %v1939_v6 = vrot.slane %v1931_v37, %v5763_v38 }
 0x794   : > { %v1932_v59 = vcombine.high %v1931_v37, %v1931_v37 }
 0x795   : > { %1810 = vrot.lane.b32.xlu0 %v5823_v27, %s4651_s18  ;;  %v1885_v33 = vunpack.i.h.s16 %v1876_v24  ;;  %v4187_v20 = vpack.i.b16 %v1876_v24, %v1876_v24  ;;  %v992_v12 = vadd.f32 %v7794_v2, %v938_v1  ;;  %v4197_v56 = vpack.i.b16 %v1939_v6, %v1939_v6 }
 0x796   : > { %v1946_v19 = vrot.slane %v1932_v59, %v5763_v38 }
 0x797   : > { %1812 = vrot.lane.b32.xlu1 %v5830_v55, %s4651_s18  ;;  %v1889_v39 = vpack.i.b16 %v1885_v33, %v1885_v33  ;;  %v1074_v2 = vadd.f32 %v7795_v34, %v992_v12 }
 0x798   : > { %v1950_v13 = vunpack.i.h.s16 %v1946_v19  ;;  %v4198_v11 = vpack.i.b16 %v1946_v19, %v1946_v19 }
 0x799   : > { %1814 = vrot.lane.b32.xlu0 %v4161_v36, %s4651_s18  ;;  %v1128_v45 = vadd.f32 %v7796_v23, %v1074_v2 }
 0x79a   : > { %v1954_v49 = vpack.i.b16 %v1950_v13, %v1950_v13 }
 0x79b   : > { %1816 = vrot.lane.b32.xlu1 %v1784_v8, %s4651_s18 }
 0x79d   : > { %1835 = vrot.lane.b32.xlu0 %v5823_v27, %s4650_s11  ;;  %v1883_v27 = vrot.slane %v1869_v7, %v5763_v38 }
 0x79f   : > { %1837 = vrot.lane.b32.xlu1 %v5830_v55, %s4650_s11  ;;  %v1338_v55 = vadd.f32 %v1329_v29, %v1305_v4  ;;  %v1887_v53 = vunpack.i.h.s16 %v1883_v27  ;;  %v4188_v15 = vpack.i.b16 %v1883_v27, %v1883_v27 }
 0x7a1   : > { %1839 = vrot.lane.b32.xlu0 %v4161_v36, %s4650_s11  ;;  %v1371_v10 = vadd.f32 %v1362_v48, %v1338_v55  ;;  %v7804_v36 = vld [vmem:[#allocation115_spill] sm:$0xff]  ;;  %v1891_v22 = vpack.i.b16 %v1887_v53, %v1887_v53  ;;  %v1602_v48 = vpop.permute.xlu0 %1601 }
 0x7a2   : > { %v1497_v54 = vsel %vm1440_vm2, %v5664_v25, %v7804_v36  ;;  %v1605_v25 = vsel %vm1440_vm2, %v5845_v32, %v5754_v16  ;;  %v1182_v32 = vadd.f32 %v7797_v3, %v1128_v45 }
 0x7a3   : > { %1841 = vrot.lane.b32.xlu1 %v1784_v8, %s4650_s11  ;;  %v1453_v31 = vadd.f32 %v1443_v44, %v1371_v10  ;;  %v1948_v8 = vunpack.i.h.s16 %v1939_v6 }
 0x7a4   : > { %v1236_v46 = vadd.f32 %v7798_v28, %v1182_v32 }
 0x7a5   : > { %1892 = vrot.lane.b32.xlu0 %v4187_v20, %s4647_s30  ;;  %v1507_v58 = vadd.f32 %v1497_v54, %v1453_v31  ;;  %v1952_v50 = vpack.i.b16 %v1948_v8, %v1948_v8 }
 0x7a6   : > { %v1273_v24 = vadd.f32 %v7799_v5, %v1236_v46 }
 0x7a7   : > { %1894 = vrot.lane.b32.xlu1 %v1889_v39, %s4647_s30  ;;  %v1561_v17 = vadd.f32 %v1551_v41, %v1507_v58 }
 0x7a9   : > { %1896 = vrot.lane.b32.xlu0 %v4188_v15, %s4647_s30  ;;  %v1615_v0 = vadd.f32 %v1605_v25, %v1561_v17 }
 0x7ab   : > { %1898 = vrot.lane.b32.xlu1 %v1891_v22, %s4647_s30  ;;  %v1625_v34 = vadd.f32 %v5766_v47, %v1615_v0 }
 0x7ad   : > { %1955 = vrot.lane.b32.xlu0 %v4197_v56, %s4641_s4  ;;  %v4223_v21 = vpack.c.bf16 %v1625_v34, %v5868_v40  ;;  %v1630_v30 = vpack.c.bf16 %v1625_v34, %v1625_v34  ;;  %v1306_v40 = vadd.f32 %v7800_v35, %v1273_v24  ;;  %v1444_v35 = vsel %vm1440_vm2, %v7803_v63, %v5639_v61 }
 0x7ae   : > { %v1552_v61 = vsel %vm1440_vm2, %v5533_v62, %v5730_v43  ;;  %v1606_v63 = vsel %vm1440_vm2, %v5754_v16, %v1602_v48 }
 0x7af   : > { %1957 = vrot.lane.b32.xlu1 %v1952_v50, %s4641_s4  ;;  %v2038_v23 = vrot.slane %v4223_v21, %v5763_v38  ;;  %v2101_v51 = vrot.slane %v1630_v30, %v5763_v38  ;;  %v1339_v4 = vadd.f32 %v7801_v52, %v1306_v40  ;;  %v1498_v52 = vsel %vm1440_vm2, %v7804_v36, %v5685_v42 }
 0x7b1   : > { %1959 = vrot.lane.b32.xlu0 %v4198_v11, %s4641_s4  ;;  %v2046_v3 = vrot.slane %v2038_v23, %v5763_v38  ;;  %v2039_v7 = vcombine.high %v2038_v23, %v2038_v23  ;;  %v2109_v37 = vrot.slane %v2101_v51, %v5763_v38  ;;  %v2102_v29 = vcombine.high %v2101_v51, %v2101_v51  ;;  %v1681_v23 = vld [vmem:[%s6008_s27 + $0x10] sm:$0x1]  ;;  %v4152_v51 = vld [vmem:[%s6008_s27 + $0x1] sm:$0x1] }
 0x7b2   : > { %v1372_v20 = vadd.f32 %v7802_v26, %v1339_v4  ;;  %v4162_v4 = vld [vmem:[%s6008_s27 + $0x2] sm:$0x1] }
 0x7b3   : > { %1961 = vrot.lane.b32.xlu1 %v1954_v49, %s4641_s4  ;;  %v2055_v28 = vunpack.i.h.s16 %v2046_v3  ;;  %v2053_v60 = vrot.slane %v2039_v7, %v5763_v38  ;;  %v4224_v5 = vpack.i.b16 %v2046_v3, %v2046_v3  ;;  %v2118_v53 = vunpack.i.h.s16 %v2109_v37 }
 0x7b4   : > { %v1454_v55 = vadd.f32 %v1444_v35, %v1372_v20  ;;  %v2116_v6 = vrot.slane %v2102_v29, %v5763_v38  ;;  %v4234_v59 = vpack.i.b16 %v2109_v37, %v2109_v37  ;;  %v4154_v37 = vld [vmem:[%s6008_s27 + $0x11] sm:$0x1]  ;;  %v4164_v20 = vld [vmem:[%s6008_s27 + $0x12] sm:$0x1] }
 0x7b5   : > { %1980 = vrot.lane.b32.xlu0 %v4197_v56, %s4651_s18  ;;  %v2059_v33 = vpack.i.b16 %v2055_v28, %v2055_v28  ;;  %v2057_v27 = vunpack.i.h.s16 %v2053_v60  ;;  %v4225_v1 = vpack.i.b16 %v2053_v60, %v2053_v60  ;;  %v2122_v44 = vpack.i.b16 %v2118_v53, %v2118_v53 }
 0x7b6   : > { %v1508_v26 = vadd.f32 %v1498_v52, %v1454_v55  ;;  %v2120_v10 = vunpack.i.h.s16 %v2116_v6  ;;  %v4235_v12 = vpack.i.b16 %v2116_v6, %v2116_v6 }
 0x7b7   : > { %1982 = vrot.lane.b32.xlu1 %v1952_v50, %s4651_s18  ;;  %v2061_v39 = vpack.i.b16 %v2057_v27, %v2057_v27 }
 0x7b8   : > { %v1562_v42 = vadd.f32 %v1552_v61, %v1508_v26  ;;  %v2124_v36 = vpack.i.b16 %v2120_v10, %v2120_v10  ;;  %v1687_v61 = vld [vmem:[%s6008_s27 + $0x30] sm:$0x1] }
 0x7b9   : > { %1984 = vrot.lane.b32.xlu0 %v4198_v11, %s4651_s18 }
 0x7ba   : > { %v1616_v15 = vadd.f32 %v1606_v63, %v1562_v42 }
 0x7bb   : > { %1986 = vrot.lane.b32.xlu1 %v1954_v49, %s4651_s18 }
 0x7bc   : > { %v1626_v62 = vadd.f32 %v5766_v47, %v1616_v15  ;;  %v4156_v15 = vld [vmem:[%s6008_s27 + $0x21] sm:$0x1]  ;;  %v7856_v47 = vld [vmem:[#allocation8_spill] sm:$0xff] }
 0x7bd   : > { %2005 = vrot.lane.b32.xlu0 %v4197_v56, %s4650_s11 }
 0x7be   : > { %v4260_v43 = vpack.c.bf16 %v1626_v62, %v1625_v34  ;;  %v1631_v22 = vpack.c.bf16 %v1626_v62, %v1626_v62  ;;  %v1678_v34 = vld [vmem:[%s6008_s27] sm:$0x1] }
 0x7bf   : > { %2007 = vrot.lane.b32.xlu1 %v1952_v50, %s4650_s11 }
 0x7c0   : > { %v2208_v16 = vrot.slane %v4260_v43, %v5763_v38  ;;  %v2271_v41 = vrot.slane %v1631_v22, %v5763_v38  ;;  %v7807_v22 = vmov 3  }
 0x7c1   : > { %2009 = vrot.lane.b32.xlu0 %v4198_v11, %s4650_s11 }
 0x7c2   : > { %v2216_v54 = vrot.slane %v2208_v16, %v5763_v38  ;;  %v2209_v31 = vcombine.high %v2208_v16, %v2208_v16  ;;  %v2279_v25 = vrot.slane %v2271_v41, %v5763_v38  ;;  %v2272_v17 = vcombine.high %v2271_v41, %v2271_v41  ;;  %v4158_v16 = vld [vmem:[%s6008_s27 + $0x31] sm:$0x1] }
 0x7c3   : > { %2011 = vrot.lane.b32.xlu1 %v1954_v49, %s4650_s11  ;;  %v7813_v49 = vmov 2  }
 0x7c4   : > { %v2225_v8 = vunpack.i.h.s16 %v2216_v54  ;;  %v2223_v19 = vrot.slane %v2209_v31, %v5763_v38  ;;  %v4261_v58 = vpack.i.b16 %v2216_v54, %v2216_v54  ;;  %v2288_v0 = vunpack.i.h.s16 %v2279_v25 }
 0x7c5   : > { %2062 = vrot.lane.b32.xlu0 %v4224_v5, %s4647_s30  ;;  %v2286_v11 = vrot.slane %v2272_v17, %v5763_v38  ;;  %v4271_v45 = vpack.i.b16 %v2279_v25, %v2279_v25  ;;  %v6080_v17 = vld [vmem:[%s7438_s1 + $0x1c] sm:$0xf] }
 0x7c6   : > { %v2229_v56 = vpack.i.b16 %v2225_v8, %v2225_v8  ;;  %v2227_v2 = vunpack.i.h.s16 %v2223_v19  ;;  %v4262_v50 = vpack.i.b16 %v2223_v19, %v2223_v19  ;;  %v2292_v32 = vpack.i.b16 %v2288_v0, %v2288_v0  ;;  %v4168_v8 = vld [vmem:[%s6008_s27 + $0x32] sm:$0x1] }
 0x7c7   : > { %2064 = vrot.lane.b32.xlu1 %v2059_v33, %s4647_s30  ;;  %v2290_v21 = vunpack.i.h.s16 %v2286_v11  ;;  %v4272_v24 = vpack.i.b16 %v2286_v11, %v2286_v11 }
 0x7c8   : > { %v2231_v13 = vpack.i.b16 %v2227_v2, %v2227_v2  ;;  %v4170_v2 = vld [vmem:[%s6008_s27 + $0x3] sm:$0x1] }
 0x7c9   : > { %2066 = vrot.lane.b32.xlu0 %v4225_v1, %s4647_s30  ;;  %v2294_v30 = vpack.i.b16 %v2290_v21, %v2290_v21  ;;  %v4176_v21 = vld [vmem:[%s6008_s27 + $0x33] sm:$0x1] }
 0x7cb   : > { %2068 = vrot.lane.b32.xlu1 %v2061_v39, %s4647_s30  ;;  %v1684_v39 = vld [vmem:[%s6008_s27 + $0x20] sm:$0x1] }
 0x7cd   : > { %2125 = vrot.lane.b32.xlu0 %v4234_v59, %s4641_s4 }
 0x7cf   : > { %2127 = vrot.lane.b32.xlu1 %v2122_v44, %s4641_s4 }
 0x7d1   : > { %2129 = vrot.lane.b32.xlu0 %v4235_v12, %s4641_s4 }
 0x7d3   : > { %2131 = vrot.lane.b32.xlu1 %v2124_v36, %s4641_s4 }
 0x7d5   : > { %2150 = vrot.lane.b32.xlu0 %v4234_v59, %s4651_s18 }
 0x7d7   : > { %2152 = vrot.lane.b32.xlu1 %v2122_v44, %s4651_s18 }
 0x7d9   : > { %2154 = vrot.lane.b32.xlu0 %v4235_v12, %s4651_s18 }
 0x7db   : > { %2156 = vrot.lane.b32.xlu1 %v2124_v36, %s4651_s18 }
 0x7dd   : > { %2175 = vrot.lane.b32.xlu0 %v4234_v59, %s4650_s11  ;;  %v6050_v59 = vld [vmem:[%s7438_s1 + $0x18] sm:$0xf] }
 0x7df   : > { %2177 = vrot.lane.b32.xlu1 %v2122_v44, %s4650_s11 }
 0x7e1   : > { %2179 = vrot.lane.b32.xlu0 %v4235_v12, %s4650_s11 }
 0x7e3   : > { %2181 = vrot.lane.b32.xlu1 %v2124_v36, %s4650_s11  ;;  %v4166_v36 = vld [vmem:[%s6008_s27 + $0x22] sm:$0x1] }
 0x7e5   : > { %2232 = vrot.lane.b32.xlu0 %v4261_v58, %s4647_s30 }
 0x7e7   : > { %2234 = vrot.lane.b32.xlu1 %v2229_v56, %s4647_s30 }
 0x7e9   : > { %2236 = vrot.lane.b32.xlu0 %v4262_v50, %s4647_s30 }
 0x7eb   : > { %2238 = vrot.lane.b32.xlu1 %v2231_v13, %s4647_s30  ;;  %v4172_v13 = vld [vmem:[%s6008_s27 + $0x13] sm:$0x1] }
 0x7ed   : > { %2295 = vrot.lane.b32.xlu0 %v4271_v45, %s4641_s4 }
 0x7ef   : > { %v1664_v46 = vpop.permute.xlu0 %1663  ;;  %2297 = vrot.lane.b32.xlu1 %v2292_v32, %s4641_s4 }
 0x7f0   : > { %v1679_v3 = vsel %vm6004_vm7, %v1664_v46, %v1678_v34 }
 0x7f1   : > { %1680 = vst [vmem:[%s6008_s27] sm:$0x1] %v1679_v3  ;;  %v1666_v7 = vpop.permute.xlu1 %1665  ;;  %2299 = vrot.lane.b32.xlu0 %v4272_v24, %s4641_s4  ;;  %v7808_v3 = vmov 1  }
 0x7f2   : > { %v1682_v40 = vsel %vm6004_vm7, %v1666_v7, %v1681_v23 }
 0x7f3   : > { %1683 = vst [vmem:[%s6008_s27 + $0x10] sm:$0x1] %v1682_v40  ;;  %v1723_v28 = vpop.permute.xlu0 %1722  ;;  %2301 = vrot.lane.b32.xlu1 %v2294_v30, %s4641_s4  ;;  %v4180_v40 = vld [vmem:[%s6008_s27 + $0x14] sm:$0x1] }
 0x7f4   : > { %v1730_v60 = vrot.slane %v1723_v28, 1 }
 0x7f5   : > { %v1725_v5 = vpop.permute.xlu1 %1724  ;;  %2320 = vrot.lane.b32.xlu0 %v4271_v45, %s4651_s18  ;;  %v4174_v45 = vld [vmem:[%s6008_s27 + $0x23] sm:$0x1] }
 0x7f6   : > { %v1734_v33 = vsel %vm1381_vm6, %v1723_v28, %v1730_v60  ;;  %v1731_v27 = vrot.slane %v1725_v5, 1 }
 0x7f7   : > { %v1744_v29 = vsel %vm6004_vm7, %v1734_v33, %v4152_v51  ;;  %v1786_v35 = vpop.permute.xlu0 %1785  ;;  %2322 = vrot.lane.b32.xlu1 %v2292_v32, %s4651_s18  ;;  %v4182_v51 = vld [vmem:[%s6008_s27 + $0x24] sm:$0x1]  ;;  %v4184_v33 = vld [vmem:[%s6008_s27 + $0x34] sm:$0x1] }
 0x7f8   : > { %4153 = vst [vmem:[%s6008_s27 + $0x1] sm:$0x1] %v1744_v29  ;;  %v1735_v1 = vsel %vm1381_vm6, %v1725_v5, %v1731_v27  ;;  %v1799_v52 = vsel %vm6004_vm7, %v1786_v35, %v4162_v4 }
 0x7f9   : > { %v1747_v55 = vsel %vm6004_vm7, %v1735_v1, %v4154_v37  ;;  %4163 = vst [vmem:[%s6008_s27 + $0x2] sm:$0x1] %v1799_v52  ;;  %v1788_v48 = vpop.permute.xlu1 %1787  ;;  %2324 = vrot.lane.b32.xlu0 %v4272_v24, %s4651_s18  ;;  %v4178_v24 = vld [vmem:[%s6008_s27 + $0x4] sm:$0x1]  ;;  %v4189_v1 = vld [vmem:[%s6008_s27 + $0x5] sm:$0x1] }
 0x7fa   : > { %4155 = vst [vmem:[%s6008_s27 + $0x11] sm:$0x1] %v1747_v55  ;;  %v1802_v53 = vsel %vm6004_vm7, %v1788_v48, %v4164_v20 }
 0x7fb   : > { %4165 = vst [vmem:[%s6008_s27 + $0x12] sm:$0x1] %v1802_v53  ;;  %v1668_v6 = vpop.permute.xlu0 %1667  ;;  %2326 = vrot.lane.b32.xlu1 %v2294_v30, %s4651_s18 }
 0x7fc   : > { %v1685_v26 = vsel %vm6004_vm7, %v1668_v6, %v1684_v39  ;;  %v4191_v39 = vld [vmem:[%s6008_s27 + $0x15] sm:$0x1] }
 0x7fd   : > { %1686 = vst [vmem:[%s6008_s27 + $0x20] sm:$0x1] %v1685_v26  ;;  %v1670_v63 = vpop.permute.xlu1 %1669 }
 0x7fe   : > { %v1688_v42 = vsel %vm6004_vm7, %v1670_v63, %v1687_v61  ;;  %v4193_v63 = vld [vmem:[%s6008_s27 + $0x25] sm:$0x1] }
 0x7ff   : > { %1689 = vst [vmem:[%s6008_s27 + $0x30] sm:$0x1] %v1688_v42  ;;  %v1727_v44 = vpop.permute.xlu0 %1726  ;;  %2363 = vperm.xlu1 %4536, %v6050_v59  }
 0x800   : > { %v1732_v10 = vrot.slane %v1727_v44, 1 }
 0x801   : > { %v1729_v12 = vpop.permute.xlu1 %1728 }
 0x802   : > { %v1736_v62 = vsel %vm1381_vm6, %v1727_v44, %v1732_v10  ;;  %v1733_v43 = vrot.slane %v1729_v12, 1  ;;  %v4199_v10 = vld [vmem:[%s6008_s27 + $0x6] sm:$0x1] }
 0x803   : > { %v1750_v54 = vsel %vm6004_vm7, %v1736_v62, %v4156_v15  ;;  %v1790_v31 = vpop.permute.xlu0 %1789  ;;  %4537 = vset.pattern.permute.xlu1 %v7807_v22 }
 0x804   : > { %4157 = vst [vmem:[%s6008_s27 + $0x21] sm:$0x1] %v1750_v54  ;;  %v1737_v19 = vsel %vm1381_vm6, %v1729_v12, %v1733_v43  ;;  %v1805_v41 = vsel %vm6004_vm7, %v1790_v31, %v4166_v36  ;;  %2391 = vperm.xlu1 %4537, %v6050_v59   ;;  %v4195_v36 = vld [vmem:[%s6008_s27 + $0x35] sm:$0x1] }
 0x805   : > { %v1753_v58 = vsel %vm6004_vm7, %v1737_v19, %v4158_v16  ;;  %4167 = vst [vmem:[%s6008_s27 + $0x22] sm:$0x1] %v1805_v41  ;;  %v1792_v56 = vpop.permute.xlu1 %1791  ;;  %v4201_v16 = vld [vmem:[%s6008_s27 + $0x16] sm:$0x1]  ;;  %v4203_v41 = vld [vmem:[%s6008_s27 + $0x26] sm:$0x1] }
 0x806   : > { %4159 = vst [vmem:[%s6008_s27 + $0x31] sm:$0x1] %v1753_v58  ;;  %v1808_v25 = vsel %vm6004_vm7, %v1792_v56, %v4168_v8 }
 0x807   : > { %4169 = vst [vmem:[%s6008_s27 + $0x32] sm:$0x1] %v1808_v25  ;;  %v1811_v50 = vpop.permute.xlu0 %1810 }
 0x808   : > { %v1824_v0 = vsel %vm6004_vm7, %v1811_v50, %v4170_v2  ;;  %4538 = vset.pattern.permute.xlu1 %v7690_v14  ;;  %v4205_v2 = vld [vmem:[%s6008_s27 + $0x36] sm:$0x1] }
 0x809   : > { %4171 = vst [vmem:[%s6008_s27 + $0x3] sm:$0x1] %v1824_v0  ;;  %v1813_v11 = vpop.permute.xlu1 %1812  ;;  %2408 = vperm.xlu1 %4538, %v6080_v17  }
 0x80a   : > { %v1827_v34 = vsel %vm6004_vm7, %v1813_v11, %v4172_v13  ;;  %v4207_v13 = vld [vmem:[%s6008_s27 + $0x7] sm:$0x1] }
 0x80b   : > { %4173 = vst [vmem:[%s6008_s27 + $0x13] sm:$0x1] %v1827_v34  ;;  %v1815_v32 = vpop.permute.xlu0 %1814 }
 0x80c   : > { %v1830_v46 = vsel %vm6004_vm7, %v1815_v32, %v4174_v45  ;;  %v4209_v45 = vld [vmem:[%s6008_s27 + $0x17] sm:$0x1] }
 0x80d   : > { %4175 = vst [vmem:[%s6008_s27 + $0x23] sm:$0x1] %v1830_v46  ;;  %v1817_v23 = vpop.permute.xlu1 %1816  ;;  %4543 = vset.pattern.permute.xlu1 %v7808_v3 }
 0x80e   : > { %v1833_v7 = vsel %vm6004_vm7, %v1817_v23, %v4176_v21  ;;  %v4211_v21 = vld [vmem:[%s6008_s27 + $0x27] sm:$0x1] }
 0x80f   : > { %4177 = vst [vmem:[%s6008_s27 + $0x33] sm:$0x1] %v1833_v7  ;;  %v1836_v30 = vpop.permute.xlu0 %1835 }
 0x810   : > { %v1849_v28 = vsel %vm6004_vm7, %v1836_v30, %v4178_v24  ;;  %v4213_v24 = vld [vmem:[%s6008_s27 + $0x37] sm:$0x1] }
 0x811   : > { %4179 = vst [vmem:[%s6008_s27 + $0x4] sm:$0x1] %v1849_v28  ;;  %v1838_v60 = vpop.permute.xlu1 %1837 }
 0x812   : > { %v1852_v5 = vsel %vm6004_vm7, %v1838_v60, %v4180_v40  ;;  %v4215_v40 = vld [vmem:[%s6008_s27 + $0x8] sm:$0x1] }
 0x813   : > { %4181 = vst [vmem:[%s6008_s27 + $0x14] sm:$0x1] %v1852_v5  ;;  %v1840_v4 = vpop.permute.xlu0 %1839 }
 0x814   : > { %v1855_v27 = vsel %vm6004_vm7, %v1840_v4, %v4182_v51  ;;  %v4217_v51 = vld [vmem:[%s6008_s27 + $0x18] sm:$0x1] }
 0x815   : > { %4183 = vst [vmem:[%s6008_s27 + $0x24] sm:$0x1] %v1855_v27  ;;  %v1842_v37 = vpop.permute.xlu1 %1841 }
 0x816   : > { %v1858_v29 = vsel %vm6004_vm7, %v1842_v37, %v4184_v33  ;;  %v4219_v33 = vld [vmem:[%s6008_s27 + $0x28] sm:$0x1] }
 0x817   : > { %4185 = vst [vmem:[%s6008_s27 + $0x34] sm:$0x1] %v1858_v29  ;;  %v1893_v35 = vpop.permute.xlu0 %1892  ;;  %v4221_v29 = vld [vmem:[%s6008_s27 + $0x38] sm:$0x1] }
 0x818   : > { %v1900_v20 = vrot.slane %v1893_v35, 1 }
 0x819   : > { %v1895_v52 = vpop.permute.xlu1 %1894 }
 0x81a   : > { %v1904_v55 = vsel %vm1381_vm6, %v1893_v35, %v1900_v20  ;;  %v1901_v48 = vrot.slane %v1895_v52, 1 }
 0x81b   : > { %v1914_v53 = vsel %vm6004_vm7, %v1904_v55, %v4189_v1  ;;  %v1897_v6 = vpop.permute.xlu0 %1896 }
 0x81c   : > { %4190 = vst [vmem:[%s6008_s27 + $0x5] sm:$0x1] %v1914_v53  ;;  %v1905_v61 = vsel %vm1381_vm6, %v1895_v52, %v1901_v48  ;;  %v1902_v26 = vrot.slane %v1897_v6, 1  ;;  %v4226_v48 = vld [vmem:[%s6008_s27 + $0x9] sm:$0x1] }
 0x81d   : > { %v1917_v42 = vsel %vm6004_vm7, %v1905_v61, %v4191_v39  ;;  %v1899_v44 = vpop.permute.xlu1 %1898  ;;  %v4228_v61 = vld [vmem:[%s6008_s27 + $0x19] sm:$0x1] }
 0x81e   : > { %4192 = vst [vmem:[%s6008_s27 + $0x15] sm:$0x1] %v1917_v42  ;;  %v1906_v15 = vsel %vm1381_vm6, %v1897_v6, %v1902_v26  ;;  %v1903_v12 = vrot.slane %v1899_v44, 1 }
 0x81f   : > { %v1920_v62 = vsel %vm6004_vm7, %v1906_v15, %v4193_v63  ;;  %v1956_v43 = vpop.permute.xlu0 %1955 }
 0x820   : > { %4194 = vst [vmem:[%s6008_s27 + $0x25] sm:$0x1] %v1920_v62  ;;  %v1907_v54 = vsel %vm1381_vm6, %v1899_v44, %v1903_v12  ;;  %v1969_v31 = vsel %vm6004_vm7, %v1956_v43, %v4199_v10  ;;  %v4230_v10 = vld [vmem:[%s6008_s27 + $0x29] sm:$0x1] }
 0x821   : > { %v1923_v8 = vsel %vm6004_vm7, %v1907_v54, %v4195_v36  ;;  %4200 = vst [vmem:[%s6008_s27 + $0x6] sm:$0x1] %v1969_v31  ;;  %v1958_v19 = vpop.permute.xlu1 %1957  ;;  %v4236_v36 = vld [vmem:[%s6008_s27 + $0xa] sm:$0x1] }
 0x822   : > { %4196 = vst [vmem:[%s6008_s27 + $0x35] sm:$0x1] %v1923_v8  ;;  %v1972_v58 = vsel %vm6004_vm7, %v1958_v19, %v4201_v16  ;;  %v4232_v16 = vld [vmem:[%s6008_s27 + $0x39] sm:$0x1]  ;;  %v4238_v8 = vld [vmem:[%s6008_s27 + $0x1a] sm:$0x1] }
 0x823   : > { %4202 = vst [vmem:[%s6008_s27 + $0x16] sm:$0x1] %v1972_v58  ;;  %v1960_v56 = vpop.permute.xlu0 %1959 }
 0x824   : > { %v1975_v25 = vsel %vm6004_vm7, %v1960_v56, %v4203_v41 }
 0x825   : > { %4204 = vst [vmem:[%s6008_s27 + $0x26] sm:$0x1] %v1975_v25  ;;  %v1962_v50 = vpop.permute.xlu1 %1961 }
 0x826   : > { %v1978_v0 = vsel %vm6004_vm7, %v1962_v50, %v4205_v2  ;;  %v4240_v2 = vld [vmem:[%s6008_s27 + $0x2a] sm:$0x1] }
 0x827   : > { %4206 = vst [vmem:[%s6008_s27 + $0x36] sm:$0x1] %v1978_v0  ;;  %v1981_v11 = vpop.permute.xlu0 %1980 }
 0x828   : > { %v1994_v34 = vsel %vm6004_vm7, %v1981_v11, %v4207_v13  ;;  %v4242_v13 = vld [vmem:[%s6008_s27 + $0x3a] sm:$0x1] }
 0x829   : > { %4208 = vst [vmem:[%s6008_s27 + $0x7] sm:$0x1] %v1994_v34  ;;  %v1983_v32 = vpop.permute.xlu1 %1982 }
 0x82a   : > { %v1997_v46 = vsel %vm6004_vm7, %v1983_v32, %v4209_v45  ;;  %v4244_v45 = vld [vmem:[%s6008_s27 + $0xb] sm:$0x1] }
 0x82b   : > { %4210 = vst [vmem:[%s6008_s27 + $0x17] sm:$0x1] %v1997_v46  ;;  %v1985_v23 = vpop.permute.xlu0 %1984 }
 0x82c   : > { %v2000_v7 = vsel %vm6004_vm7, %v1985_v23, %v4211_v21  ;;  %v4246_v21 = vld [vmem:[%s6008_s27 + $0x1b] sm:$0x1] }
 0x82d   : > { %4212 = vst [vmem:[%s6008_s27 + $0x27] sm:$0x1] %v2000_v7  ;;  %v1987_v30 = vpop.permute.xlu1 %1986 }
 0x82e   : > { %v2003_v28 = vsel %vm6004_vm7, %v1987_v30, %v4213_v24  ;;  %v4248_v24 = vld [vmem:[%s6008_s27 + $0x2b] sm:$0x1] }
 0x82f   : > { %4214 = vst [vmem:[%s6008_s27 + $0x37] sm:$0x1] %v2003_v28  ;;  %v2006_v60 = vpop.permute.xlu0 %2005 }
 0x830   : > { %v2019_v5 = vsel %vm6004_vm7, %v2006_v60, %v4215_v40  ;;  %v4250_v40 = vld [vmem:[%s6008_s27 + $0x3b] sm:$0x1] }
 0x831   : > { %4216 = vst [vmem:[%s6008_s27 + $0x8] sm:$0x1] %v2019_v5  ;;  %v2008_v4 = vpop.permute.xlu1 %2007 }
 0x832   : > { %v2022_v27 = vsel %vm6004_vm7, %v2008_v4, %v4217_v51  ;;  %v4252_v51 = vld [vmem:[%s6008_s27 + $0xc] sm:$0x1] }
 0x833   : > { %4218 = vst [vmem:[%s6008_s27 + $0x18] sm:$0x1] %v2022_v27  ;;  %v2010_v37 = vpop.permute.xlu0 %2009 }
 0x834   : > { %v2025_v35 = vsel %vm6004_vm7, %v2010_v37, %v4219_v33  ;;  %v4254_v33 = vld [vmem:[%s6008_s27 + $0x1c] sm:$0x1] }
 0x835   : > { %4220 = vst [vmem:[%s6008_s27 + $0x28] sm:$0x1] %v2025_v35  ;;  %v2012_v20 = vpop.permute.xlu1 %2011 }
 0x836   : > { %v2028_v1 = vsel %vm6004_vm7, %v2012_v20, %v4221_v29  ;;  %v4256_v29 = vld [vmem:[%s6008_s27 + $0x2c] sm:$0x1] }
 0x837   : > { %4222 = vst [vmem:[%s6008_s27 + $0x38] sm:$0x1] %v2028_v1  ;;  %v2063_v52 = vpop.permute.xlu0 %2062  ;;  %v4258_v1 = vld [vmem:[%s6008_s27 + $0x3c] sm:$0x1] }
 0x838   : > { %v2070_v55 = vrot.slane %v2063_v52, 1 }
 0x839   : > { %v2065_v39 = vpop.permute.xlu1 %2064 }
 0x83a   : > { %v2074_v53 = vsel %vm1381_vm6, %v2063_v52, %v2070_v55  ;;  %v2071_v6 = vrot.slane %v2065_v39, 1 }
 0x83b   : > { %v2084_v26 = vsel %vm6004_vm7, %v2074_v53, %v4226_v48  ;;  %v2067_v63 = vpop.permute.xlu0 %2066 }
 0x83c   : > { %4227 = vst [vmem:[%s6008_s27 + $0x9] sm:$0x1] %v2084_v26  ;;  %v2075_v42 = vsel %vm1381_vm6, %v2065_v39, %v2071_v6  ;;  %v2072_v44 = vrot.slane %v2067_v63, 1  ;;  %v4263_v6 = vld [vmem:[%s6008_s27 + $0xd] sm:$0x1] }
 0x83d   : > { %v2087_v15 = vsel %vm6004_vm7, %v2075_v42, %v4228_v61  ;;  %v2069_v12 = vpop.permute.xlu1 %2068  ;;  %v4265_v42 = vld [vmem:[%s6008_s27 + $0x1d] sm:$0x1] }
 0x83e   : > { %4229 = vst [vmem:[%s6008_s27 + $0x19] sm:$0x1] %v2087_v15  ;;  %v2076_v62 = vsel %vm1381_vm6, %v2067_v63, %v2072_v44  ;;  %v2073_v43 = vrot.slane %v2069_v12, 1 }
 0x83f   : > { %v2090_v54 = vsel %vm6004_vm7, %v2076_v62, %v4230_v10  ;;  %v2126_v31 = vpop.permute.xlu0 %2125 }
 0x840   : > { %4231 = vst [vmem:[%s6008_s27 + $0x29] sm:$0x1] %v2090_v54  ;;  %v2077_v19 = vsel %vm1381_vm6, %v2069_v12, %v2073_v43  ;;  %v2139_v41 = vsel %vm6004_vm7, %v2126_v31, %v4236_v36  ;;  %v4267_v36 = vld [vmem:[%s6008_s27 + $0x2d] sm:$0x1] }
 0x841   : > { %v2093_v58 = vsel %vm6004_vm7, %v2077_v19, %v4232_v16  ;;  %4237 = vst [vmem:[%s6008_s27 + $0xa] sm:$0x1] %v2139_v41  ;;  %v2128_v56 = vpop.permute.xlu1 %2127  ;;  %v4273_v16 = vld [vmem:[%s6008_s27 + $0xe] sm:$0x1] }
 0x842   : > { %4233 = vst [vmem:[%s6008_s27 + $0x39] sm:$0x1] %v2093_v58  ;;  %v2142_v25 = vsel %vm6004_vm7, %v2128_v56, %v4238_v8  ;;  %v4269_v8 = vld [vmem:[%s6008_s27 + $0x3d] sm:$0x1]  ;;  %v4275_v58 = vld [vmem:[%s6008_s27 + $0x1e] sm:$0x1] }
 0x843   : > { %4239 = vst [vmem:[%s6008_s27 + $0x1a] sm:$0x1] %v2142_v25  ;;  %v2130_v50 = vpop.permute.xlu0 %2129 }
 0x844   : > { %v2145_v0 = vsel %vm6004_vm7, %v2130_v50, %v4240_v2 }
 0x845   : > { %4241 = vst [vmem:[%s6008_s27 + $0x2a] sm:$0x1] %v2145_v0  ;;  %v2132_v11 = vpop.permute.xlu1 %2131 }
 0x846   : > { %v2148_v34 = vsel %vm6004_vm7, %v2132_v11, %v4242_v13  ;;  %v4277_v13 = vld [vmem:[%s6008_s27 + $0x2e] sm:$0x1] }
 0x847   : > { %4243 = vst [vmem:[%s6008_s27 + $0x3a] sm:$0x1] %v2148_v34  ;;  %v2151_v32 = vpop.permute.xlu0 %2150 }
 0x848   : > { %v2164_v46 = vsel %vm6004_vm7, %v2151_v32, %v4244_v45  ;;  %v4279_v45 = vld [vmem:[%s6008_s27 + $0x3e] sm:$0x1] }
 0x849   : > { %4245 = vst [vmem:[%s6008_s27 + $0xb] sm:$0x1] %v2164_v46  ;;  %v2153_v23 = vpop.permute.xlu1 %2152 }
 0x84a   : > { %v2167_v7 = vsel %vm6004_vm7, %v2153_v23, %v4246_v21  ;;  %v4281_v21 = vld [vmem:[%s6008_s27 + $0xf] sm:$0x1] }
 0x84b   : > { %4247 = vst [vmem:[%s6008_s27 + $0x1b] sm:$0x1] %v2167_v7  ;;  %v2155_v30 = vpop.permute.xlu0 %2154 }
 0x84c   : > { %v2170_v28 = vsel %vm6004_vm7, %v2155_v30, %v4248_v24  ;;  %v4283_v24 = vld [vmem:[%s6008_s27 + $0x1f] sm:$0x1] }
 0x84d   : > { %4249 = vst [vmem:[%s6008_s27 + $0x2b] sm:$0x1] %v2170_v28  ;;  %v2157_v60 = vpop.permute.xlu1 %2156 }
 0x84e   : > { %v2173_v5 = vsel %vm6004_vm7, %v2157_v60, %v4250_v40  ;;  %v4285_v40 = vld [vmem:[%s6008_s27 + $0x2f] sm:$0x1] }
 0x84f   : > { %4251 = vst [vmem:[%s6008_s27 + $0x3b] sm:$0x1] %v2173_v5  ;;  %v2176_v4 = vpop.permute.xlu0 %2175 }
 0x850   : > { %v2189_v27 = vsel %vm6004_vm7, %v2176_v4, %v4252_v51  ;;  %v4287_v51 = vld [vmem:[%s6008_s27 + $0x3f] sm:$0x1] }
 0x851   : > { %4253 = vst [vmem:[%s6008_s27 + $0xc] sm:$0x1] %v2189_v27  ;;  %v2178_v37 = vpop.permute.xlu1 %2177 }
 0x852   : > { %v2192_v35 = vsel %vm6004_vm7, %v2178_v37, %v4254_v33 }
 0x853   : > { %4255 = vst [vmem:[%s6008_s27 + $0x1c] sm:$0x1] %v2192_v35  ;;  %v2180_v20 = vpop.permute.xlu0 %2179  ;;  %v7809_v35 = vld [vmem:[#allocation23_spill] sm:$0xff] }
 0x854   : > { %v2195_v52 = vsel %vm6004_vm7, %v2180_v20, %v4256_v29 }
 0x855   : > { %4257 = vst [vmem:[%s6008_s27 + $0x2c] sm:$0x1] %v2195_v52  ;;  %v2182_v55 = vpop.permute.xlu1 %2181 }
 0x856   : > { %v2198_v48 = vsel %vm6004_vm7, %v2182_v55, %v4258_v1  ;;  %v7810_v1 = vld [vmem:[#allocation21_spill] sm:$0xff]  ;;  %v7811_v55 = vld [vmem:[#allocation26_spill] sm:$0xff] }
 0x857   : > { %4259 = vst [vmem:[%s6008_s27 + $0x3c] sm:$0x1] %v2198_v48  ;;  %v2233_v39 = vpop.permute.xlu0 %2232 }
 0x858   : > { %v2240_v53 = vrot.slane %v2233_v39, 1 }
 0x859   : > { %v2235_v61 = vpop.permute.xlu1 %2234 }
 0x85a   : > { %v2244_v26 = vsel %vm1381_vm6, %v2233_v39, %v2240_v53  ;;  %v2241_v63 = vrot.slane %v2235_v61, 1  ;;  %v7812_v39 = vld [vmem:[#allocation24_spill] sm:$0xff] }
 0x85b   : > { %v2254_v44 = vsel %vm6004_vm7, %v2244_v26, %v4263_v6  ;;  %v2237_v10 = vpop.permute.xlu0 %2236 }
 0x85c   : > { %4264 = vst [vmem:[%s6008_s27 + $0xd] sm:$0x1] %v2254_v44  ;;  %v2245_v15 = vsel %vm1381_vm6, %v2235_v61, %v2241_v63  ;;  %v2242_v12 = vrot.slane %v2237_v10, 1  ;;  %v7815_v63 = vld [vmem:[#allocation31_spill] sm:$0xff]  ;;  %v7816_v44 = vld [vmem:[#allocation29_spill] sm:$0xff] }
 0x85d   : > { %v2257_v62 = vsel %vm6004_vm7, %v2245_v15, %v4265_v42  ;;  %v2239_v43 = vpop.permute.xlu1 %2238  ;;  %v7817_v15 = vld [vmem:[#allocation25_spill] sm:$0xff] }
 0x85e   : > { %4266 = vst [vmem:[%s6008_s27 + $0x1d] sm:$0x1] %v2257_v62  ;;  %v2246_v54 = vsel %vm1381_vm6, %v2237_v10, %v2242_v12  ;;  %v2243_v31 = vrot.slane %v2239_v43, 1 }
 0x85f   : > { %v2260_v19 = vsel %vm6004_vm7, %v2246_v54, %v4267_v36  ;;  %v2296_v41 = vpop.permute.xlu0 %2295  ;;  %v7818_v36 = vld [vmem:[#allocation27_spill] sm:$0xff] }
 0x860   : > { %4268 = vst [vmem:[%s6008_s27 + $0x2d] sm:$0x1] %v2260_v19  ;;  %v2247_v56 = vsel %vm1381_vm6, %v2239_v43, %v2243_v31  ;;  %v2309_v2 = vsel %vm6004_vm7, %v2296_v41, %v4273_v16  ;;  %v7819_v31 = vld [vmem:[#allocation35_spill] sm:$0xff]  ;;  %v7820_v19 = vld [vmem:[#allocation33_spill] sm:$0xff] }
 0x861   : > { %v2263_v25 = vsel %vm6004_vm7, %v2247_v56, %v4269_v8  ;;  %4274 = vst [vmem:[%s6008_s27 + $0xe] sm:$0x1] %v2309_v2  ;;  %v2298_v50 = vpop.permute.xlu1 %2297  ;;  %v7822_v2 = vld [vmem:[#allocation32_spill] sm:$0xff] }
 0x862   : > { %4270 = vst [vmem:[%s6008_s27 + $0x3d] sm:$0x1] %v2263_v25  ;;  %v2312_v0 = vsel %vm6004_vm7, %v2298_v50, %v4275_v58  ;;  %v7821_v58 = vld [vmem:[#allocation30_spill] sm:$0xff] }
 0x863   : > { %4276 = vst [vmem:[%s6008_s27 + $0x1e] sm:$0x1] %v2312_v0  ;;  %v2300_v11 = vpop.permute.xlu0 %2299  ;;  %v7823_v0 = vld [vmem:[#allocation39_spill] sm:$0xff] }
 0x864   : > { %v2315_v34 = vsel %vm6004_vm7, %v2300_v11, %v4277_v13 }
 0x865   : > { %4278 = vst [vmem:[%s6008_s27 + $0x2e] sm:$0x1] %v2315_v34  ;;  %v2302_v32 = vpop.permute.xlu1 %2301 }
 0x866   : > { %v2318_v46 = vsel %vm6004_vm7, %v2302_v32, %v4279_v45  ;;  %v7824_v45 = vld [vmem:[#allocation37_spill] sm:$0xff]  ;;  %v7825_v32 = vld [vmem:[#allocation36_spill] sm:$0xff] }
 0x867   : > { %4280 = vst [vmem:[%s6008_s27 + $0x3e] sm:$0x1] %v2318_v46  ;;  %v2321_v23 = vpop.permute.xlu0 %2320 }
 0x868   : > { %v2334_v7 = vsel %vm6004_vm7, %v2321_v23, %v4281_v21 }
 0x869   : > { %4282 = vst [vmem:[%s6008_s27 + $0xf] sm:$0x1] %v2334_v7  ;;  %v2323_v30 = vpop.permute.xlu1 %2322 }
 0x86a   : > { %v2337_v28 = vsel %vm6004_vm7, %v2323_v30, %v4283_v24  ;;  %v7827_v30 = vld [vmem:[#allocation106_spill] sm:$0xff] }
 0x86b   : > { %4284 = vst [vmem:[%s6008_s27 + $0x1f] sm:$0x1] %v2337_v28  ;;  %v2325_v60 = vpop.permute.xlu0 %2324  ;;  %v7828_v28 = vld [vmem:[#allocation107_spill] sm:$0xff] }
 0x86c   : > { %v2340_v5 = vsel %vm6004_vm7, %v2325_v60, %v4285_v40 }
 0x86d   : > { %4286 = vst [vmem:[%s6008_s27 + $0x2f] sm:$0x1] %v2340_v5  ;;  %v2327_v4 = vpop.permute.xlu1 %2326 }
 0x86e   : > { %v2343_v33 = vsel %vm6004_vm7, %v2327_v4, %v4287_v51  ;;  %v7829_v51 = vld [vmem:[#allocation20_spill] sm:$0xff] }
 0x86f   : > { %4288 = vst [vmem:[%s6008_s27 + $0x3f] sm:$0x1] %v2343_v33  ;;  %v7830_v4 = vld [vmem:[#allocation108_spill] sm:$0xff] }
 0x87e   : > { %v6305_v27 = vpop.permute.xlu1 %2363 }
 0x883   : > { %v6307_v37 = vpop.permute.xlu1 %2391 }
 0x888   : > { %v2409_v29 = vpop.permute.xlu1 %2408 }
 0x889   : > { %v2412_v20 = vmul.f32 %v2409_v29, %v7809_v35  ;;  %v2411_v52 = vmul.f32 %v2409_v29, %v7810_v1  ;;  %v2414_v48 = vmul.f32 %v2409_v29, %v7811_v55  ;;  %v2413_v53 = vmul.f32 %v2409_v29, %v7812_v39  ;;  %v7831_v29 = vld [vmem:[#allocation109_spill] sm:$0xff] }
 0x88b   : > { %2421 = vrot.lane.b32.xlu1 %v2412_v20, %s4643_s5  ;;  %2419 = vrot.lane.b32.xlu0 %v2411_v52, %s4643_s5 }
 0x88f   : > { %2425 = vrot.lane.b32.xlu1 %v2414_v48, %s4643_s5  ;;  %2423 = vrot.lane.b32.xlu0 %v2413_v53, %s4643_s5 }
 0x893   : > { %2441 = vperm.xlu0 %4539, %v6080_v17  }
 0x897   : > { %4540 = vset.pattern.permute.xlu0 %v7813_v49 }
 0x898   : > { %2377 = vperm.xlu0 %4540, %v6050_v59  }
 0x8fd   : > { %v6320_v6 = vpop.permute.xlu0 %2419  ;;  %v6377_v52 = vpop.permute.xlu1 %2421 }
 0x8fe   : > { %7814 = vst [vmem:[#allocation87_spill] sm:$0xff] %v6320_v6 }
 0x901   : > { %v6322_v61 = vpop.permute.xlu0 %2423  ;;  %v6379_v48 = vpop.permute.xlu1 %2425 }
 0x912   : > { %v2442_v26 = vpop.permute.xlu0 %2441 }
 0x913   : > { %v2446_v42 = vmul.f32 %v2442_v26, %v7815_v63  ;;  %v2444_v10 = vmul.f32 %v2442_v26, %v7816_v44  ;;  %v2445_v12 = vmul.f32 %v2442_v26, %v7817_v15  ;;  %v2447_v62 = vmul.f32 %v2442_v26, %v7818_v36 }
 0x915   : > { %2456 = vrot.lane.b32.xlu0 %v2446_v42, %s4643_s5  ;;  %2452 = vrot.lane.b32.xlu1 %v2444_v10, %s4643_s5 }
 0x917   : > { %v6334_v43 = vpop.permute.xlu0 %2377 }
 0x919   : > { %2474 = vperm.xlu0 %4540, %v6080_v17   ;;  %2454 = vrot.lane.b32.xlu1 %v2445_v12, %s4643_s5 }
 0x91d   : > { %2458 = vrot.lane.b32.xlu1 %v2447_v62, %s4643_s5  ;;  %4541 = vset.pattern.permute.xlu0 %v7807_v22 }
 0x987   : > { %v6336_v16 = vpop.permute.xlu0 %2456  ;;  %v6381_v53 = vpop.permute.xlu1 %2452 }
 0x988   : > { %7832 = vst [vmem:[#allocation51_spill] sm:$0xff] %v6381_v53 }
 0x98b   : > { %v6383_v26 = vpop.permute.xlu1 %2454 }
 0x98f   : > { %v6385_v42 = vpop.permute.xlu1 %2458 }
 0x998   : > { %v2475_v54 = vpop.permute.xlu0 %2474 }
 0x999   : > { %v2479_v8 = vmul.f32 %v2475_v54, %v7819_v31  ;;  %v2477_v41 = vmul.f32 %v2475_v54, %v7820_v19  ;;  %v2478_v56 = vmul.f32 %v2475_v54, %v7821_v58  ;;  %v2480_v25 = vmul.f32 %v2475_v54, %v7822_v2 }
 0x99b   : > { %2489 = vrot.lane.b32.xlu0 %v2479_v8, %s4643_s5  ;;  %2485 = vrot.lane.b32.xlu1 %v2477_v41, %s4643_s5 }
 0x99f   : > { %2507 = vperm.xlu0 %4541, %v6080_v17   ;;  %2487 = vrot.lane.b32.xlu1 %v2478_v56, %s4643_s5  ;;  %v4291_v17 = vld [vmem:[%s7438_s1 + $0x20] sm:$0xf] }
 0x9a3   : > { %4542 = vset.pattern.permute.xlu0 %v7690_v14  ;;  %2491 = vrot.lane.b32.xlu1 %v2480_v25, %s4643_s5 }
 0x9a4   : > { %2349 = vperm.xlu0 %4542, %v6050_v59   ;;  %v7826_v59 = vld [vmem:[#allocation38_spill] sm:$0xff] }
 0xa0d   : > { %v6349_v50 = vpop.permute.xlu0 %2489  ;;  %v6387_v10 = vpop.permute.xlu1 %2485 }
 0xa0e   : > { %7833 = vst [vmem:[#allocation80_spill] sm:$0xff] %v6387_v10 }
 0xa11   : > { %v6389_v12 = vpop.permute.xlu1 %2487 }
 0xa15   : > { %v6391_v62 = vpop.permute.xlu1 %2491 }
 0xa1e   : > { %v2508_v13 = vpop.permute.xlu0 %2507 }
 0xa1f   : > { %v2512_v11 = vmul.f32 %v2508_v13, %v7823_v0  ;;  %v2510_v34 = vmul.f32 %v2508_v13, %v7824_v45  ;;  %v2511_v21 = vmul.f32 %v2508_v13, %v7825_v32  ;;  %v2513_v46 = vmul.f32 %v2508_v13, %v7826_v59 }
 0xa21   : > { %2522 = vrot.lane.b32.xlu0 %v2512_v11, %s4643_s5  ;;  %2518 = vrot.lane.b32.xlu1 %v2510_v34, %s4643_s5  ;;  %v7838_v34 = vld [vmem:[#allocation111_spill] sm:$0xff] }
 0xa23   : > { %v6362_v23 = vpop.permute.xlu0 %2349 }
 0xa25   : > { %2543 = vperm.xlu0 %4542, %v4291_v17   ;;  %2520 = vrot.lane.b32.xlu1 %v2511_v21, %s4643_s5 }
 0xa29   : > { %2524 = vrot.lane.b32.xlu1 %v2513_v46, %s4643_s5  ;;  %v7839_v46 = vld [vmem:[#allocation112_spill] sm:$0xff]  ;;  %s4652_s5 = smov 31  }
 0xa93   : > { %v6364_v24 = vpop.permute.xlu0 %2522  ;;  %v6393_v54 = vpop.permute.xlu1 %2518 }
 0xa94   : > { %7834 = vst [vmem:[#allocation88_spill] sm:$0xff] %v6393_v54 }
 0xa97   : > { %v6395_v8 = vpop.permute.xlu1 %2520 }
 0xa9b   : > { %v6397_v41 = vpop.permute.xlu1 %2524 }
 0xaa4   : > { %v2544_v7 = vpop.permute.xlu0 %2543 }
 0xaa5   : > { %v2548_v40 = vmul.f32 %v2544_v7, %v7827_v30  ;;  %v2546_v60 = vmul.f32 %v2544_v7, %v7828_v28  ;;  %v2550_v5 = vmul.f32 %v2544_v7, %v7829_v51  ;;  %v2547_v33 = vmul.f32 %v2544_v7, %v7830_v4  ;;  %v7840_v30 = vld [vmem:[#allocation113_spill] sm:$0xff]  ;;  %v7841_v28 = vld [vmem:[#allocation114_spill] sm:$0xff] }
 0xaa6   : > { %v2549_v20 = vmul.f32 %v2544_v7, %v7831_v29 }
 0xaa7   : > { %2560 = vrot.lane.b32.xlu0 %v2548_v40, %s4645_s23  ;;  %2556 = vrot.lane.b32.xlu1 %v2546_v60, %s4645_s23 }
 0xaab   : > { %2564 = vrot.lane.b32.xlu0 %v2550_v5, %s4645_s23  ;;  %2558 = vrot.lane.b32.xlu1 %v2547_v33, %s4645_s23  ;;  %v7842_v5 = vld [vmem:[#allocation28_spill] sm:$0xff] }
 0xaaf   : > { %2562 = vrot.lane.b32.xlu1 %v2549_v20, %s4645_s23 }
 0xab3   : > { %2581 = vperm.xlu1 %4543, %v4291_v17  }
 0xab7   : > { %4544 = vset.pattern.permute.xlu1 %v7813_v49 }
 0xb19   : > { %v6399_v56 = vpop.permute.xlu1 %2556 }
 0xb1a   : > { %7835 = vst [vmem:[#allocation53_spill] sm:$0xff] %v6399_v56 }
 0xb1d   : > { %v6401_v25 = vpop.permute.xlu1 %2558 }
 0xb1e   : > { %7836 = vst [vmem:[#allocation81_spill] sm:$0xff] %v6401_v25 }
 0xb21   : > { %v6403_v13 = vpop.permute.xlu1 %2562 }
 0xb22   : > { %7837 = vst [vmem:[#allocation89_spill] sm:$0xff] %v6403_v13 }
 0xb32   : > { %v2582_v11 = vpop.permute.xlu1 %2581 }
 0xb33   : > { %v2585_v21 = vmul.f32 %v2582_v11, %v7838_v34  ;;  %v2584_v7 = vmul.f32 %v2582_v11, %v7839_v46  ;;  %v2587_v40 = vmul.f32 %v2582_v11, %v7840_v30  ;;  %v2586_v60 = vmul.f32 %v2582_v11, %v7841_v28  ;;  %v7845_v34 = vld [vmem:[#allocation116_spill] sm:$0xff]  ;;  %v7846_v46 = vld [vmem:[#allocation117_spill] sm:$0xff]  ;;  %v7847_v30 = vld [vmem:[#allocation118_spill] sm:$0xff] }
 0xb34   : > { %v2588_v4 = vmul.f32 %v2582_v11, %v7842_v5 }
 0xb35   : > { %2596 = vrot.lane.b32.xlu1 %v2585_v21, %s4645_s23  ;;  %2594 = vrot.lane.b32.xlu0 %v2584_v7, %s4645_s23 }
 0xb39   : > { %2600 = vrot.lane.b32.xlu1 %v2587_v40, %s4645_s23  ;;  %2598 = vrot.lane.b32.xlu0 %v2586_v60, %s4645_s23  ;;  %v7848_v40 = vld [vmem:[#allocation119_spill] sm:$0xff] }
 0xb3d   : > { %2619 = vperm.xlu1 %4544, %v4291_v17   ;;  %2602 = vrot.lane.b32.xlu0 %v2588_v4, %s4645_s23 }
 0xb41   : > { %4545 = vset.pattern.permute.xlu1 %v7807_v22 }
 0xba7   : > { %v6416_v33 = vpop.permute.xlu1 %2596 }
 0xba8   : > { %7843 = vst [vmem:[#allocation73_spill] sm:$0xff] %v6416_v33 }
 0xbab   : > { %v6418_v29 = vpop.permute.xlu1 %2600 }
 0xbac   : > { %7844 = vst [vmem:[#allocation18_spill] sm:$0xff] %v6418_v29  ;;  %v7875_v29 = vld [vmem:[#allocation19_spill] sm:$0xff] }
 0xbbc   : > { %v2620_v20 = vpop.permute.xlu1 %2619 }
 0xbbd   : > { %v2623_v21 = vmul.f32 %v2620_v20, %v7845_v34  ;;  %v2622_v7 = vmul.f32 %v2620_v20, %v7846_v46  ;;  %v2625_v11 = vmul.f32 %v2620_v20, %v7847_v30  ;;  %v2624_v28 = vmul.f32 %v2620_v20, %v7848_v40  ;;  %v7851_v46 = vld [vmem:[#allocation120_spill] sm:$0xff]  ;;  %v7852_v30 = vld [vmem:[#allocation121_spill] sm:$0xff] }
 0xbbe   : > { %v2626_v60 = vmul.f32 %v2620_v20, %v4909_v18 }
 0xbbf   : > { %2634 = vrot.lane.b32.xlu1 %v2623_v21, %s4645_s23  ;;  %2632 = vrot.lane.b32.xlu0 %v2622_v7, %s4645_s23 }
 0xbc3   : > { %2638 = vrot.lane.b32.xlu1 %v2625_v11, %s4645_s23  ;;  %2636 = vrot.lane.b32.xlu0 %v2624_v28, %s4645_s23  ;;  %v7853_v11 = vld [vmem:[#allocation122_spill] sm:$0xff] }
 0xbc7   : > { %2657 = vperm.xlu1 %4545, %v4291_v17   ;;  %2640 = vrot.lane.b32.xlu0 %v2626_v60, %s4645_s23  ;;  %v7854_v17 = vld [vmem:[#allocation123_spill] sm:$0xff]  ;;  %v7855_v60 = vld [vmem:[#allocation34_spill] sm:$0xff] }
 0xbcb   : > { %4546 = vset.pattern.permute.xlu1 %v7690_v14 }
 0xc31   : > { %v6431_v4 = vpop.permute.xlu1 %2634 }
 0xc32   : > { %7849 = vst [vmem:[#allocation55_spill] sm:$0xff] %v6431_v4  ;;  %v7873_v4 = vld [vmem:[#allocation17_spill] sm:$0xff] }
 0xc35   : > { %v6433_v34 = vpop.permute.xlu1 %2638 }
 0xc36   : > { %7850 = vst [vmem:[#allocation82_spill] sm:$0xff] %v6433_v34  ;;  %v7872_v34 = vld [vmem:[#allocation15_spill] sm:$0xff] }
 0xc46   : > { %v2658_v21 = vpop.permute.xlu1 %2657 }
 0xc47   : > { %v2661_v7 = vmul.f32 %v2658_v21, %v7851_v46  ;;  %v2660_v40 = vmul.f32 %v2658_v21, %v7852_v30  ;;  %v2663_v20 = vmul.f32 %v2658_v21, %v7853_v11  ;;  %v2662_v28 = vmul.f32 %v2658_v21, %v7854_v17  ;;  %v7857_v46 = vld [vmem:[#allocation7_spill] sm:$0xff]  ;;  %v6451_v30 = vld [vmem:[%s7438_s1 + $0x24] sm:$0xf] }
 0xc48   : > { %v2664_v38 = vmul.f32 %v2658_v21, %v7855_v60  ;;  %v6456_v21 = vpop.permute.xlu0 %2560 }
 0xc49   : > { %2672 = vrot.lane.b32.xlu1 %v2661_v7, %s4645_s23  ;;  %2670 = vrot.lane.b32.xlu0 %v2660_v40, %s4645_s23  ;;  %v7858_v7 = vld [vmem:[#allocation10_spill] sm:$0xff]  ;;  %v7859_v40 = vld [vmem:[#allocation9_spill] sm:$0xff] }
 0xc4d   : > { %2676 = vrot.lane.b32.xlu1 %v2663_v20, %s4645_s23  ;;  %2674 = vrot.lane.b32.xlu0 %v2662_v28, %s4645_s23 }
 0xc51   : > { %2694 = vrot.lane.b32.xlu1 %v7856_v47, %s4652_s5  ;;  %2678 = vrot.lane.b32.xlu0 %v2664_v38, %s4645_s23  ;;  %v6458_v47 = vpop.permute.xlu0 %2564 }
 0xc52   : > { %7860 = vst [vmem:[#allocation90_spill] sm:$0xff] %v6458_v47 }
 0xc55   : > { %2698 = vrot.lane.b32.xlu1 %v7857_v46, %s4652_s5  ;;  %2696 = vrot.lane.b32.xlu0 %v7858_v7, %s4652_s5  ;;  %v6460_v38 = vpop.permute.xlu0 %2594 }
 0xc56   : > { %7861 = vst [vmem:[#allocation45_spill] sm:$0xff] %v6460_v38 }
 0xc59   : > { %2722 = vperm.xlu1 %4546, %v6451_v30   ;;  %2700 = vrot.lane.b32.xlu0 %v7859_v40, %s4652_s5  ;;  %v6462_v11 = vpop.permute.xlu0 %2598  ;;  %s4561_s5 = sshll.u32 %s4653_s21, 4  ;;  %s4562_s5 = int_to_ptr.vmem [resolvable:$false] %s4561_s5 }
 0xc5a   : > { %7862 = vst [vmem:[#allocation61_spill] sm:$0xff] %v6462_v11  ;;  %s4563_s29 = scalar_lea.vmem %s4562_s5, 2048 }
 0xc5d   : > { %4547 = vset.pattern.permute.xlu1 %v7808_v3  ;;  %v6464_v20 = vpop.permute.xlu0 %2602 }
 0xc5e   : > { %7863 = vst [vmem:[#allocation92_spill] sm:$0xff] %v6464_v20 }
 0xc61   : > { %v6466_v17 = vpop.permute.xlu0 %2632 }
 0xc62   : > { %7864 = vst [vmem:[#allocation93_spill] sm:$0xff] %v6466_v17 }
 0xc65   : > { %v6468_v28 = vpop.permute.xlu0 %2636 }
 0xc66   : > { %7865 = vst [vmem:[#allocation46_spill] sm:$0xff] %v6468_v28 }
 0xc69   : > { %v6470_v46 = vpop.permute.xlu0 %2640 }
 0xc6a   : > { %7866 = vst [vmem:[#allocation67_spill] sm:$0xff] %v6470_v46 }
 0xcbb   : > { %v6472_v7 = vpop.permute.xlu1 %2672  ;;  %v6474_v40 = vpop.permute.xlu0 %2670 }
 0xcbc   : > { %7867 = vst [vmem:[#allocation47_spill] sm:$0xff] %v6472_v7  ;;  %7868 = vst [vmem:[#allocation77_spill] sm:$0xff] %v6474_v40 }
 0xcbf   : > { %v6476_v56 = vpop.permute.xlu1 %2676  ;;  %v6478_v54 = vpop.permute.xlu0 %2674 }
 0xcc0   : > { %7869 = vst [vmem:[#allocation96_spill] sm:$0xff] %v6476_v56  ;;  %7870 = vst [vmem:[#allocation48_spill] sm:$0xff] %v6478_v54 }
 0xcc3   : > { %v6480_v10 = vpop.permute.xlu0 %2678  ;;  %v2695_v38 = vpop.permute.xlu1 %2694 }
 0xcc4   : > { %7871 = vst [vmem:[#allocation50_spill] sm:$0xff] %v6480_v10  ;;  %vm2706_vm9 = vcmp.ne.s16.totalorder %v2695_v38, 0  ;;  %v7874_v10 = vld [vmem:[#allocation16_spill] sm:$0xff] }
 0xcc5   : > { %v2710_v7 = vsel %vm2706_vm9, %v7872_v34, 0 }
 0xcc6   : > { %v6484_v56 = vunpack.c.l.bf16 %v2710_v7 }
 0xcc7   : > { %v2697_v53 = vpop.permute.xlu0 %2696  ;;  %v2699_v20 = vpop.permute.xlu1 %2698 }
 0xcc8   : > { %v2703_v6 = vsel %vm2702_vm8, %v2695_v38, %v2697_v53  ;;  %v2704_v47 = vsel %vm2702_vm8, %v2697_v53, %v2699_v20 }
 0xcc9   : > { %vm2707_vm10 = vcmp.ne.s16.totalorder %v2703_v6, 0  ;;  %vm2708_vm12 = vcmp.ne.s16.totalorder %v2704_v47, 0  ;;  %v7876_v6 = vld [vmem:[#allocation6_spill] sm:$0xff] }
 0xcca   : > { %v2711_v40 = vsel %vm2707_vm10, %v7873_v4, 0  ;;  %v2712_v28 = vsel %vm2708_vm12, %v7874_v10, 0  ;;  %v2728_v53 = vrot.slane %v6484_v56, %v7876_v6 }
 0xccb   : > { %v2701_v17 = vpop.permute.xlu0 %2700  ;;  %v6486_v54 = vunpack.c.l.bf16 %v2711_v40  ;;  %v6490_v11 = vunpack.c.l.bf16 %v2712_v28 }
 0xccc   : > { %v2705_v46 = vsel %vm2702_vm8, %v2699_v20, %v2701_v17 }
 0xccd   : > { %vm2709_vm13 = vcmp.ne.s16.totalorder %v2705_v46, 0  ;;  %v2732_v20 = vrot.slane %v6486_v54, %v7876_v6  ;;  %v2736_v7 = vrot.slane %v6490_v11, %v7876_v6 }
 0xcce   : > { %v2713_v33 = vsel %vm2709_vm13, %v7875_v29, 0 }
 0xccf   : > { %v6492_v38 = vunpack.c.l.bf16 %v2713_v33 }
 0xcd1   : > { %v2740_v33 = vrot.slane %v6492_v38, %v7876_v6 }
 0xcd8   : > { %v2723_v47 = vpop.permute.xlu1 %2722 }
 0xcd9   : > { %v2741_v17 = vmul.f32 %v2728_v53, %v2723_v47  ;;  %v2742_v46 = vmul.f32 %v2732_v20, %v2723_v47  ;;  %v2743_v28 = vmul.f32 %v2736_v7, %v2723_v47  ;;  %v2744_v40 = vmul.f32 %v2740_v33, %v2723_v47 }
 0xcda   : > { %v2745_v13 = vmul.f32 %v2723_v47, %v7829_v51 }
 0xcdb   : > { %2751 = vrot.lane.b32.xlu0 %v2741_v17, %s4646_s26  ;;  %2753 = vrot.lane.b32.xlu1 %v2742_v46, %s4646_s26  ;;  %v7879_v17 = vld [vmem:[#allocation22_spill] sm:$0xff] }
 0xcdc   : > { %v2786_v46 = vrot.slane %v6486_v54, %v7879_v17  ;;  %v2782_v7 = vrot.slane %v6484_v56, %v7879_v17  ;;  %v2790_v47 = vrot.slane %v6490_v11, %v7879_v17 }
 0xcdf   : > { %2755 = vrot.lane.b32.xlu0 %v2743_v28, %s4646_s26  ;;  %2757 = vrot.lane.b32.xlu1 %v2744_v40, %s4646_s26 }
 0xce3   : > { %2759 = vrot.lane.b32.xlu0 %v2745_v13, %s4646_s26  ;;  %2776 = vperm.xlu1 %4547, %v6451_v30   ;;  %v2794_v13 = vrot.slane %v6492_v38, %v7879_v17 }
 0xce7   : > { %4548 = vset.pattern.permute.xlu1 %v7813_v49 }
 0xd4d   : > { %v6510_v53 = vpop.permute.xlu1 %2753 }
 0xd4e   : > { %7877 = vst [vmem:[#allocation52_spill] sm:$0xff] %v6510_v53 }
 0xd51   : > { %v6512_v20 = vpop.permute.xlu1 %2757 }
 0xd52   : > { %7878 = vst [vmem:[#allocation54_spill] sm:$0xff] %v6512_v20 }
 0xd62   : > { %v2777_v33 = vpop.permute.xlu1 %2776 }
 0xd63   : > { %v2796_v28 = vmul.f32 %v2786_v46, %v2777_v33  ;;  %v2795_v40 = vmul.f32 %v2782_v7, %v2777_v33  ;;  %v2798_v20 = vmul.f32 %v2794_v13, %v2777_v33  ;;  %v2797_v53 = vmul.f32 %v2790_v47, %v2777_v33 }
 0xd64   : > { %v2799_v25 = vmul.f32 %v2777_v33, %v7842_v5  ;;  %v2844_v33 = vrot.slane %v6490_v11, %v4898_v9 }
 0xd65   : > { %2807 = vrot.lane.b32.xlu1 %v2796_v28, %s4646_s26  ;;  %2805 = vrot.lane.b32.xlu0 %v2795_v40, %s4646_s26  ;;  %v2840_v28 = vrot.slane %v6486_v54, %v4898_v9 }
 0xd69   : > { %2811 = vrot.lane.b32.xlu1 %v2798_v20, %s4646_s26  ;;  %2809 = vrot.lane.b32.xlu0 %v2797_v53, %s4646_s26  ;;  %v2836_v20 = vrot.slane %v6484_v56, %v4898_v9 }
 0xd6d   : > { %2830 = vperm.xlu1 %4548, %v6451_v30   ;;  %2813 = vrot.lane.b32.xlu0 %v2799_v25, %s4646_s26  ;;  %v2848_v25 = vrot.slane %v6492_v38, %v4898_v9 }
 0xd71   : > { %4549 = vset.pattern.permute.xlu1 %v7807_v22 }
 0xdd7   : > { %v6530_v46 = vpop.permute.xlu1 %2807 }
 0xdd8   : > { %7880 = vst [vmem:[#allocation44_spill] sm:$0xff] %v6530_v46 }
 0xddb   : > { %v6532_v7 = vpop.permute.xlu1 %2811 }
 0xddc   : > { %7881 = vst [vmem:[#allocation56_spill] sm:$0xff] %v6532_v7 }
 0xdec   : > { %v2831_v40 = vpop.permute.xlu1 %2830 }
 0xded   : > { %v2850_v53 = vmul.f32 %v2840_v28, %v2831_v40  ;;  %v2849_v13 = vmul.f32 %v2836_v20, %v2831_v40  ;;  %v2852_v47 = vmul.f32 %v2848_v25, %v2831_v40  ;;  %v2851_v7 = vmul.f32 %v2844_v33, %v2831_v40 }
 0xdee   : > { %v2853_v46 = vmul.f32 %v2831_v40, %v4909_v18 }
 0xdef   : > { %2861 = vrot.lane.b32.xlu1 %v2850_v53, %s4646_s26  ;;  %2859 = vrot.lane.b32.xlu0 %v2849_v13, %s4646_s26  ;;  %v2894_v53 = vrot.slane %v6486_v54, %v4943_v57  ;;  %v2890_v13 = vrot.slane %v6484_v56, %v4943_v57  ;;  %v4293_v54 = vld [vmem:[%s7438_s1 + $0x28] sm:$0xf] }
 0xdf3   : > { %2865 = vrot.lane.b32.xlu1 %v2852_v47, %s4646_s26  ;;  %2863 = vrot.lane.b32.xlu0 %v2851_v7, %s4646_s26 }
 0xdf7   : > { %2884 = vperm.xlu1 %4549, %v6451_v30   ;;  %2867 = vrot.lane.b32.xlu0 %v2853_v46, %s4646_s26  ;;  %v2898_v30 = vrot.slane %v6490_v11, %v4943_v57 }
 0xdfb   : > { %4550 = vset.pattern.permute.xlu1 %v7690_v14  ;;  %v2902_v14 = vrot.slane %v6492_v38, %v4943_v57 }
 0xe61   : > { %v6550_v28 = vpop.permute.xlu1 %2861 }
 0xe65   : > { %v6552_v20 = vpop.permute.xlu1 %2865 }
 0xe76   : > { %v2885_v25 = vpop.permute.xlu1 %2884 }
 0xe77   : > { %v2904_v7 = vmul.f32 %v2894_v53, %v2885_v25  ;;  %v2903_v33 = vmul.f32 %v2890_v13, %v2885_v25  ;;  %v2906_v46 = vmul.f32 %v2902_v14, %v2885_v25  ;;  %v2905_v40 = vmul.f32 %v2898_v30, %v2885_v25 }
 0xe78   : > { %v2907_v56 = vmul.f32 %v2885_v25, %v7855_v60 }
 0xe79   : > { %2915 = vrot.lane.b32.xlu1 %v2904_v7, %s4646_s26  ;;  %2913 = vrot.lane.b32.xlu0 %v2903_v33, %s4646_s26 }
 0xe7d   : > { %2919 = vrot.lane.b32.xlu1 %v2906_v46, %s4646_s26  ;;  %2917 = vrot.lane.b32.xlu0 %v2905_v40, %s4646_s26 }
 0xe81   : > { %2941 = vperm.xlu1 %4550, %v4293_v54   ;;  %2921 = vrot.lane.b32.xlu0 %v2907_v56, %s4646_s26 }
 0xe85   : > { %4551 = vset.pattern.permute.xlu1 %v7808_v3 }
 0xeeb   : > { %v6572_v38 = vpop.permute.xlu1 %2915 }
 0xeef   : > { %v6574_v11 = vpop.permute.xlu1 %2919 }
 0xf00   : > { %v2942_v47 = vpop.permute.xlu1 %2941 }
 0xf01   : > { %v2945_v53 = vmul.f32 %v2942_v47, %v7809_v35  ;;  %v2944_v13 = vmul.f32 %v2942_v47, %v7810_v1  ;;  %v2947_v25 = vmul.f32 %v2942_v47, %v7811_v55  ;;  %v2946_v7 = vmul.f32 %v2942_v47, %v7812_v39 }
 0xf02   : > { %v2948_v33 = vmul.f32 %v2942_v47, %v7829_v51  ;;  %v7882_v47 = vld [vmem:[#allocation13_spill] sm:$0xff] }
 0xf03   : > { %2956 = vrot.lane.b32.xlu1 %v2945_v53, %s4640_s28  ;;  %2954 = vrot.lane.b32.xlu0 %v2944_v13, %s4640_s28  ;;  %v7883_v53 = vld [vmem:[#allocation14_spill] sm:$0xff]  ;;  %v7884_v13 = vld [vmem:[#allocation11_spill] sm:$0xff] }
 0xf07   : > { %2960 = vrot.lane.b32.xlu1 %v2947_v25, %s4640_s28  ;;  %2958 = vrot.lane.b32.xlu0 %v2946_v7, %s4640_s28 }
 0xf0b   : > { %2979 = vperm.xlu1 %4551, %v4293_v54   ;;  %2962 = vrot.lane.b32.xlu0 %v2948_v33, %s4640_s28  ;;  %v6628_v33 = vpop.permute.xlu0 %2751 }
 0xf0c   : > { %7886 = vst [vmem:[#allocation74_spill] sm:$0xff] %v6628_v33 }
 0xf0f   : > { %4552 = vset.pattern.permute.xlu1 %v7813_v49 }
 0xf75   : > { %v6587_v35 = vpop.permute.xlu1 %2956 }
 0xf79   : > { %v6589_v1 = vpop.permute.xlu1 %2960 }
 0xf8a   : > { %v2980_v14 = vpop.permute.xlu1 %2979 }
 0xf8b   : > { %v2983_v55 = vmul.f32 %v2980_v14, %v7817_v15  ;;  %v2982_v39 = vmul.f32 %v2980_v14, %v7816_v44  ;;  %v2985_v30 = vmul.f32 %v2980_v14, %v7818_v36  ;;  %v2984_v46 = vmul.f32 %v2980_v14, %v7815_v63 }
 0xf8c   : > { %v2986_v40 = vmul.f32 %v2980_v14, %v7842_v5 }
 0xf8d   : > { %2994 = vrot.lane.b32.xlu1 %v2983_v55, %s4640_s28  ;;  %2992 = vrot.lane.b32.xlu0 %v2982_v39, %s4640_s28 }
 0xf91   : > { %2998 = vrot.lane.b32.xlu1 %v2985_v30, %s4640_s28  ;;  %2996 = vrot.lane.b32.xlu0 %v2984_v46, %s4640_s28 }
 0xf95   : > { %3017 = vperm.xlu1 %4552, %v4293_v54   ;;  %3000 = vrot.lane.b32.xlu0 %v2986_v40, %s4640_s28 }
 0xf99   : > { %4554 = vset.pattern.permute.xlu1 %v7808_v3  ;;  %v4294_v3 = vld [vmem:[%s7438_s1 + $0x2c] sm:$0xf] }
 0xfff   : > { %v6602_v44 = vpop.permute.xlu1 %2994 }
0x1003   : > { %v6604_v15 = vpop.permute.xlu1 %2998 }
0x1014   : > { %v3018_v56 = vpop.permute.xlu1 %3017 }
0x1015   : > { %v3021_v36 = vmul.f32 %v3018_v56, %v7821_v58  ;;  %v3020_v63 = vmul.f32 %v3018_v56, %v7820_v19  ;;  %v7885_v19 = vld [vmem:[#allocation12_spill] sm:$0xff]  ;;  %v3024_v58 = vmul.f32 %v3018_v56, %v4909_v18  ;;  %v3022_v25 = vmul.f32 %v3018_v56, %v7819_v31 }
0x1016   : > { %v3023_v7 = vmul.f32 %v3018_v56, %v7822_v2 }
0x1017   : > { %3032 = vrot.lane.b32.xlu1 %v3021_v36, %s4640_s28  ;;  %3030 = vrot.lane.b32.xlu0 %v3020_v63, %s4640_s28 }
0x101b   : > { %3092 = vrot.lane.b32.xlu1 %v7882_v47, %s4650_s11  ;;  %3096 = vrot.lane.b32.xlu0 %v7883_v53, %s4650_s11 }
0x101f   : > { %3094 = vrot.lane.b32.xlu1 %v7884_v13, %s4650_s11  ;;  %3120 = vperm.xlu0 %4542, %v4294_v3  }
0x1023   : > { %3098 = vrot.lane.b32.xlu1 %v7885_v19, %s4650_s11  ;;  %4553 = vset.pattern.permute.xlu0 %v7807_v22  ;;  %v6631_v22 = vpop.permute.xlu0 %2755 }
0x1024   : > { %3055 = vperm.xlu0 %4553, %v4293_v54  }
0x1027   : > { %3174 = vperm.xlu1 %4554, %v4294_v3   ;;  %v6633_v54 = vpop.permute.xlu0 %2759 }
0x1028   : > { %3282 = vperm.xlu0 %4553, %v4294_v3  }
0x102b   : > { %4555 = vset.pattern.permute.xlu1 %v7813_v49  ;;  %v6635_v14 = vpop.permute.xlu0 %2805 }
0x102c   : > { %3228 = vperm.xlu1 %4555, %v4294_v3   ;;  %3038 = vrot.lane.b32.xlu0 %v3024_v58, %s4640_s28  ;;  %7887 = vst [vmem:[#allocation62_spill] sm:$0xff] %v6635_v14 }
0x102f   : > { %v6637_v49 = vpop.permute.xlu0 %2809 }
0x1030   : > { %3034 = vrot.lane.b32.xlu1 %v3022_v25, %s4640_s28 }
0x1033   : > { %v6639_v55 = vpop.permute.xlu0 %2813 }
0x1034   : > { %3036 = vrot.lane.b32.xlu1 %v3023_v7, %s4640_s28 }
0x1037   : > { %v6641_v39 = vpop.permute.xlu0 %2859 }
0x1038   : > { %7888 = vst [vmem:[#allocation5_spill] sm:$0xff] %v6641_v39 }
0x103b   : > { %v6643_v31 = vpop.permute.xlu0 %2863 }
0x103f   : > { %v6645_v30 = vpop.permute.xlu0 %2867 }
0x1040   : > { %7889 = vst [vmem:[#allocation75_spill] sm:$0xff] %v6645_v30 }
0x1043   : > { %v6647_v2 = vpop.permute.xlu0 %2913 }
0x1044   : > { %7890 = vst [vmem:[#allocation68_spill] sm:$0xff] %v6647_v2 }
0x1047   : > { %v6649_v46 = vpop.permute.xlu0 %2917 }
0x104b   : > { %v6651_v40 = vpop.permute.xlu0 %2921 }
0x104c   : > { %7891 = vst [vmem:[#allocation76_spill] sm:$0xff] %v6651_v40 }
0x104f   : > { %v6653_v56 = vpop.permute.xlu0 %2954 }
0x1050   : > { %7892 = vst [vmem:[#allocation78_spill] sm:$0xff] %v6653_v56 }
0x1053   : > { %v6655_v36 = vpop.permute.xlu0 %2958 }
0x1057   : > { %v6657_v63 = vpop.permute.xlu0 %2962 }
0x1058   : > { %7893 = vst [vmem:[#allocation83_spill] sm:$0xff] %v6657_v63 }
0x105b   : > { %v6659_v47 = vpop.permute.xlu0 %2992 }
0x105c   : > { %7894 = vst [vmem:[#allocation98_spill] sm:$0xff] %v6659_v47 }
0x105f   : > { %v6661_v53 = vpop.permute.xlu0 %2996 }
0x1063   : > { %v6663_v3 = vpop.permute.xlu0 %3000 }
0x1064   : > { %7895 = vst [vmem:[#allocation84_spill] sm:$0xff] %v6663_v3 }
0x1089   : > { %v6665_v13 = vpop.permute.xlu1 %3032  ;;  %v6667_v19 = vpop.permute.xlu0 %3030 }
0x108a   : > { %7896 = vst [vmem:[#allocation100_spill] sm:$0xff] %v6667_v19 }
0x108d   : > { %v3093_v58 = vpop.permute.xlu1 %3092  ;;  %v3097_v25 = vpop.permute.xlu0 %3096 }
0x108e   : > { %vm3104_vm1 = vcmp.ne.s16.totalorder %v3093_v58, 0 }
0x108f   : > { %v3108_v39 = vsel %vm3104_vm1, %v7872_v34, 0 }
0x1090   : > { %v6670_v33 = vunpack.c.l.bf16 %v3108_v39 }
0x1091   : > { %v3095_v7 = vpop.permute.xlu1 %3094 }
0x1092   : > { %v3101_v2 = vsel %vm3100_vm3, %v3093_v58, %v3095_v7  ;;  %v3102_v14 = vsel %vm3100_vm3, %v3095_v7, %v3097_v25  ;;  %v3180_v7 = vrot.slane %v6670_v33, %v7879_v17 }
0x1093   : > { %vm3105_vm5 = vcmp.ne.s16.totalorder %v3101_v2, 0  ;;  %vm3106_vm7 = vcmp.ne.s16.totalorder %v3102_v14, 0  ;;  %v3126_v2 = vrot.slane %v6670_v33, %v7876_v6 }
0x1094   : > { %v3109_v40 = vsel %vm3105_vm5, %v7873_v4, 0  ;;  %v3110_v34 = vsel %vm3106_vm7, %v7874_v10, 0 }
0x1095   : > { %v3099_v47 = vpop.permute.xlu1 %3098  ;;  %v3115_v39 = vunpack.c.l.bf16 %v3109_v40  ;;  %v3116_v58 = vunpack.c.l.bf16 %v3110_v34 }
0x1096   : > { %v3103_v30 = vsel %vm3100_vm3, %v3097_v25, %v3099_v47 }
0x1097   : > { %vm3107_vm8 = vcmp.ne.s16.totalorder %v3103_v30, 0  ;;  %v3130_v10 = vrot.slane %v3115_v39, %v7876_v6 }
0x109e   : > { %v3121_v56 = vpop.permute.xlu0 %3120 }
0x109f   : > { %v3139_v4 = vmul.f32 %v3126_v2, %v3121_v56  ;;  %v3140_v30 = vmul.f32 %v3130_v10, %v3121_v56  ;;  %v3143_v40 = vmul.f32 %v3121_v56, %v7829_v51 }
0x10a3   : > { %v3056_v63 = vpop.permute.xlu0 %3055 }
0x10a4   : > { %v3059_v3 = vmul.f32 %v3056_v63, %v7825_v32  ;;  %v3058_v19 = vmul.f32 %v3056_v63, %v7824_v45  ;;  %v3061_v14 = vmul.f32 %v3056_v63, %v7826_v59  ;;  %v3060_v32 = vmul.f32 %v3056_v63, %v7823_v0 }
0x10a5   : > { %v3111_v45 = vsel %vm3107_vm8, %v7875_v29, 0  ;;  %v3062_v47 = vmul.f32 %v3056_v63, %v7855_v60  ;;  %v3134_v59 = vrot.slane %v3116_v58, %v7876_v6 }
0x10a6   : > { %3070 = vrot.lane.b32.xlu0 %v3059_v3, %s4640_s28  ;;  %3068 = vrot.lane.b32.xlu1 %v3058_v19, %s4640_s28  ;;  %v3117_v3 = vunpack.c.l.bf16 %v3111_v45  ;;  %v3184_v19 = vrot.slane %v3115_v39, %v7879_v17  ;;  %v3175_v25 = vpop.permute.xlu1 %3174 }
0x10a7   : > { %v3141_v0 = vmul.f32 %v3134_v59, %v3121_v56  ;;  %v3193_v2 = vmul.f32 %v3180_v7, %v3175_v25  ;;  %v3197_v10 = vmul.f32 %v3175_v25, %v7842_v5  ;;  %v3242_v59 = vrot.slane %v3116_v58, %v4898_v9 }
0x10a8   : > { %v3138_v29 = vrot.slane %v3117_v3, %v7876_v6  ;;  %v3194_v34 = vmul.f32 %v3184_v19, %v3175_v25  ;;  %v3192_v6 = vrot.slane %v3117_v3, %v7879_v17  ;;  %v3283_v19 = vpop.permute.xlu0 %3282  ;;  %v3288_v7 = vrot.slane %v6670_v33, %v4943_v57 }
0x10aa   : > { %3074 = vrot.lane.b32.xlu0 %v3061_v14, %s4640_s28  ;;  %3072 = vrot.lane.b32.xlu1 %v3060_v32, %s4640_s28  ;;  %v3142_v63 = vmul.f32 %v3138_v29, %v3121_v56  ;;  %v3188_v56 = vrot.slane %v3116_v58, %v7879_v17  ;;  %v3196_v14 = vmul.f32 %v3192_v6, %v3175_v25 }
0x10ab   : > { %v3229_v45 = vpop.permute.xlu1 %3228  ;;  %v3238_v17 = vrot.slane %v3115_v39, %v4898_v9  ;;  %v3246_v29 = vrot.slane %v3117_v3, %v4898_v9  ;;  %v3296_v6 = vrot.slane %v3116_v58, %v4943_v57 }
0x10ac   : > { %v3195_v32 = vmul.f32 %v3188_v56, %v3175_v25  ;;  %v3292_v25 = vrot.slane %v3115_v39, %v4943_v57  ;;  %v3305_v39 = vmul.f32 %v3283_v19, %v7855_v60 }
0x10ae   : > { %3149 = vrot.lane.b32.xlu0 %v3139_v4, %s4648_s8  ;;  %3076 = vrot.lane.b32.xlu1 %v3062_v47, %s4640_s28  ;;  %v3234_v4 = vrot.slane %v6670_v33, %v4898_v9  ;;  %v3300_v9 = vrot.slane %v3117_v3, %v4943_v57  ;;  %v7897_v33 = vld [vmem:[#allocation42_spill] sm:$0xff]  ;;  %s4441_s28 = sshll.u32 %s4627_s15, 10  ;;  %s7390_s15 = scalar_lea.sflag [#allocation3], %s201_s19 }
0x10af   : > { %v7900_v57 = vld [vmem:[#allocation58_spill] sm:$0xff] }
0x10b0   : > { %v3247_v47 = vmul.f32 %v3234_v4, %v3229_v45  ;;  %v3304_v56 = vmul.f32 %v3300_v9, %v3283_v19  ;;  %v2369_v58 = vmul.f32 %v6305_v27, %v7900_v57 }
0x10b2   : > { %3153 = vrot.lane.b32.xlu0 %v3141_v0, %s4648_s8  ;;  %3151 = vrot.lane.b32.xlu1 %v3140_v30, %s4648_s8  ;;  %v3249_v0 = vmul.f32 %v3242_v59, %v3229_v45  ;;  %v3248_v30 = vmul.f32 %v3238_v17, %v3229_v45  ;;  %v7901_v17 = vld [vmem:[#allocation65_spill] sm:$0xff] }
0x10b6   : > { %3157 = vrot.lane.b32.xlu0 %v3143_v40, %s4648_s8  ;;  %3155 = vrot.lane.b32.xlu1 %v3142_v63, %s4648_s8  ;;  %v3251_v40 = vmul.f32 %v3229_v45, %v4909_v18  ;;  %v3250_v63 = vmul.f32 %v3246_v29, %v3229_v45  ;;  %v7898_v45 = vld [vmem:[#allocation41_spill] sm:$0xff] }
0x10b7   : > { %v2355_v4 = vmul.f32 %v6362_v23, %v7898_v45  ;;  %v2429_v45 = vsel %vm544_vm0, %v6322_v61, %v6379_v48 }
0x10b9   : > { %v2374_v59 = vadd.f32 %v2369_v58, %v2355_v4  ;;  %v7907_v4 = vld [vmem:[#allocation66_spill] sm:$0xff] }
0x10ba   : > { %3205 = vrot.lane.b32.xlu0 %v3194_v34, %s4648_s8  ;;  %3203 = vrot.lane.b32.xlu1 %v3193_v2, %s4648_s8  ;;  %v3302_v34 = vmul.f32 %v3292_v25, %v3283_v19  ;;  %v3301_v2 = vmul.f32 %v3288_v7, %v3283_v19  ;;  %v7904_v7 = vld [vmem:[#allocation70_spill] sm:$0xff] }
0x10be   : > { %3209 = vrot.lane.b32.xlu0 %v3196_v14, %s4648_s8  ;;  %3207 = vrot.lane.b32.xlu1 %v3195_v32, %s4648_s8  ;;  %v3303_v14 = vmul.f32 %v3296_v6, %v3283_v19  ;;  %v2354_v32 = vmul.f32 %v6362_v23, %v7897_v33  ;;  %v7903_v19 = vld [vmem:[#allocation71_spill] sm:$0xff]  ;;  %v7906_v6 = vld [vmem:[#allocation60_spill] sm:$0xff] }
0x10bf   : > { %v2396_v25 = vmul.f32 %v6307_v37, %v7903_v19  ;;  %v2527_v19 = vsel %vm544_vm0, %v6395_v8, %v6364_v24 }
0x10c2   : > { %3257 = vrot.lane.b32.xlu0 %v3247_v47, %s4648_s8  ;;  %3211 = vrot.lane.b32.xlu1 %v3197_v10, %s4648_s8  ;;  %v7899_v47 = vld [vmem:[#allocation59_spill] sm:$0xff] }
0x10c3   : > { %v2368_v3 = vmul.f32 %v6305_v27, %v7899_v47  ;;  %v2384_v47 = vmul.f32 %v6334_v43, %v7907_v4 }
0x10c5   : > { %v2373_v10 = vadd.f32 %v2368_v3, %v2354_v32  ;;  %v2428_v32 = vsel %vm544_vm0, %v6377_v52, %v6322_v61 }
0x10c6   : > { %3261 = vrot.lane.b32.xlu0 %v3249_v0, %s4648_s8  ;;  %3259 = vrot.lane.b32.xlu1 %v3248_v30, %s4648_s8  ;;  %v2382_v0 = vmul.f32 %v6334_v43, %v7901_v17  ;;  %v7902_v30 = vld [vmem:[#allocation64_spill] sm:$0xff] }
0x10c7   : > { %v2383_v29 = vmul.f32 %v6334_v43, %v7902_v30  ;;  %v7908_v17 = vld [vmem:[#allocation72_spill] sm:$0xff] }
0x10ca   : > { %3265 = vrot.lane.b32.xlu0 %v3251_v40, %s4648_s8  ;;  %3263 = vrot.lane.b32.xlu1 %v3250_v63, %s4648_s8  ;;  %v2387_v40 = vadd.f32 %v2382_v0, %v2373_v10  ;;  %v2388_v63 = vadd.f32 %v2383_v29, %v2374_v59  ;;  %v2461_v10 = vsel %vm544_vm0, %v6383_v26, %v6336_v16 }
0x10cb   : > { %v2462_v59 = vsel %vm544_vm0, %v6336_v16, %v6385_v42  ;;  %v2398_v0 = vmul.f32 %v6307_v37, %v7908_v17  ;;  %v2528_v16 = vsel %vm544_vm0, %v6364_v24, %v6397_v41 }
0x10ce   : > { %3313 = vrot.lane.b32.xlu0 %v3302_v34, %s4648_s8  ;;  %3311 = vrot.lane.b32.xlu1 %v3301_v2, %s4648_s8  ;;  %v2397_v34 = vmul.f32 %v6307_v37, %v7904_v7  ;;  %v7905_v2 = vld [vmem:[#allocation43_spill] sm:$0xff] }
0x10cf   : > { %v2356_v9 = vmul.f32 %v6362_v23, %v7905_v2 }
0x10d2   : > { %3317 = vrot.lane.b32.xlu0 %v3304_v56, %s4648_s8  ;;  %3315 = vrot.lane.b32.xlu1 %v3303_v14, %s4648_s8  ;;  %v2370_v56 = vmul.f32 %v6305_v27, %v7906_v6  ;;  %v2401_v14 = vadd.f32 %v2396_v25, %v2387_v40  ;;  %v2494_v40 = vsel %vm544_vm0, %v6389_v12, %v6349_v50 }
0x10d4   : > { %v2375_v33 = vadd.f32 %v2370_v56, %v2356_v9  ;;  %v2437_v3 = vadd.f32 %v2428_v32, %v2401_v14  ;;  %v7910_v9 = vld [vmem:[#allocation89_spill] sm:$0xff] }
0x10d5   : > { %v2568_v6 = vsel %vm816_vm14, %v6456_v21, %v7910_v9  ;;  %v7912_v32 = vld [vmem:[#allocation73_spill] sm:$0xff] }
0x10d6   : > { %3319 = vrot.lane.b32.xlu1 %v3305_v39, %s4648_s8  ;;  %v2402_v39 = vadd.f32 %v2397_v34, %v2388_v63  ;;  %v2389_v58 = vadd.f32 %v2384_v47, %v2375_v33  ;;  %v2470_v30 = vadd.f32 %v2461_v10, %v2437_v3  ;;  %v2495_v63 = vsel %vm544_vm0, %v6349_v50, %v6391_v62  ;;  %v7909_v34 = vld [vmem:[#allocation81_spill] sm:$0xff]  ;;  %v7914_v47 = vld [vmem:[#allocation40_spill] sm:$0xff]  ;;  %v7916_v10 = vld [vmem:[#allocation55_spill] sm:$0xff] }
0x10d7   : > { %v2567_v2 = vsel %vm816_vm14, %v7909_v34, %v6456_v21  ;;  %v7911_v33 = vld [vmem:[#allocation61_spill] sm:$0xff]  ;;  %v2353_v3 = vmul.f32 %v6362_v23, %v7914_v47 }
0x10d8   : > { %v2438_v57 = vadd.f32 %v2429_v45, %v2402_v39  ;;  %v2403_v61 = vadd.f32 %v2398_v0, %v2389_v58  ;;  %v2503_v25 = vadd.f32 %v2494_v40, %v2470_v30  ;;  %v2352_v39 = vmul.f32 %v6362_v23, %v7829_v51  ;;  %v7913_v45 = vld [vmem:[#allocation18_spill] sm:$0xff]  ;;  %v7918_v0 = vld [vmem:[#allocation57_spill] sm:$0xff] }
0x10d9   : > { %v2605_v24 = vsel %vm816_vm14, %v7912_v32, %v7911_v33  ;;  %v2606_v4 = vsel %vm816_vm14, %v7911_v33, %v7913_v45  ;;  %v7915_v58 = vld [vmem:[#allocation46_spill] sm:$0xff]  ;;  %v2367_v30 = vmul.f32 %v6305_v27, %v7918_v0 }
0x10da   : > { %v2471_v29 = vadd.f32 %v2462_v59, %v2438_v57  ;;  %v2536_v56 = vadd.f32 %v2527_v19, %v2503_v25  ;;  %v2439_v50 = vadd.f32 %v6379_v48, %v2403_v61  ;;  %v2366_v48 = vmul.f32 %v6305_v27, %v7842_v5  ;;  %v7917_v59 = vld [vmem:[#allocation82_spill] sm:$0xff]  ;;  %v7920_v19 = vld [vmem:[#allocation47_spill] sm:$0xff]  ;;  %v7922_v27 = vld [vmem:[#allocation52_spill] sm:$0xff] }
0x10db   : > { %v2643_v51 = vsel %vm816_vm14, %v7916_v10, %v7915_v58  ;;  %v2644_v17 = vsel %vm816_vm14, %v7915_v58, %v7917_v59 }
0x10dc   : > { %v2504_v7 = vadd.f32 %v2495_v63, %v2471_v29  ;;  %v2577_v57 = vadd.f32 %v2567_v2, %v2536_v56  ;;  %v2472_v29 = vadd.f32 %v6385_v42, %v2439_v50  ;;  %v2371_v40 = vadd.f32 %v2366_v48, %v2352_v39  ;;  %v7919_v63 = vld [vmem:[#allocation48_spill] sm:$0xff]  ;;  %v7923_v50 = vld [vmem:[#allocation54_spill] sm:$0xff]  ;;  %v7924_v39 = vld [vmem:[#allocation63_spill] sm:$0xff] }
0x10dd   : > { %v2681_v5 = vsel %vm816_vm14, %v7920_v19, %v7919_v63  ;;  %v2380_v56 = vmul.f32 %v6334_v43, %v4909_v18  ;;  %v2762_v42 = vsel %vm1060_vm15, %v7922_v27, %v6631_v22  ;;  %v2381_v33 = vmul.f32 %v6334_v43, %v7924_v39  ;;  %v7926_v48 = vld [vmem:[#allocation44_spill] sm:$0xff]  ;;  %v7931_v39 = vld [vmem:[#allocation50_spill] sm:$0xff] }
0x10de   : > { %v2537_v14 = vadd.f32 %v2528_v16, %v2504_v7  ;;  %v2615_v61 = vadd.f32 %v2605_v24, %v2577_v57  ;;  %v7921_v16 = vld [vmem:[#allocation96_spill] sm:$0xff]  ;;  %v2372_v7 = vadd.f32 %v2367_v30, %v2353_v3  ;;  %v2505_v24 = vadd.f32 %v6391_v62, %v2472_v29  ;;  %v3035_v3 = vpop.permute.xlu1 %3034 }
0x10df   : > { %v2682_v25 = vsel %vm816_vm14, %v7919_v63, %v7921_v16  ;;  %v2385_v57 = vadd.f32 %v2380_v56, %v2371_v40  ;;  %v2816_v58 = vsel %vm1060_vm15, %v7926_v48, %v6637_v49  ;;  %v2394_v30 = vmul.f32 %v6307_v37, %v7855_v60  ;;  %v7928_v29 = vld [vmem:[#allocation92_spill] sm:$0xff]  ;;  %v7930_v60 = vld [vmem:[#allocation67_spill] sm:$0xff] }
0x10e0   : > { %v2578_v21 = vadd.f32 %v2568_v6, %v2537_v14  ;;  %v2653_v2 = vadd.f32 %v2643_v51, %v2615_v61  ;;  %v2763_v14 = vsel %vm1060_vm15, %v6631_v22, %v7923_v50  ;;  %v7927_v51 = vld [vmem:[#allocation56_spill] sm:$0xff]  ;;  %v2538_v43 = vadd.f32 %v6397_v41, %v2505_v24 }
0x10e1   : > { %v2817_v22 = vsel %vm1060_vm15, %v6637_v49, %v7927_v51  ;;  %v2870_v61 = vsel %vm1060_vm15, %v6550_v28, %v6643_v31  ;;  %v2871_v49 = vsel %vm1060_vm15, %v6643_v31, %v6552_v20  ;;  %v2966_v24 = vsel %vm342_vm11, %v6655_v36, %v6589_v1 }
0x10e2   : > { %v2616_v23 = vadd.f32 %v2606_v4, %v2578_v21  ;;  %v2691_v4 = vadd.f32 %v2681_v5, %v2653_v2  ;;  %v7925_v21 = vld [vmem:[#allocation90_spill] sm:$0xff]  ;;  %v2925_v2 = vsel %vm1060_vm15, %v6649_v46, %v6574_v11 }
0x10e3   : > { %v2569_v18 = vsel %vm816_vm14, %v7910_v9, %v7925_v21  ;;  %v2607_v9 = vsel %vm816_vm14, %v7913_v45, %v7928_v29  ;;  %v2924_v45 = vsel %vm1060_vm15, %v6572_v38, %v6649_v46  ;;  %v7932_v46 = vld [vmem:[#allocation87_spill] sm:$0xff] }
0x10e4   : > { %v2654_v6 = vadd.f32 %v2644_v17, %v2616_v23  ;;  %v2386_v17 = vadd.f32 %v2381_v33, %v2372_v7  ;;  %v2772_v62 = vadd.f32 %v2762_v42, %v2691_v4  ;;  %v7929_v23 = vld [vmem:[#allocation69_spill] sm:$0xff]  ;;  %v2579_v40 = vadd.f32 %v2569_v18, %v2538_v43  ;;  %v3039_v42 = vpop.permute.xlu0 %3038 }
0x10e5   : > { %v2395_v41 = vmul.f32 %v6307_v37, %v7929_v23  ;;  %v2645_v7 = vsel %vm816_vm14, %v7917_v59, %v7930_v60  ;;  %v2683_v33 = vsel %vm816_vm14, %v7921_v16, %v7931_v39  ;;  %v2965_v59 = vsel %vm342_vm11, %v6587_v35, %v6655_v36  ;;  %v7937_v39 = vld [vmem:[#allocation88_spill] sm:$0xff] }
0x10e6   : > { %v2692_v47 = vadd.f32 %v2682_v25, %v2654_v6  ;;  %v2826_v63 = vadd.f32 %v2816_v58, %v2772_v62  ;;  %v2399_v25 = vadd.f32 %v2394_v30, %v2385_v57  ;;  %v2617_v6 = vadd.f32 %v2607_v9, %v2579_v40 }
0x10e7   : > { %v2400_v31 = vadd.f32 %v2395_v41, %v2386_v17  ;;  %v2427_v4 = vsel %vm544_vm0, %v7932_v46, %v6377_v52  ;;  %v2764_v16 = vsel %vm1060_vm15, %v7923_v50, %v6633_v54  ;;  %v3003_v58 = vsel %vm342_vm11, %v6602_v44, %v6661_v53  ;;  %v7934_v41 = vld [vmem:[#allocation75_spill] sm:$0xff] }
0x10e8   : > { %v2773_v0 = vadd.f32 %v2763_v14, %v2692_v47  ;;  %v2880_v56 = vadd.f32 %v2870_v61, %v2826_v63  ;;  %v3037_v14 = vpop.permute.xlu1 %3036  ;;  %v2655_v47 = vadd.f32 %v2645_v7, %v2617_v6  ;;  %v2435_v18 = vadd.f32 %v7932_v46, %v2399_v25  ;;  %v7933_v61 = vld [vmem:[#allocation51_spill] sm:$0xff] }
0x10e9   : > { %v3004_v36 = vsel %vm342_vm11, %v6661_v53, %v6604_v15  ;;  %v2818_v54 = vsel %vm1060_vm15, %v7927_v51, %v6639_v55  ;;  %v3041_v50 = vsel %vm342_vm11, %v6665_v13, %v3035_v3  ;;  %v3042_v30 = vsel %vm342_vm11, %v3035_v3, %v3037_v14  ;;  %v7935_v3 = vld [vmem:[#allocation76_spill] sm:$0xff] }
0x10ea   : > { %v2827_v5 = vadd.f32 %v2817_v22, %v2773_v0  ;;  %v2934_v57 = vadd.f32 %v2924_v45, %v2880_v56  ;;  %v2436_v22 = vadd.f32 %v2427_v4, %v2400_v31  ;;  %v2693_v17 = vadd.f32 %v2683_v33, %v2655_v47 }
0x10eb   : > { %v2468_v23 = vadd.f32 %v7933_v61, %v2435_v18  ;;  %v2872_v40 = vsel %vm1060_vm15, %v6552_v20, %v7934_v41  ;;  %v2926_v7 = vsel %vm1060_vm15, %v6574_v11, %v7935_v3  ;;  %v7936_v20 = vld [vmem:[#allocation80_spill] sm:$0xff]  ;;  %v2526_v33 = vsel %vm544_vm0, %v7937_v39, %v6395_v8  ;;  %v7938_v11 = vld [vmem:[#allocation83_spill] sm:$0xff] }
0x10ec   : > { %v2881_v37 = vadd.f32 %v2871_v49, %v2827_v5  ;;  %v2975_v52 = vadd.f32 %v2965_v59, %v2934_v57  ;;  %v2774_v29 = vadd.f32 %v2764_v16, %v2693_v17  ;;  %v2460_v49 = vsel %vm544_vm0, %v7933_v61, %v6383_v26  ;;  %v7940_v18 = vld [vmem:[#allocation84_spill] sm:$0xff] }
0x10ed   : > { %v2469_v63 = vadd.f32 %v2460_v49, %v2436_v22  ;;  %v2493_v56 = vsel %vm544_vm0, %v7936_v20, %v6389_v12  ;;  %v2967_v59 = vsel %vm342_vm11, %v6589_v1, %v7938_v11  ;;  %v3005_v16 = vsel %vm342_vm11, %v6604_v15, %v7940_v18  ;;  %v7941_v22 = vld [vmem:[#allocation45_spill] sm:$0xff]  ;;  %v7949_v18 = vld [vmem:[#allocation98_spill] sm:$0xff] }
0x10ee   : > { %v2935_v21 = vadd.f32 %v2925_v2, %v2881_v37  ;;  %v3013_v9 = vadd.f32 %v3003_v58, %v2975_v52  ;;  %v2828_v55 = vadd.f32 %v2818_v54, %v2774_v29  ;;  %v2501_v37 = vadd.f32 %v7936_v20, %v2468_v23  ;;  %v7942_v15 = vld [vmem:[#allocation93_spill] sm:$0xff] }
0x10ef   : > { %v2604_v17 = vsel %vm816_vm14, %v7941_v22, %v7912_v32  ;;  %v3043_v52 = vsel %vm342_vm11, %v3037_v14, %v3039_v42  ;;  %v2642_v29 = vsel %vm816_vm14, %v7942_v15, %v7916_v10  ;;  %v7943_v49 = vld [vmem:[#allocation77_spill] sm:$0xff]  ;;  %vm3398_vm0 = vsmask.f32 7938 }
0x10f0   : > { %v2976_v43 = vadd.f32 %v2966_v24, %v2935_v21  ;;  %v3051_v51 = vadd.f32 %v3041_v50, %v3013_v9  ;;  %v2882_v2 = vadd.f32 %v2872_v40, %v2828_v55  ;;  %v2502_v24 = vadd.f32 %v2493_v56, %v2469_v63  ;;  %v7939_v21 = vld [vmem:[#allocation53_spill] sm:$0xff]  ;;  %v7944_v63 = vld [vmem:[#allocation74_spill] sm:$0xff] }
0x10f1   : > { %v2534_v57 = vadd.f32 %v7937_v39, %v2501_v37  ;;  %v2566_v12 = vsel %vm816_vm14, %v7939_v21, %v7909_v34  ;;  %v2680_v32 = vsel %vm816_vm14, %v7943_v49, %v7920_v19  ;;  %v2761_v55 = vsel %vm1060_vm15, %v7944_v63, %v7922_v27  ;;  %v7945_v19 = vld [vmem:[#allocation62_spill] sm:$0xff]  ;;  %v7946_v27 = vld [vmem:[#allocation5_spill] sm:$0xff] }
0x10f2   : > { %v3014_v53 = vadd.f32 %v3004_v36, %v2976_v43  ;;  %v2936_v46 = vadd.f32 %v2926_v7, %v2882_v2  ;;  %v2535_v58 = vadd.f32 %v2526_v33, %v2502_v24  ;;  %v2815_v7 = vsel %vm1060_vm15, %v7945_v19, %v7926_v48 }
0x10f3   : > { %v2575_v1 = vadd.f32 %v7939_v21, %v2534_v57  ;;  %v2869_v56 = vsel %vm1060_vm15, %v7946_v27, %v6550_v28 }
0x10f4   : > { %v3052_v5 = vadd.f32 %v3042_v30, %v3014_v53  ;;  %v2977_v36 = vadd.f32 %v2967_v59, %v2936_v46  ;;  %v2576_v43 = vadd.f32 %v2566_v12, %v2535_v58  ;;  %v7948_v46 = vld [vmem:[#allocation78_spill] sm:$0xff] }
0x10f5   : > { %v2613_v30 = vadd.f32 %v7941_v22, %v2575_v1  ;;  %v7950_v1 = vld [vmem:[#allocation100_spill] sm:$0xff] }
0x10f6   : > { %v3015_v54 = vadd.f32 %v3005_v16, %v2977_v36  ;;  %v2614_v9 = vadd.f32 %v2604_v17, %v2576_v43  ;;  %v3002_v16 = vsel %vm342_vm11, %v7949_v18, %v6602_v44  ;;  %v3040_v22 = vsel %vm342_vm11, %v7950_v1, %v6665_v13 }
0x10f7   : > { %v2651_v61 = vadd.f32 %v7942_v15, %v2613_v30 }
0x10f8   : > { %v3053_v53 = vadd.f32 %v3043_v52, %v3015_v54  ;;  %v2652_v23 = vadd.f32 %v2642_v29, %v2614_v9 }
0x10f9   : > { %v2689_v40 = vadd.f32 %v7943_v49, %v2651_v61 }
0x10fb   : > { %v2770_v3 = vadd.f32 %v7944_v63, %v2689_v40 }
0x10fd   : > { %v2824_v20 = vadd.f32 %v7945_v19, %v2770_v3 }
0x10ff   : > { %v2878_v39 = vadd.f32 %v7946_v27, %v2824_v20 }
0x1118   : > { %v6876_v62 = vpop.permute.xlu1 %3068  ;;  %v6878_v0 = vpop.permute.xlu0 %3070 }
0x1119   : > { %v3078_v54 = vsel %vm342_vm11, %v6876_v62, %v6878_v0 }
0x111c   : > { %v3073_v25 = vpop.permute.xlu1 %3072  ;;  %v3075_v60 = vpop.permute.xlu0 %3074 }
0x111d   : > { %v3079_v45 = vsel %vm342_vm11, %v6878_v0, %v3073_v25  ;;  %v3080_v26 = vsel %vm342_vm11, %v3073_v25, %v3075_v60 }
0x111e   : > { %v6899_v31 = vadd.f32 %v3079_v45, %v3051_v51  ;;  %v3090_v6 = vadd.f32 %v3080_v26, %v3052_v5  ;;  %v2690_v5 = vadd.f32 %v2680_v32, %v2652_v23 }
0x1120   : > { %v3077_v4 = vpop.permute.xlu1 %3076  ;;  %v6911_v47 = vpop.permute.xlu0 %3149  ;;  %v2771_v45 = vadd.f32 %v2761_v55, %v2690_v5 }
0x1121   : > { %v3081_v8 = vsel %vm342_vm11, %v3075_v60, %v3077_v4  ;;  %v2964_v4 = vsel %vm342_vm11, %v7948_v46, %v6587_v35  ;;  %vm7097_vm11 = vmand %vm1675_vm4, %vm3398_vm0 }
0x1122   : > { %v3091_v42 = vadd.f32 %v3081_v8, %v3053_v53  ;;  %v2825_v37 = vadd.f32 %v2815_v7, %v2771_v45  ;;  %v7951_v45 = vld [vmem:[#allocation79_spill] sm:$0xff] }
0x1124   : > { %v3152_v50 = vpop.permute.xlu1 %3151  ;;  %v3154_v34 = vpop.permute.xlu0 %3153  ;;  %v2879_v11 = vadd.f32 %v2869_v56, %v2825_v37 }
0x1125   : > { %v3159_v9 = vsel %vm1440_vm2, %v6911_v47, %v3152_v50  ;;  %v3160_v32 = vsel %vm1440_vm2, %v3152_v50, %v3154_v34 }
0x1128   : > { %v3156_v14 = vpop.permute.xlu1 %3155  ;;  %v3158_v41 = vpop.permute.xlu0 %3157 }
0x1129   : > { %v3161_v10 = vsel %vm1440_vm2, %v3154_v34, %v3156_v14  ;;  %v3162_v51 = vsel %vm1440_vm2, %v3156_v14, %v3158_v41 }
0x112a   : > { %v3171_v25 = vadd.f32 %v3161_v10, %v3090_v6  ;;  %v3172_v60 = vadd.f32 %v3162_v51, %v3091_v42  ;;  %v7947_v6 = vld [vmem:[#allocation68_spill] sm:$0xff]  ;;  %v3170_v51 = vadd.f32 %v3160_v32, %v6899_v31 }
0x112b   : > { %v2923_v33 = vsel %vm1060_vm15, %v7947_v6, %v6572_v38  ;;  %v2932_v48 = vadd.f32 %v7947_v6, %v2878_v39 }
0x112c   : > { %v3204_v26 = vpop.permute.xlu1 %3203  ;;  %v3206_v2 = vpop.permute.xlu0 %3205  ;;  %v2933_v21 = vadd.f32 %v2923_v33, %v2879_v11 }
0x112d   : > { %v2973_v12 = vadd.f32 %v7948_v46, %v2932_v48  ;;  %v3213_v61 = vsel %vm1440_vm2, %v3204_v26, %v3206_v2 }
0x112e   : > { %v2974_v38 = vadd.f32 %v2964_v4, %v2933_v21 }
0x112f   : > { %v3011_v36 = vadd.f32 %v7949_v18, %v2973_v12 }
0x1130   : > { %v3208_v59 = vpop.permute.xlu1 %3207  ;;  %v3210_v24 = vpop.permute.xlu0 %3209  ;;  %v3012_v17 = vadd.f32 %v3002_v16, %v2974_v38 }
0x1131   : > { %v3215_v57 = vsel %vm1440_vm2, %v3208_v59, %v3210_v24  ;;  %v3049_v43 = vadd.f32 %v7950_v1, %v3011_v36  ;;  %v3214_v10 = vsel %vm1440_vm2, %v3206_v2, %v3208_v59  ;;  %v7952_v59 = vld [vmem:[#allocation49_spill] sm:$0xff] }
0x1132   : > { %v3225_v28 = vadd.f32 %v3215_v57, %v3171_v25  ;;  %v3050_v44 = vadd.f32 %v3040_v22, %v3012_v17  ;;  %v3224_v19 = vadd.f32 %v3214_v10, %v3170_v51 }
0x1133   : > { %v3087_v29 = vadd.f32 %v6876_v62, %v3049_v43 }
0x1134   : > { %v3212_v8 = vpop.permute.xlu1 %3211  ;;  %v3258_v58 = vpop.permute.xlu0 %3257  ;;  %v3088_v53 = vadd.f32 %v3078_v54, %v3050_v44 }
0x1135   : > { %v3216_v35 = vsel %vm1440_vm2, %v3210_v24, %v3212_v8  ;;  %v3168_v13 = vadd.f32 %v6911_v47, %v3087_v29 }
0x1136   : > { %v3226_v52 = vadd.f32 %v3216_v35, %v3172_v60  ;;  %v3169_v49 = vadd.f32 %v3159_v9, %v3088_v53 }
0x1137   : > { %v3222_v14 = vadd.f32 %v3204_v26, %v3168_v13 }
0x1138   : > { %v3260_v30 = vpop.permute.xlu1 %3259  ;;  %v3262_v15 = vpop.permute.xlu0 %3261  ;;  %v3223_v40 = vadd.f32 %v3213_v61, %v3169_v49 }
0x1139   : > { %v3267_v0 = vsel %vm1440_vm2, %v3258_v58, %v3260_v30  ;;  %v3276_v47 = vadd.f32 %v3258_v58, %v3222_v14  ;;  %v3268_v34 = vsel %vm1440_vm2, %v3260_v30, %v3262_v15 }
0x113a   : > { %v3277_v5 = vadd.f32 %v3267_v0, %v3223_v40  ;;  %v3278_v20 = vadd.f32 %v3268_v34, %v3224_v19 }
0x113c   : > { %v3264_v23 = vpop.permute.xlu1 %3263  ;;  %v3266_v42 = vpop.permute.xlu0 %3265 }
0x113d   : > { %v3269_v41 = vsel %vm1440_vm2, %v3262_v15, %v3264_v23  ;;  %v3270_v62 = vsel %vm1440_vm2, %v3264_v23, %v3266_v42 }
0x113e   : > { %v3279_v63 = vadd.f32 %v3269_v41, %v3225_v28  ;;  %v3280_v55 = vadd.f32 %v3270_v62, %v3226_v52 }
0x1140   : > { %v3312_v25 = vpop.permute.xlu1 %3311  ;;  %v3314_v50 = vpop.permute.xlu0 %3313 }
0x1141   : > { %v3330_v60 = vadd.f32 %v3312_v25, %v3276_v47  ;;  %v3321_v3 = vsel %vm1440_vm2, %v3312_v25, %v3314_v50 }
0x1142   : > { %v3331_v7 = vadd.f32 %v3321_v3, %v3277_v5 }
0x1143   : > { %v3335_v26 = vadd.f32 %v3330_v60, %v7951_v45 }
0x1144   : > { %v3336_v27 = vadd.f32 %v3331_v7, %v7951_v45  ;;  %v3316_v56 = vpop.permute.xlu1 %3315  ;;  %v3318_v2 = vpop.permute.xlu0 %3317 }
0x1145   : > { %v3322_v37 = vsel %vm1440_vm2, %v3314_v50, %v3316_v56  ;;  %v3323_v31 = vsel %vm1440_vm2, %v3316_v56, %v3318_v2 }
0x1146   : > { %v4295_v39 = vpack.c.bf16 %v3336_v27, %v3335_v26  ;;  %v3332_v6 = vadd.f32 %v3322_v37, %v3278_v20  ;;  %v3333_v33 = vadd.f32 %v3323_v31, %v3279_v63  ;;  %v3341_v11 = vpack.c.bf16 %v3336_v27, %v3336_v27 }
0x1148   : > { %v3354_v24 = vrot.slane %v4295_v39, %v7952_v59  ;;  %v6989_v48 = vadd.f32 %v3332_v6, %v7951_v45  ;;  %v6992_v46 = vadd.f32 %v3333_v33, %v7951_v45  ;;  %v3320_v4 = vpop.permute.xlu1 %3319  ;;  %v3418_v28 = vrot.slane %v3341_v11, %v7952_v59 }
0x1149   : > { %v3324_v57 = vsel %vm1440_vm2, %v3318_v2, %v3320_v4 }
0x114a   : > { %v4361_v21 = vpack.c.bf16 %v6992_v46, %v6989_v48  ;;  %v3334_v12 = vadd.f32 %v3324_v57, %v3280_v55  ;;  %v3362_v18 = vrot.slane %v3354_v24, %v7952_v59  ;;  %v3355_v16 = vcombine.high %v3354_v24, %v3354_v24 }
0x114b   : > { %v3426_v35 = vrot.slane %v3418_v28, %v7952_v59  ;;  %v3419_v17 = vcombine.high %v3418_v28, %v3418_v28  ;;  %v4324_v61 = vpack.c.bf16 %v6989_v48, %v3336_v27  ;;  %v3342_v32 = vpack.c.bf16 %v6989_v48, %v6989_v48 }
0x114c   : > { %v7000_v38 = vadd.f32 %v3334_v12, %v7951_v45  ;;  %v4296_v8 = vpack.i.b16 %v3362_v18, %v3362_v18  ;;  %v3371_v58 = vunpack.i.h.s16 %v3362_v18  ;;  %v3369_v36 = vrot.slane %v3355_v16, %v7952_v59 }
0x114d   : > { %v3435_v44 = vunpack.i.h.s16 %v3426_v35  ;;  %v3433_v30 = vrot.slane %v3419_v17, %v7952_v59  ;;  %v4298_v15 = vpack.i.b16 %v3426_v35, %v3426_v35  ;;  %v3522_v49 = vrot.slane %v4324_v61, %v7952_v59 }
0x114e   : > { %v4398_v1 = vpack.c.bf16 %v7000_v38, %v6992_v46  ;;  %3378 = vrot.lane.b32.xlu0 %v4296_v8, %s4647_s30  ;;  %v3375_v22 = vpack.i.b16 %v3371_v58, %v3371_v58  ;;  %v3373_v52 = vunpack.i.h.s16 %v3369_v36  ;;  %v4297_v43 = vpack.i.b16 %v3369_v36, %v3369_v36 }
0x114f   : > { %v3439_v29 = vpack.i.b16 %v3435_v44, %v3435_v44  ;;  %v3437_v9 = vunpack.i.h.s16 %v3433_v30  ;;  %v4299_v53 = vpack.i.b16 %v3433_v30, %v3433_v30  ;;  %v3530_v23 = vrot.slane %v3522_v49, %v7952_v59 }
0x1150   : > { %3380 = vrot.lane.b32.xlu1 %v3375_v22, %s4647_s30  ;;  %v3377_v54 = vpack.i.b16 %v3373_v52, %v3373_v52  ;;  %v3523_v42 = vcombine.high %v3522_v49, %v3522_v49  ;;  %v3584_v14 = vrot.slane %v3342_v32, %v7952_v59  ;;  %v3688_v7 = vrot.slane %v4361_v21, %v7952_v59 }
0x1151   : > { %v3441_v13 = vpack.i.b16 %v3437_v9, %v3437_v9  ;;  %v3539_v0 = vunpack.i.h.s16 %v3530_v23  ;;  %v4325_v62 = vpack.i.b16 %v3530_v23, %v3530_v23  ;;  %v3854_v20 = vrot.slane %v4398_v1, %v7952_v59 }
0x1152   : > { %3382 = vrot.lane.b32.xlu0 %v4297_v43, %s4647_s30  ;;  %v3537_v41 = vrot.slane %v3523_v42, %v7952_v59  ;;  %v3592_v55 = vrot.slane %v3584_v14, %v7952_v59  ;;  %v3585_v10 = vcombine.high %v3584_v14, %v3584_v14  ;;  %v3696_v45 = vrot.slane %v3688_v7, %v7952_v59  ;;  %v3400_v14 = vld [vmem:[%s6008_s27] sm:$0x1] }
0x1153   : > { %v3543_v40 = vpack.i.b16 %v3539_v0, %v3539_v0  ;;  %v3689_v26 = vcombine.high %v3688_v7, %v3688_v7  ;;  %v3343_v37 = vpack.c.bf16 %v6992_v46, %v6992_v46  ;;  %v3855_v31 = vcombine.high %v3854_v20, %v3854_v20 }
0x1154   : > { %3384 = vrot.lane.b32.xlu1 %v3377_v54, %s4647_s30  ;;  %v3541_v63 = vunpack.i.h.s16 %v3537_v41  ;;  %v4326_v47 = vpack.i.b16 %v3537_v41, %v3537_v41  ;;  %v3601_v5 = vunpack.i.h.s16 %v3592_v55  ;;  %v3599_v25 = vrot.slane %v3585_v10, %v7952_v59 }
0x1155   : > { %v4335_v50 = vpack.i.b16 %v3592_v55, %v3592_v55  ;;  %v3705_v27 = vunpack.i.h.s16 %v3696_v45  ;;  %v3703_v56 = vrot.slane %v3689_v26, %v7952_v59  ;;  %v4362_v2 = vpack.i.b16 %v3696_v45, %v3696_v45 }
0x1156   : > { %3442 = vrot.lane.b32.xlu0 %v4298_v15, %s4641_s4  ;;  %v3545_v51 = vpack.i.b16 %v3541_v63, %v3541_v63  ;;  %v3605_v34 = vpack.i.b16 %v3601_v5, %v3601_v5  ;;  %v3603_v60 = vunpack.i.h.s16 %v3599_v25  ;;  %v4336_v3 = vpack.i.b16 %v3599_v25, %v3599_v25  ;;  %v3403_v63 = vld [vmem:[%s6008_s27 + $0x10] sm:$0x1]  ;;  %v3406_v5 = vld [vmem:[%s6008_s27 + $0x20] sm:$0x1] }
0x1157   : > { %v3709_v39 = vpack.i.b16 %v3705_v27, %v3705_v27  ;;  %v3707_v6 = vunpack.i.h.s16 %v3703_v56  ;;  %v3862_v33 = vrot.slane %v3854_v20, %v7952_v59  ;;  %v4363_v11 = vpack.i.b16 %v3703_v56, %v3703_v56  ;;  %v4302_v20 = vld [vmem:[%s6008_s27 + $0x11] sm:$0x1] }
0x1158   : > { %3444 = vrot.lane.b32.xlu1 %v3439_v29, %s4641_s4  ;;  %v3607_v19 = vpack.i.b16 %v3603_v60, %v3603_v60  ;;  %v3750_v24 = vrot.slane %v3343_v37, %v7952_v59  ;;  %v3869_v57 = vrot.slane %v3855_v31, %v7952_v59  ;;  %v3344_v43 = vpack.c.bf16 %v7000_v38, %v7000_v38  ;;  %v4300_v60 = vld [vmem:[%s6008_s27 + $0x1] sm:$0x1] }
0x1159   : > { %v3711_v48 = vpack.i.b16 %v3707_v6, %v3707_v6  ;;  %v3871_v4 = vunpack.i.h.s16 %v3862_v33  ;;  %v4399_v46 = vpack.i.b16 %v3862_v33, %v3862_v33 }
0x115a   : > { %3446 = vrot.lane.b32.xlu0 %v4299_v53, %s4641_s4  ;;  %v3873_v28 = vunpack.i.h.s16 %v3869_v57  ;;  %v3758_v12 = vrot.slane %v3750_v24, %v7952_v59  ;;  %v3751_v18 = vcombine.high %v3750_v24, %v3750_v24  ;;  %v4400_v16 = vpack.i.b16 %v3869_v57, %v3869_v57 }
0x115b   : > { %v3875_v21 = vpack.i.b16 %v3871_v4, %v3871_v4  ;;  %v3916_v54 = vrot.slane %v3344_v43, %v7952_v59  ;;  %v4310_v4 = vld [vmem:[%s6008_s27 + $0x12] sm:$0x1] }
0x115c   : > { %3448 = vrot.lane.b32.xlu1 %v3441_v13, %s4641_s4  ;;  %v3877_v8 = vpack.i.b16 %v3873_v28, %v3873_v28  ;;  %v3767_v58 = vunpack.i.h.s16 %v3758_v12  ;;  %v3765_v36 = vrot.slane %v3751_v18, %v7952_v59  ;;  %v4372_v1 = vpack.i.b16 %v3758_v12, %v3758_v12  ;;  %v4314_v18 = vld [vmem:[%s6008_s27 + $0x32] sm:$0x1] }
0x115d   : > { %v3917_v44 = vcombine.high %v3916_v54, %v3916_v54  ;;  %v3924_v30 = vrot.slane %v3916_v54, %v7952_v59 }
0x115e   : > { %3466 = vrot.lane.b32.xlu0 %v4298_v15, %s4651_s18  ;;  %v3771_v22 = vpack.i.b16 %v3767_v58, %v3767_v58  ;;  %v3769_v35 = vunpack.i.h.s16 %v3765_v36  ;;  %v4373_v17 = vpack.i.b16 %v3765_v36, %v3765_v36  ;;  %v4316_v58 = vld [vmem:[%s6008_s27 + $0x3] sm:$0x1] }
0x115f   : > { %v3933_v38 = vunpack.i.h.s16 %v3924_v30 }
0x1160   : > { %3468 = vrot.lane.b32.xlu1 %v3439_v29, %s4651_s18  ;;  %v3773_v52 = vpack.i.b16 %v3769_v35, %v3769_v35 }
0x1161   : > { %v3937_v9 = vpack.i.b16 %v3933_v38, %v3933_v38 }
0x1162   : > { %3470 = vrot.lane.b32.xlu0 %v4299_v53, %s4651_s18 }
0x1164   : > { %3472 = vrot.lane.b32.xlu1 %v3441_v13, %s4651_s18 }
0x1166   : > { %3490 = vrot.lane.b32.xlu0 %v4298_v15, %s4650_s11  ;;  %v3931_v15 = vrot.slane %v3917_v44, %v7952_v59  ;;  %v4322_v44 = vld [vmem:[%s6008_s27 + $0x33] sm:$0x1] }
0x1168   : > { %3492 = vrot.lane.b32.xlu1 %v3439_v29, %s4650_s11  ;;  %v4409_v29 = vpack.i.b16 %v3924_v30, %v3924_v30 }
0x116a   : > { %3494 = vrot.lane.b32.xlu0 %v4299_v53, %s4650_s11  ;;  %v3935_v53 = vunpack.i.h.s16 %v3931_v15 }
0x116c   : > { %3496 = vrot.lane.b32.xlu1 %v3441_v13, %s4650_s11  ;;  %v4410_v13 = vpack.i.b16 %v3931_v15, %v3931_v15  ;;  %v3939_v61 = vpack.i.b16 %v3935_v53, %v3935_v53  ;;  %v4327_v53 = vld [vmem:[%s6008_s27 + $0x4] sm:$0x1] }
0x116e   : > { %3546 = vrot.lane.b32.xlu0 %v4325_v62, %s4647_s30 }
0x1170   : > { %3548 = vrot.lane.b32.xlu1 %v3543_v40, %s4647_s30 }
0x1172   : > { %3550 = vrot.lane.b32.xlu0 %v4326_v47, %s4647_s30 }
0x1174   : > { %3552 = vrot.lane.b32.xlu1 %v3545_v51, %s4647_s30 }
0x1176   : > { %3608 = vrot.lane.b32.xlu0 %v4335_v50, %s4641_s4 }
0x1178   : > { %3610 = vrot.lane.b32.xlu1 %v3605_v34, %s4641_s4 }
0x117a   : > { %3612 = vrot.lane.b32.xlu0 %v4336_v3, %s4641_s4 }
0x117c   : > { %3614 = vrot.lane.b32.xlu1 %v3607_v19, %s4641_s4 }
0x117e   : > { %3632 = vrot.lane.b32.xlu0 %v4335_v50, %s4651_s18 }
0x1180   : > { %3634 = vrot.lane.b32.xlu1 %v3605_v34, %s4651_s18 }
0x1182   : > { %3636 = vrot.lane.b32.xlu0 %v4336_v3, %s4651_s18 }
0x1184   : > { %3638 = vrot.lane.b32.xlu1 %v3607_v19, %s4651_s18 }
0x1186   : > { %3656 = vrot.lane.b32.xlu0 %v4335_v50, %s4650_s11 }
0x1188   : > { %3658 = vrot.lane.b32.xlu1 %v3605_v34, %s4650_s11 }
0x118a   : > { %3660 = vrot.lane.b32.xlu0 %v4336_v3, %s4650_s11 }
0x118c   : > { %3662 = vrot.lane.b32.xlu1 %v3607_v19, %s4650_s11  ;;  %v3409_v19 = vld [vmem:[%s6008_s27 + $0x30] sm:$0x1] }
0x118e   : > { %3712 = vrot.lane.b32.xlu0 %v4362_v2, %s4647_s30  ;;  %v4304_v2 = vld [vmem:[%s6008_s27 + $0x21] sm:$0x1] }
0x1190   : > { %3714 = vrot.lane.b32.xlu1 %v3709_v39, %s4647_s30  ;;  %v4306_v39 = vld [vmem:[%s6008_s27 + $0x31] sm:$0x1] }
0x1192   : > { %3716 = vrot.lane.b32.xlu0 %v4363_v11, %s4647_s30  ;;  %v4308_v11 = vld [vmem:[%s6008_s27 + $0x2] sm:$0x1] }
0x1194   : > { %3718 = vrot.lane.b32.xlu1 %v3711_v48, %s4647_s30 }
0x1196   : > { %3878 = vrot.lane.b32.xlu0 %v4399_v46, %s4647_s30 }
0x1198   : > { %3880 = vrot.lane.b32.xlu1 %v3875_v21, %s4647_s30  ;;  %v4312_v21 = vld [vmem:[%s6008_s27 + $0x22] sm:$0x1] }
0x119a   : > { %3882 = vrot.lane.b32.xlu0 %v4400_v16, %s4647_s30 }
0x119c   : > { %3884 = vrot.lane.b32.xlu1 %v3877_v8, %s4647_s30 }
0x119e   : > { %3774 = vrot.lane.b32.xlu0 %v4372_v1, %s4641_s4 }
0x11a0   : > { %3776 = vrot.lane.b32.xlu1 %v3771_v22, %s4641_s4 }
0x11a2   : > { %3778 = vrot.lane.b32.xlu0 %v4373_v17, %s4641_s4 }
0x11a4   : > { %3780 = vrot.lane.b32.xlu1 %v3773_v52, %s4641_s4 }
0x11a6   : > { %3798 = vrot.lane.b32.xlu0 %v4372_v1, %s4651_s18 }
0x11a8   : > { %3800 = vrot.lane.b32.xlu1 %v3771_v22, %s4651_s18 }
0x11aa   : > { %3802 = vrot.lane.b32.xlu0 %v4373_v17, %s4651_s18 }
0x11ac   : > { %3804 = vrot.lane.b32.xlu1 %v3773_v52, %s4651_s18 }
0x11ae   : > { %3822 = vrot.lane.b32.xlu0 %v4372_v1, %s4650_s11 }
0x11b0   : > { %3824 = vrot.lane.b32.xlu1 %v3771_v22, %s4650_s11  ;;  %v4318_v22 = vld [vmem:[%s6008_s27 + $0x13] sm:$0x1] }
0x11b2   : > { %3826 = vrot.lane.b32.xlu0 %v4373_v17, %s4650_s11 }
0x11b4   : > { %3828 = vrot.lane.b32.xlu1 %v3773_v52, %s4650_s11  ;;  %v4320_v52 = vld [vmem:[%s6008_s27 + $0x23] sm:$0x1] }
0x11b6   : > { %3940 = vrot.lane.b32.xlu0 %v4409_v29, %s4641_s4 }
0x11b8   : > { %3942 = vrot.lane.b32.xlu1 %v3937_v9, %s4641_s4 }
0x11ba   : > { %3944 = vrot.lane.b32.xlu0 %v4410_v13, %s4641_s4 }
0x11bc   : > { %3946 = vrot.lane.b32.xlu1 %v3939_v61, %s4641_s4  ;;  %s4029_s4 = sshll.u32 %s6008_s27, 4  ;;  %s7383_s4 = int_to_ptr.vmem [resolvable:$true] %s4029_s4 }
0x11bd   : > { %s4557_s10 = scalar_lea.vmem %s7383_s4, 1024  ;;  %p4564_p1 = scmp.lt.s32.totalorder %s7383_s4, %s4562_s5 }
0x11be   : > { %3964 = vrot.lane.b32.xlu0 %v4409_v29, %s4651_s18  ;;  %p4558_p12 = scmp.ne.s32.totalorder %s7383_s4, %s4557_s10  ;;  %p4565_p2 = scmp.lt.s32.totalorder %s4563_s29, %s4557_s10 }
0x11c0   : > { %3966 = vrot.lane.b32.xlu1 %v3937_v9, %s4651_s18  ;;  %v3379_v59 = vpop.permute.xlu0 %3378  ;;  %p4559_p13 = pnand %p4558_p12, %p4715_p4  ;;  %p4566_p3 = por %p4565_p2, %p4564_p1 }
0x11c1   : > { %v3386_v32 = vrot.slane %v3379_v59, 1 }
0x11c2   : > { %v3381_v23 = vpop.permute.xlu1 %3380  ;;  %3968 = vrot.lane.b32.xlu0 %v4410_v13, %s4651_s18  ;;  %p4560_p0 = pneg %p4559_p13 }
0x11c3   : > { %v3390_v42 = vsel %vm1381_vm6, %v3379_v59, %v3386_v32  ;;  %v3387_v0 = vrot.slane %v3381_v23, 1 }
0x11c4   : > { %v3401_v41 = vsel %vm7097_vm11, %v3390_v42, %v3400_v14  ;;  %3970 = vrot.lane.b32.xlu1 %v3939_v61, %s4651_s18  ;;  %v3383_v62 = vpop.permute.xlu0 %3382  ;;  %s7379_s18 = scalar_lea.hbm %s7440_s3, %s4441_s28  ;;  %p4567_p5 = pnand %p4566_p3, %p4560_p0 }
0x11c5   : > { %3402 = vst [vmem:[%s6008_s27] sm:$0x1] %v3401_v41  ;;  %v3391_v40 = vsel %vm1381_vm6, %v3381_v23, %v3387_v0  ;;  %v3388_v55 = vrot.slane %v3383_v62, 1  ;;  %v4329_v23 = vld [vmem:[%s6008_s27 + $0x14] sm:$0x1] }
0x11c6   : > { %v3404_v10 = vsel %vm7097_vm11, %v3391_v40, %v3403_v63  ;;  %v3385_v47 = vpop.permute.xlu1 %3384  ;;  %3988 = vrot.lane.b32.xlu0 %v4409_v29, %s4650_s11 }
0x11c7   : > { %3405 = vst [vmem:[%s6008_s27 + $0x10] sm:$0x1] %v3404_v10  ;;  %v3392_v51 = vsel %vm1381_vm6, %v3383_v62, %v3388_v55  ;;  %v3389_v25 = vrot.slane %v3385_v47, 1  ;;  %v4331_v62 = vld [vmem:[%s6008_s27 + $0x24] sm:$0x1] }
0x11c8   : > { %v3407_v50 = vsel %vm7097_vm11, %v3392_v51, %v3406_v5  ;;  %3990 = vrot.lane.b32.xlu1 %v3937_v9, %s4650_s11  ;;  %v3443_v34 = vpop.permute.xlu0 %3442  ;;  %v4337_v10 = vld [vmem:[%s6008_s27 + $0x5] sm:$0x1]  ;;  %v4333_v51 = vld [vmem:[%s6008_s27 + $0x34] sm:$0x1] }
0x11c9   : > { %3408 = vst [vmem:[%s6008_s27 + $0x20] sm:$0x1] %v3407_v50  ;;  %v3393_v3 = vsel %vm1381_vm6, %v3385_v47, %v3389_v25  ;;  %v3455_v7 = vsel %vm7097_vm11, %v3443_v34, %v4300_v60  ;;  %v4339_v34 = vld [vmem:[%s6008_s27 + $0x15] sm:$0x1] }
0x11ca   : > { %v3410_v45 = vsel %vm7097_vm11, %v3393_v3, %v3409_v19  ;;  %4301 = vst [vmem:[%s6008_s27 + $0x1] sm:$0x1] %v3455_v7  ;;  %v3445_v26 = vpop.permute.xlu1 %3444  ;;  %3992 = vrot.lane.b32.xlu0 %v4410_v13, %s4650_s11  ;;  %v4341_v19 = vld [vmem:[%s6008_s27 + $0x25] sm:$0x1] }
0x11cb   : > { %3411 = vst [vmem:[%s6008_s27 + $0x30] sm:$0x1] %v3410_v45  ;;  %v3458_v27 = vsel %vm7097_vm11, %v3445_v26, %v4302_v20  ;;  %v4343_v26 = vld [vmem:[%s6008_s27 + $0x35] sm:$0x1] }
0x11cc   : > { %4303 = vst [vmem:[%s6008_s27 + $0x11] sm:$0x1] %v3458_v27  ;;  %3994 = vrot.lane.b32.xlu1 %v3939_v61, %s4650_s11  ;;  %v3447_v56 = vpop.permute.xlu0 %3446 }
0x11cd   : > { %v3461_v37 = vsel %vm7097_vm11, %v3447_v56, %v4304_v2  ;;  %v4345_v56 = vld [vmem:[%s6008_s27 + $0x6] sm:$0x1] }
0x11ce   : > { %4305 = vst [vmem:[%s6008_s27 + $0x21] sm:$0x1] %v3461_v37  ;;  %v3449_v31 = vpop.permute.xlu1 %3448 }
0x11cf   : > { %v3464_v6 = vsel %vm7097_vm11, %v3449_v31, %v4306_v39  ;;  %v4347_v31 = vld [vmem:[%s6008_s27 + $0x16] sm:$0x1] }
0x11d0   : > { %4307 = vst [vmem:[%s6008_s27 + $0x31] sm:$0x1] %v3464_v6  ;;  %v3467_v33 = vpop.permute.xlu0 %3466 }
0x11d1   : > { %v3479_v24 = vsel %vm7097_vm11, %v3467_v33, %v4308_v11  ;;  %v4349_v33 = vld [vmem:[%s6008_s27 + $0x26] sm:$0x1] }
0x11d2   : > { %4309 = vst [vmem:[%s6008_s27 + $0x2] sm:$0x1] %v3479_v24  ;;  %v3469_v48 = vpop.permute.xlu1 %3468 }
0x11d3   : > { %v3482_v57 = vsel %vm7097_vm11, %v3469_v48, %v4310_v4  ;;  %v4351_v48 = vld [vmem:[%s6008_s27 + $0x36] sm:$0x1] }
0x11d4   : > { %4311 = vst [vmem:[%s6008_s27 + $0x12] sm:$0x1] %v3482_v57  ;;  %v3471_v46 = vpop.permute.xlu0 %3470 }
0x11d5   : > { %v3485_v28 = vsel %vm7097_vm11, %v3471_v46, %v4312_v21  ;;  %v4353_v46 = vld [vmem:[%s6008_s27 + $0x7] sm:$0x1] }
0x11d6   : > { %4313 = vst [vmem:[%s6008_s27 + $0x22] sm:$0x1] %v3485_v28  ;;  %v3473_v12 = vpop.permute.xlu1 %3472 }
0x11d7   : > { %v3488_v16 = vsel %vm7097_vm11, %v3473_v12, %v4314_v18  ;;  %v4355_v12 = vld [vmem:[%s6008_s27 + $0x17] sm:$0x1] }
0x11d8   : > { %4315 = vst [vmem:[%s6008_s27 + $0x32] sm:$0x1] %v3488_v16  ;;  %v3491_v8 = vpop.permute.xlu0 %3490 }
0x11d9   : > { %v3503_v36 = vsel %vm7097_vm11, %v3491_v8, %v4316_v58  ;;  %v4357_v8 = vld [vmem:[%s6008_s27 + $0x27] sm:$0x1] }
0x11da   : > { %4317 = vst [vmem:[%s6008_s27 + $0x3] sm:$0x1] %v3503_v36  ;;  %v3493_v1 = vpop.permute.xlu1 %3492 }
0x11db   : > { %v3506_v35 = vsel %vm7097_vm11, %v3493_v1, %v4318_v22  ;;  %v4359_v1 = vld [vmem:[%s6008_s27 + $0x37] sm:$0x1] }
0x11dc   : > { %4319 = vst [vmem:[%s6008_s27 + $0x13] sm:$0x1] %v3506_v35  ;;  %v3495_v17 = vpop.permute.xlu0 %3494 }
0x11dd   : > { %v3509_v43 = vsel %vm7097_vm11, %v3495_v17, %v4320_v52 }
0x11de   : > { %4321 = vst [vmem:[%s6008_s27 + $0x23] sm:$0x1] %v3509_v43  ;;  %v3497_v54 = vpop.permute.xlu1 %3496 }
0x11df   : > { %v3512_v30 = vsel %vm7097_vm11, %v3497_v54, %v4322_v44  ;;  %v4364_v54 = vld [vmem:[%s6008_s27 + $0x8] sm:$0x1] }
0x11e0   : > { %4323 = vst [vmem:[%s6008_s27 + $0x33] sm:$0x1] %v3512_v30  ;;  %v3547_v38 = vpop.permute.xlu0 %3546 }
0x11e1   : > { %v3554_v15 = vrot.slane %v3547_v38, 1 }
0x11e2   : > { %v3549_v29 = vpop.permute.xlu1 %3548 }
0x11e3   : > { %v3558_v9 = vsel %vm1381_vm6, %v3547_v38, %v3554_v15  ;;  %v3555_v13 = vrot.slane %v3549_v29, 1 }
0x11e4   : > { %v3567_v61 = vsel %vm7097_vm11, %v3558_v9, %v4327_v53  ;;  %v3551_v59 = vpop.permute.xlu0 %3550 }
0x11e5   : > { %4328 = vst [vmem:[%s6008_s27 + $0x4] sm:$0x1] %v3567_v61  ;;  %v3559_v32 = vsel %vm1381_vm6, %v3549_v29, %v3555_v13  ;;  %v3556_v42 = vrot.slane %v3551_v59, 1  ;;  %v4366_v29 = vld [vmem:[%s6008_s27 + $0x18] sm:$0x1] }
0x11e6   : > { %v3570_v14 = vsel %vm7097_vm11, %v3559_v32, %v4329_v23  ;;  %v3553_v0 = vpop.permute.xlu1 %3552 }
0x11e7   : > { %4330 = vst [vmem:[%s6008_s27 + $0x14] sm:$0x1] %v3570_v14  ;;  %v3560_v41 = vsel %vm1381_vm6, %v3551_v59, %v3556_v42  ;;  %v3557_v40 = vrot.slane %v3553_v0, 1  ;;  %v4368_v59 = vld [vmem:[%s6008_s27 + $0x28] sm:$0x1] }
0x11e8   : > { %v3573_v63 = vsel %vm7097_vm11, %v3560_v41, %v4331_v62  ;;  %v3609_v55 = vpop.permute.xlu0 %3608 }
0x11e9   : > { %4332 = vst [vmem:[%s6008_s27 + $0x24] sm:$0x1] %v3573_v63  ;;  %v3561_v47 = vsel %vm1381_vm6, %v3553_v0, %v3557_v40  ;;  %v3621_v5 = vsel %vm7097_vm11, %v3609_v55, %v4337_v10  ;;  %v4370_v0 = vld [vmem:[%s6008_s27 + $0x38] sm:$0x1]  ;;  %v4401_v55 = vld [vmem:[%s6008_s27 + $0xc] sm:$0x1] }
0x11ea   : > { %v3576_v25 = vsel %vm7097_vm11, %v3561_v47, %v4333_v51  ;;  %4338 = vst [vmem:[%s6008_s27 + $0x5] sm:$0x1] %v3621_v5  ;;  %v3611_v50 = vpop.permute.xlu1 %3610 }
0x11eb   : > { %4334 = vst [vmem:[%s6008_s27 + $0x34] sm:$0x1] %v3576_v25  ;;  %v3624_v60 = vsel %vm7097_vm11, %v3611_v50, %v4339_v34  ;;  %v4403_v25 = vld [vmem:[%s6008_s27 + $0x1c] sm:$0x1] }
0x11ec   : > { %4340 = vst [vmem:[%s6008_s27 + $0x15] sm:$0x1] %v3624_v60  ;;  %v3613_v3 = vpop.permute.xlu0 %3612 }
0x11ed   : > { %v3627_v7 = vsel %vm7097_vm11, %v3613_v3, %v4341_v19  ;;  %v4405_v19 = vld [vmem:[%s6008_s27 + $0x2c] sm:$0x1] }
0x11ee   : > { %4342 = vst [vmem:[%s6008_s27 + $0x25] sm:$0x1] %v3627_v7  ;;  %v3615_v45 = vpop.permute.xlu1 %3614 }
0x11ef   : > { %v3630_v20 = vsel %vm7097_vm11, %v3615_v45, %v4343_v26 }
0x11f0   : > { %4344 = vst [vmem:[%s6008_s27 + $0x35] sm:$0x1] %v3630_v20  ;;  %v3633_v27 = vpop.permute.xlu0 %3632  ;;  %v4374_v20 = vld [vmem:[%s6008_s27 + $0x9] sm:$0x1] }
0x11f1   : > { %v3645_v2 = vsel %vm7097_vm11, %v3633_v27, %v4345_v56  ;;  %v4407_v56 = vld [vmem:[%s6008_s27 + $0x3c] sm:$0x1] }
0x11f2   : > { %4346 = vst [vmem:[%s6008_s27 + $0x6] sm:$0x1] %v3645_v2  ;;  %v3635_v37 = vpop.permute.xlu1 %3634 }
0x11f3   : > { %v3648_v39 = vsel %vm7097_vm11, %v3635_v37, %v4347_v31 }
0x11f4   : > { %4348 = vst [vmem:[%s6008_s27 + $0x16] sm:$0x1] %v3648_v39  ;;  %v3637_v6 = vpop.permute.xlu0 %3636  ;;  %v4376_v39 = vld [vmem:[%s6008_s27 + $0x19] sm:$0x1] }
0x11f5   : > { %v3651_v11 = vsel %vm7097_vm11, %v3637_v6, %v4349_v33 }
0x11f6   : > { %4350 = vst [vmem:[%s6008_s27 + $0x26] sm:$0x1] %v3651_v11  ;;  %v3639_v24 = vpop.permute.xlu1 %3638  ;;  %v4378_v11 = vld [vmem:[%s6008_s27 + $0x29] sm:$0x1] }
0x11f7   : > { %v3654_v4 = vsel %vm7097_vm11, %v3639_v24, %v4351_v48 }
0x11f8   : > { %4352 = vst [vmem:[%s6008_s27 + $0x36] sm:$0x1] %v3654_v4  ;;  %v3657_v57 = vpop.permute.xlu0 %3656  ;;  %v4380_v4 = vld [vmem:[%s6008_s27 + $0x39] sm:$0x1] }
0x11f9   : > { %v3669_v21 = vsel %vm7097_vm11, %v3657_v57, %v4353_v46 }
0x11fa   : > { %4354 = vst [vmem:[%s6008_s27 + $0x7] sm:$0x1] %v3669_v21  ;;  %v3659_v28 = vpop.permute.xlu1 %3658  ;;  %v4382_v21 = vld [vmem:[%s6008_s27 + $0xa] sm:$0x1] }
0x11fb   : > { %v3672_v18 = vsel %vm7097_vm11, %v3659_v28, %v4355_v12 }
0x11fc   : > { %4356 = vst [vmem:[%s6008_s27 + $0x17] sm:$0x1] %v3672_v18  ;;  %v3661_v16 = vpop.permute.xlu0 %3660  ;;  %v4384_v18 = vld [vmem:[%s6008_s27 + $0x1a] sm:$0x1] }
0x11fd   : > { %v3675_v58 = vsel %vm7097_vm11, %v3661_v16, %v4357_v8 }
0x11fe   : > { %4358 = vst [vmem:[%s6008_s27 + $0x27] sm:$0x1] %v3675_v58  ;;  %v3663_v36 = vpop.permute.xlu1 %3662  ;;  %v4386_v58 = vld [vmem:[%s6008_s27 + $0x2a] sm:$0x1] }
0x11ff   : > { %v3678_v22 = vsel %vm7097_vm11, %v3663_v36, %v4359_v1 }
0x1200   : > { %4360 = vst [vmem:[%s6008_s27 + $0x37] sm:$0x1] %v3678_v22  ;;  %v3713_v35 = vpop.permute.xlu0 %3712  ;;  %v4388_v22 = vld [vmem:[%s6008_s27 + $0x3a] sm:$0x1] }
0x1201   : > { %v3720_v17 = vrot.slane %v3713_v35, 1 }
0x1202   : > { %v3715_v52 = vpop.permute.xlu1 %3714 }
0x1203   : > { %v3724_v43 = vsel %vm1381_vm6, %v3713_v35, %v3720_v17  ;;  %v3721_v44 = vrot.slane %v3715_v52, 1 }
0x1204   : > { %v3733_v30 = vsel %vm7097_vm11, %v3724_v43, %v4364_v54  ;;  %v3717_v38 = vpop.permute.xlu0 %3716 }
0x1205   : > { %4365 = vst [vmem:[%s6008_s27 + $0x8] sm:$0x1] %v3733_v30  ;;  %v3725_v15 = vsel %vm1381_vm6, %v3715_v52, %v3721_v44  ;;  %v3722_v9 = vrot.slane %v3717_v38, 1  ;;  %v4390_v52 = vld [vmem:[%s6008_s27 + $0xb] sm:$0x1] }
0x1206   : > { %v3736_v53 = vsel %vm7097_vm11, %v3725_v15, %v4366_v29  ;;  %v3719_v13 = vpop.permute.xlu1 %3718  ;;  %v4392_v44 = vld [vmem:[%s6008_s27 + $0x1b] sm:$0x1]  ;;  %v4394_v15 = vld [vmem:[%s6008_s27 + $0x2b] sm:$0x1] }
0x1207   : > { %4367 = vst [vmem:[%s6008_s27 + $0x18] sm:$0x1] %v3736_v53  ;;  %v3726_v61 = vsel %vm1381_vm6, %v3717_v38, %v3722_v9  ;;  %v3723_v32 = vrot.slane %v3719_v13, 1  ;;  %v4396_v53 = vld [vmem:[%s6008_s27 + $0x3b] sm:$0x1] }
0x1208   : > { %v3739_v23 = vsel %vm7097_vm11, %v3726_v61, %v4368_v59  ;;  %v3879_v42 = vpop.permute.xlu0 %3878  ;;  %v4411_v59 = vld [vmem:[%s6008_s27 + $0xd] sm:$0x1] }
0x1209   : > { %4369 = vst [vmem:[%s6008_s27 + $0x28] sm:$0x1] %v3739_v23  ;;  %v3727_v14 = vsel %vm1381_vm6, %v3719_v13, %v3723_v32  ;;  %v3886_v41 = vrot.slane %v3879_v42, 1 }
0x120a   : > { %v3742_v62 = vsel %vm7097_vm11, %v3727_v14, %v4370_v0  ;;  %v3881_v40 = vpop.permute.xlu1 %3880 }
0x120b   : > { %4371 = vst [vmem:[%s6008_s27 + $0x38] sm:$0x1] %v3742_v62  ;;  %v3890_v63 = vsel %vm1381_vm6, %v3879_v42, %v3886_v41  ;;  %v3887_v10 = vrot.slane %v3881_v40, 1  ;;  %v4413_v42 = vld [vmem:[%s6008_s27 + $0x1d] sm:$0x1] }
0x120c   : > { %v3899_v47 = vsel %vm7097_vm11, %v3890_v63, %v4401_v55  ;;  %v3883_v51 = vpop.permute.xlu0 %3882  ;;  %v4415_v41 = vld [vmem:[%s6008_s27 + $0x2d] sm:$0x1]  ;;  %v4417_v63 = vld [vmem:[%s6008_s27 + $0x3d] sm:$0x1] }
0x120d   : > { %4402 = vst [vmem:[%s6008_s27 + $0xc] sm:$0x1] %v3899_v47  ;;  %v3891_v5 = vsel %vm1381_vm6, %v3881_v40, %v3887_v10  ;;  %v3888_v50 = vrot.slane %v3883_v51, 1  ;;  %v4419_v47 = vld [vmem:[%s6008_s27 + $0xe] sm:$0x1] }
0x120e   : > { %v3902_v34 = vsel %vm7097_vm11, %v3891_v5, %v4403_v25  ;;  %v3885_v60 = vpop.permute.xlu1 %3884  ;;  %v4421_v25 = vld [vmem:[%s6008_s27 + $0x1e] sm:$0x1] }
0x120f   : > { %4404 = vst [vmem:[%s6008_s27 + $0x1c] sm:$0x1] %v3902_v34  ;;  %v3892_v3 = vsel %vm1381_vm6, %v3883_v51, %v3888_v50  ;;  %v3889_v7 = vrot.slane %v3885_v60, 1 }
0x1210   : > { %v3905_v45 = vsel %vm7097_vm11, %v3892_v3, %v4405_v19  ;;  %v3775_v26 = vpop.permute.xlu0 %3774 }
0x1211   : > { %4406 = vst [vmem:[%s6008_s27 + $0x2c] sm:$0x1] %v3905_v45  ;;  %v3893_v27 = vsel %vm1381_vm6, %v3885_v60, %v3889_v7  ;;  %v3787_v2 = vsel %vm7097_vm11, %v3775_v26, %v4374_v20  ;;  %v4423_v60 = vld [vmem:[%s6008_s27 + $0x2e] sm:$0x1]  ;;  %v4425_v7 = vld [vmem:[%s6008_s27 + $0x3e] sm:$0x1] }
0x1212   : > { %v3908_v37 = vsel %vm7097_vm11, %v3893_v27, %v4407_v56  ;;  %4375 = vst [vmem:[%s6008_s27 + $0x9] sm:$0x1] %v3787_v2  ;;  %v3777_v31 = vpop.permute.xlu1 %3776  ;;  %v4427_v20 = vld [vmem:[%s6008_s27 + $0xf] sm:$0x1]  ;;  %v4429_v2 = vld [vmem:[%s6008_s27 + $0x1f] sm:$0x1] }
0x1213   : > { %4408 = vst [vmem:[%s6008_s27 + $0x3c] sm:$0x1] %v3908_v37  ;;  %v3790_v6 = vsel %vm7097_vm11, %v3777_v31, %v4376_v39  ;;  %v4431_v39 = vld [vmem:[%s6008_s27 + $0x2f] sm:$0x1] }
0x1214   : > { %4377 = vst [vmem:[%s6008_s27 + $0x19] sm:$0x1] %v3790_v6  ;;  %v3779_v33 = vpop.permute.xlu0 %3778 }
0x1215   : > { %v3793_v24 = vsel %vm7097_vm11, %v3779_v33, %v4378_v11  ;;  %v4433_v11 = vld [vmem:[%s6008_s27 + $0x3f] sm:$0x1] }
0x1216   : > { %4379 = vst [vmem:[%s6008_s27 + $0x29] sm:$0x1] %v3793_v24  ;;  %v3781_v48 = vpop.permute.xlu1 %3780 }
0x1217   : > { %v3796_v57 = vsel %vm7097_vm11, %v3781_v48, %v4380_v4 }
0x1218   : > { %4381 = vst [vmem:[%s6008_s27 + $0x39] sm:$0x1] %v3796_v57  ;;  %v3799_v46 = vpop.permute.xlu0 %3798 }
0x1219   : > { %v3811_v28 = vsel %vm7097_vm11, %v3799_v46, %v4382_v21 }
0x121a   : > { %4383 = vst [vmem:[%s6008_s27 + $0xa] sm:$0x1] %v3811_v28  ;;  %v3801_v12 = vpop.permute.xlu1 %3800 }
0x121b   : > { %v3814_v16 = vsel %vm7097_vm11, %v3801_v12, %v4384_v18 }
0x121c   : > { %4385 = vst [vmem:[%s6008_s27 + $0x1a] sm:$0x1] %v3814_v16  ;;  %v3803_v8 = vpop.permute.xlu0 %3802 }
0x121d   : > { %v3817_v36 = vsel %vm7097_vm11, %v3803_v8, %v4386_v58 }
0x121e   : > { %4387 = vst [vmem:[%s6008_s27 + $0x2a] sm:$0x1] %v3817_v36  ;;  %v3805_v1 = vpop.permute.xlu1 %3804 }
0x121f   : > { %v3820_v35 = vsel %vm7097_vm11, %v3805_v1, %v4388_v22 }
0x1220   : > { %4389 = vst [vmem:[%s6008_s27 + $0x3a] sm:$0x1] %v3820_v35  ;;  %v3823_v17 = vpop.permute.xlu0 %3822 }
0x1221   : > { %v3835_v43 = vsel %vm7097_vm11, %v3823_v17, %v4390_v52 }
0x1222   : > { %4391 = vst [vmem:[%s6008_s27 + $0xb] sm:$0x1] %v3835_v43  ;;  %v3825_v54 = vpop.permute.xlu1 %3824 }
0x1223   : > { %v3838_v30 = vsel %vm7097_vm11, %v3825_v54, %v4392_v44 }
0x1224   : > { %4393 = vst [vmem:[%s6008_s27 + $0x1b] sm:$0x1] %v3838_v30  ;;  %v3827_v38 = vpop.permute.xlu0 %3826 }
0x1225   : > { %v3841_v29 = vsel %vm7097_vm11, %v3827_v38, %v4394_v15 }
0x1226   : > { %4395 = vst [vmem:[%s6008_s27 + $0x2b] sm:$0x1] %v3841_v29  ;;  %v3829_v9 = vpop.permute.xlu1 %3828 }
0x1227   : > { %v3844_v13 = vsel %vm7097_vm11, %v3829_v9, %v4396_v53 }
0x1228   : > { %4397 = vst [vmem:[%s6008_s27 + $0x3b] sm:$0x1] %v3844_v13  ;;  %v3941_v61 = vpop.permute.xlu0 %3940 }
0x1229   : > { %v3953_v32 = vsel %vm7097_vm11, %v3941_v61, %v4411_v59 }
0x122a   : > { %4412 = vst [vmem:[%s6008_s27 + $0xd] sm:$0x1] %v3953_v32  ;;  %v3943_v23 = vpop.permute.xlu1 %3942 }
0x122b   : > { %v3956_v14 = vsel %vm7097_vm11, %v3943_v23, %v4413_v42 }
0x122c   : > { %4414 = vst [vmem:[%s6008_s27 + $0x1d] sm:$0x1] %v3956_v14  ;;  %v3945_v0 = vpop.permute.xlu0 %3944 }
0x122d   : > { %v3959_v62 = vsel %vm7097_vm11, %v3945_v0, %v4415_v41 }
0x122e   : > { %4416 = vst [vmem:[%s6008_s27 + $0x2d] sm:$0x1] %v3959_v62  ;;  %v3947_v40 = vpop.permute.xlu1 %3946 }
0x122f   : > { %v3962_v55 = vsel %vm7097_vm11, %v3947_v40, %v4417_v63 }
0x1230   : > { %4418 = vst [vmem:[%s6008_s27 + $0x3d] sm:$0x1] %v3962_v55  ;;  %v3965_v10 = vpop.permute.xlu0 %3964 }
0x1231   : > { %v3977_v51 = vsel %vm7097_vm11, %v3965_v10, %v4419_v47 }
0x1232   : > { %4420 = vst [vmem:[%s6008_s27 + $0xe] sm:$0x1] %v3977_v51  ;;  %v3967_v5 = vpop.permute.xlu1 %3966 }
0x1233   : > { %v3980_v50 = vsel %vm7097_vm11, %v3967_v5, %v4421_v25 }
0x1234   : > { %4422 = vst [vmem:[%s6008_s27 + $0x1e] sm:$0x1] %v3980_v50  ;;  %v3969_v34 = vpop.permute.xlu0 %3968 }
0x1235   : > { %v3983_v3 = vsel %vm7097_vm11, %v3969_v34, %v4423_v60 }
0x1236   : > { %4424 = vst [vmem:[%s6008_s27 + $0x2e] sm:$0x1] %v3983_v3  ;;  %v3971_v19 = vpop.permute.xlu1 %3970 }
0x1237   : > { %v3986_v45 = vsel %vm7097_vm11, %v3971_v19, %v4425_v7 }
0x1238   : > { %4426 = vst [vmem:[%s6008_s27 + $0x3e] sm:$0x1] %v3986_v45  ;;  %v3989_v26 = vpop.permute.xlu0 %3988 }
0x1239   : > { %v4001_v27 = vsel %vm7097_vm11, %v3989_v26, %v4427_v20 }
0x123a   : > { %4428 = vst [vmem:[%s6008_s27 + $0xf] sm:$0x1] %v4001_v27  ;;  %v3991_v56 = vpop.permute.xlu1 %3990 }
0x123b   : > { %v4004_v37 = vsel %vm7097_vm11, %v3991_v56, %v4429_v2 }
0x123c   : > { %4430 = vst [vmem:[%s6008_s27 + $0x1f] sm:$0x1] %v4004_v37  ;;  %v3993_v31 = vpop.permute.xlu0 %3992 }
0x123d   : > { %v4007_v6 = vsel %vm7097_vm11, %v3993_v31, %v4431_v39 }
0x123e   : > { %4432 = vst [vmem:[%s6008_s27 + $0x2f] sm:$0x1] %v4007_v6  ;;  %v3995_v33 = vpop.permute.xlu1 %3994 }
0x123f   : > { %v4010_v24 = vsel %vm7097_vm11, %v3995_v33, %v4433_v11 }
0x1240   : > { %4434 = vst [vmem:[%s6008_s27 + $0x3f] sm:$0x1] %v4010_v24 }
0x1241   : > { %4570 = shalt.err (!%p4567_p5)
}
0x1242   : > { %s4571_s19 = scalar_lea.hbm %s7379_s18, 1024  ;;  %s4575_s23 = scalar_lea.hbm %s7440_s3, 2048 }
0x1243   : > { %p4572_p6 = scmp.ne.s32.totalorder %s7379_s18, %s4571_s19  ;;  %p4576_p10 = scmp.lt.u32.totalorder %s7379_s18, %s7440_s3 }
0x1244   : > { %p4577_p11 = scmp.lt.u32.totalorder %s4575_s23, %s4571_s19  ;;  %p4579_p13 = scmp.lt.u32.totalorder %s4571_s19, %s7379_s18 }
0x1245   : > { %p4573_p7 = pnand %p4572_p6, %p4715_p4 }
0x1246   : > { %p4578_p12 = por %p4577_p11, %p4576_p10 }
0x1247   : > { %p4574_p9 = pneg %p4573_p7 }
0x1248   : > { %p4580_p0 = por %p4579_p13, %p4578_p12 }
0x124a   : > { %p4581_p1 = pnand %p4580_p0, %p4574_p9 }
0x124c   : > { %4584 = shalt.err (!%p4581_p1)
}
0x124d   : > { %s4654_s9 = smov 16  }
0x124e   : > { %4442 = dma.vmem_to_hbm [thread:$0]  (%p4715_p4), %s7383_s4, 1024, %s7379_s18, %s7390_s15, %s4654_s9, %s4654_s9, %s4647_s30  }
0x124f PF: > { %p4448_p2 = scmp.ge.s32.totalorder %s4635_s17, 2  ;;  %s4044_s28 = sand.u32 1, %s4615_s12  }
0x1250   : > { %s4045_s8 = scalar_lea.sflag [#allocation3], %s4044_s28 }
0x1251   : > { %p4445_p3 = pnand %p4448_p2, %p4722_p8 }
0x1253   : > { %4610 = dma.done.wait (!%p4445_p3), %s4045_s8, 1024  }
0x1254   : > { %4612 = vsyncadd (!%p4445_p3), %s4045_s8, 4294966272  ;;  %s16_s17 = sadd.s32 1, %s4635_s17   ;;  %s7955_s12 = smov %s4619_s13 }
0x1255   : > { %p13_p5 = scmp.ge.s32.totalorder %s16_s17, 4   ;;  %s7956_s13 = smov %s4623_s14 }
0x1256   : > { %s7957_s14 = smov %s4728_s25  ;;  %s7958_s15 = smov %s4631_s16 }
0x1257   : > { %s7959_s16 = smov %s7961_s20  ;;  %15 = sbr.rel (!%p13_p5) target bundleno = 4 (0x4), region = 99 }
0x125e   :  { %4050 = vsyncpa [#allocation3], 1 }
0x125f   :  { %4052 = vsyncpa [#allocation3 + $0x1], 1 }

</bundles_post_ra>
